<compile_context>
chip_gen: v5e
topology: v5e:2x2
jax: 0.10.0
libtpu: 0.0.40
codegen_flags: <defaults>
</compile_context>

<pallas_src>
import functools

import jax
import jax.numpy as jnp
from jax.experimental import pallas as pl
from jax.experimental.pallas import tpu as pltpu

P_DROP = 0.2
KEEP = 1.0 - P_DROP
_INV_KEEP = 1.0 / KEEP
_KEEP_THRESHOLD = int(KEEP * (1 << 32))     # uint32 threshold: P(bits < thr) ~= KEEP
_MATMUL_DTYPE = jnp.bfloat16                # MXU operand dtype (f32 accumulation)

_VMEM = pl.BlockSpec(memory_space=pltpu.MemorySpace.VMEM)


# ---------------------------------------------------------------- kernels ---

def _conv_block_kernel(x_ref, bits_ref, w_ref, b_ref, o_ref, xpad_ref, *, matmul_dtype):
    """BayesianDropout -> Conv2d(3x3, pad=1) -> ReLU, fully in VMEM.

    x_ref:    (N, H, W, Cin)     f32 NHWC input
    bits_ref: (N, H, W, Cin)     uint32 random bits (one per input element)
    w_ref:    (9, Cin, Cout)     conv weights, tap-major (kh*3 + kw)
    b_ref:    (1, Cout)          f32 bias
    o_ref:    (N*H*W, Cout)      f32 output, rows in NHWC order n*H*W + i*W + j
    xpad_ref: (N, H+2, W+2, Cin) f32 VMEM scratch holding the zero-padded input
    """
    n, h, w, cin = x_ref.shape
    cout = w_ref.shape[-1]

    # Always-active inverted dropout, integer-threshold decision (no f32 PRNG math).
    keep = bits_ref[...] < jnp.uint32(_KEEP_THRESHOLD)
    xd = jnp.where(keep, x_ref[...] * jnp.float32(_INV_KEEP), jnp.float32(0.0))

    # Zero-padded copy of the dropped-out input (never leaves VMEM).
    xpad_ref[...] = jnp.zeros_like(xpad_ref)
    xpad_ref[:, 1:h + 1, 1:w + 1, :] = xd

    # Shift-and-accumulate im2col conv: 9 small MXU dots into one f32 accumulator.
    acc = jnp.zeros((n * h * w, cout), jnp.float32)
    for kh in range(3):
        for kw in range(3):
            xt = xpad_ref[:, kh:kh + h, kw:kw + w, :].reshape(n * h * w, cin)
            acc = acc + jnp.dot(xt.astype(matmul_dtype), w_ref[kh * 3 + kw],
                                preferred_element_type=jnp.float32)
    acc = acc + b_ref[...]                      # bias broadcast exactly once
    o_ref[...] = jnp.maximum(acc, 0.0)


def _mlp_head_kernel(feat_ref, bits1_ref, w1_ref, b1_ref, bits2_ref, w2_ref, b2_ref,
                     o_ref, *, matmul_dtype):
    """BayesianDropout -> Linear -> ReLU -> BayesianDropout -> Linear (fused)."""
    thr = jnp.uint32(_KEEP_THRESHOLD)
    inv = jnp.float32(_INV_KEEP)

    xd = jnp.where(bits1_ref[...] < thr, feat_ref[...] * inv, jnp.float32(0.0))
    h1 = jnp.dot(xd.astype(matmul_dtype), w1_ref[...],
                 preferred_element_type=jnp.float32) + b1_ref[...]
    h1 = jnp.maximum(h1, 0.0)

    hd = jnp.where(bits2_ref[...] < thr, h1 * inv, jnp.float32(0.0))
    out = jnp.dot(hd.astype(matmul_dtype), w2_ref[...],
                  preferred_element_type=jnp.float32) + b2_ref[...]
    o_ref[...] = out                            # only the final (N, n_classes) is narrow


# ------------------------------------------------------------ pallas_call ---

def _conv_block(x_nhwc, bits, w9, b):
    n, h, w, cin = x_nhwc.shape
    cout = w9.shape[-1]
    return pl.pallas_call(
        functools.partial(_conv_block_kernel, matmul_dtype=_MATMUL_DTYPE),
        out_shape=jax.ShapeDtypeStruct((n * h * w, cout), jnp.float32),
        in_specs=[_VMEM, _VMEM, _VMEM, _VMEM],
        out_specs=_VMEM,
        scratch_shapes=[pltpu.VMEM((n, h + 2, w + 2, cin), jnp.float32)],
    )(x_nhwc, bits, w9, b)


def _mlp_head(feat, bits1, w1, b1, bits2, w2, b2):
    n = feat.shape[0]
    n_out = w2.shape[-1]
    return pl.pallas_call(
        functools.partial(_mlp_head_kernel, matmul_dtype=_MATMUL_DTYPE),
        out_shape=jax.ShapeDtypeStruct((n, n_out), jnp.float32),
        in_specs=[_VMEM] * 7,
        out_specs=_VMEM,
    )(feat, bits1, w1, b1, bits2, w2, b2)


# ------------------------------------------------------------------ params --

def init_params(key, cin=4, cout=8, h=16, w=16, hidden=32, n_classes=2):
    """Torch-layout init, then one-time re-layouts so the kernels never transpose."""
    k1, k2, k3 = jax.random.split(key, 3)
    conv_w = 0.05 * jax.random.normal(k1, (cout, cin, 3, 3), jnp.float32)      # torch (Cout,Cin,KH,KW)
    fc1_w = 0.02 * jax.random.normal(k2, (cout * h * w, hidden), jnp.float32)  # rows = torch NCHW flatten c*H*W + p
    fc2_w = 0.1 * jax.random.normal(k3, (hidden, n_classes), jnp.float32)

    # Conv weights as (tap, Cin, Cout), tap = kh*3 + kw, matching the kernel's shift order.
    conv_w9 = jnp.transpose(conv_w, (2, 3, 1, 0)).reshape(9, cin, cout)
    # Fold the flatten permutation into fc1 rows once (init-time, zero steady-state cost):
    #   NHWC-flatten index p*Cout + c  <-  torch NCHW-flatten index c*H*W + p
    fc1_w_nhwc = fc1_w.reshape(cout, h * w, hidden).transpose(1, 0, 2).reshape(cout * h * w, hidden)

    return {
        "conv_w9": conv_w9.astype(_MATMUL_DTYPE),
        "conv_b": jnp.linspace(-0.1, 0.1, cout, dtype=jnp.float32).reshape(1, cout),
        "fc1_w": fc1_w_nhwc.astype(_MATMUL_DTYPE),
        "fc1_b": jnp.linspace(-0.05, 0.05, hidden, dtype=jnp.float32).reshape(1, hidden),
        "fc2_w": fc2_w.astype(_MATMUL_DTYPE),
        "fc2_b": jnp.zeros((1, n_classes), jnp.float32),
    }


# ----------------------------------------------------------------- forward --

@jax.jit
def bayesian_wrapper_forward(params, x_nchw, dropout_key):
    """Forward of BayesianWrapper(model): each Conv/Linear sees Dropout(p=0.2)
    first, active regardless of train/eval mode.  Vary `dropout_key` per MC sample."""
    n, cin, h, w = x_nchw.shape
    cout = params["conv_w9"].shape[-1]
    hidden = params["fc1_w"].shape[-1]

    x_nhwc = jnp.transpose(x_nchw, (0, 2, 3, 1)).astype(jnp.float32)

    k0, k1, k2 = jax.random.split(dropout_key, 3)
    bits0 = jax.random.bits(k0, (n, h, w, cin), dtype=jnp.uint32)
    bits1 = jax.random.bits(k1, (n, h * w * cout), dtype=jnp.uint32)
    bits2 = jax.random.bits(k2, (n, hidden), dtype=jnp.uint32)

    # Fused: dropout -> conv(3x3, same) -> ReLU.
    conv = _conv_block(x_nhwc, bits0, params["conv_w9"], params["conv_b"])
    # (N*H*W, Cout) -> (N, H*W*Cout) is a contiguous row-major view: free, no transpose.
    feat = conv.reshape(n, h * w * cout)
    # Fused: dropout -> fc1 -> ReLU -> dropout -> fc2.
    return _mlp_head(feat, bits1, params["fc1_w"], params["fc1_b"],
                     bits2, params["fc2_w"], params["fc2_b"])


# ------------------------------------------------------------------- main ---

if __name__ == "__main__":
    root = jax.random.PRNGKey(0)
    k_x, k_param, k_drop = jax.random.split(root, 3)

    x = jax.random.normal(k_x, (2, 4, 16, 16), jnp.float32)   # NCHW, torch-style
    params = init_params(k_param)

    y = bayesian_wrapper_forward(params, x, k_drop)
    jax.block_until_ready(y)
    assert y.shape == (2, 2) and y.dtype == jnp.float32
    print("KERNEL_OK")
</pallas_src>

<mosaic_0001>
module attributes {stable_mosaic.version = 11 : i64} {
  func.func @_conv_block_kernel(%arg0: memref<2x16x16x4xf32, #tpu.memory_space<vmem>>, %arg1: memref<2x16x16x4xi32, #tpu.memory_space<vmem>>, %arg2: memref<9x4x8xbf16, #tpu.memory_space<vmem>>, %arg3: memref<1x8xf32, #tpu.memory_space<vmem>>, %arg4: memref<512x8xf32, #tpu.memory_space<vmem>>, %arg5: memref<2x18x18x4xf32, #tpu.memory_space<vmem>>) attributes {dimension_semantics = [], scalar_prefetch = 0 : i64, scratch_operands = 1 : i64, tpu.core_type = #tpu.core_type<tc>} {
    %c0 = arith.constant 0 : index
    %c0_0 = arith.constant 0 : index
    %c0_1 = arith.constant 0 : index
    %c0_2 = arith.constant 0 : index
    %0 = vector.load %arg1[%c0, %c0_0, %c0_1, %c0_2] : memref<2x16x16x4xi32, #tpu.memory_space<vmem>>, vector<2x16x16x4xi32>
    %c-858993460_i32 = arith.constant -858993460 : i32
    %1 = vector.broadcast %c-858993460_i32 : i32 to vector<2x16x16x4xi32>
    %2 = arith.cmpi ult, %0, %1 : vector<2x16x16x4xi32>
    %c0_3 = arith.constant 0 : index
    %c0_4 = arith.constant 0 : index
    %c0_5 = arith.constant 0 : index
    %c0_6 = arith.constant 0 : index
    %3 = vector.load %arg0[%c0_3, %c0_4, %c0_5, %c0_6] : memref<2x16x16x4xf32, #tpu.memory_space<vmem>>, vector<2x16x16x4xf32>
    %cst = arith.constant 1.250000e+00 : f32
    %4 = vector.broadcast %cst : f32 to vector<2x16x16x4xf32>
    %5 = arith.mulf %3, %4 : vector<2x16x16x4xf32>
    %cst_7 = arith.constant 0.000000e+00 : f32
    %6 = vector.broadcast %cst_7 : f32 to vector<2x16x16x4xf32>
    %7 = arith.select %2, %5, %6 : vector<2x16x16x4xi1>, vector<2x16x16x4xf32>
    %cst_8 = arith.constant 0.000000e+00 : f32
    %8 = vector.broadcast %cst_8 : f32 to vector<2x18x18x4xf32>
    %c0_9 = arith.constant 0 : index
    %c0_10 = arith.constant 0 : index
    %c0_11 = arith.constant 0 : index
    %c0_12 = arith.constant 0 : index
    %9 = vector.load %arg5[%c0_9, %c0_10, %c0_11, %c0_12] : memref<2x18x18x4xf32, #tpu.memory_space<vmem>>, vector<2x18x18x4xf32>
    tpu.vector_store %arg5[%c0_9, %c0_10, %c0_11, %c0_12], %8 {strides = array<i32>} : memref<2x18x18x4xf32, #tpu.memory_space<vmem>>, vector<2x18x18x4xf32>,
    %c0_13 = arith.constant 0 : index
    %c1 = arith.constant 1 : index
    %c1_14 = arith.constant 1 : index
    %c0_15 = arith.constant 0 : index
    %10 = vector.load %arg5[%c0_13, %c1, %c1_14, %c0_15] : memref<2x18x18x4xf32, #tpu.memory_space<vmem>>, vector<2x16x16x4xf32>
    tpu.vector_store %arg5[%c0_13, %c1, %c1_14, %c0_15], %7 {strides = array<i32>} : memref<2x18x18x4xf32, #tpu.memory_space<vmem>>, vector<2x16x16x4xf32>,
    %cst_16 = arith.constant 0.000000e+00 : f32
    %11 = vector.broadcast %cst_16 : f32 to vector<512x8xf32>
    %c0_17 = arith.constant 0 : index
    %c0_18 = arith.constant 0 : index
    %c0_19 = arith.constant 0 : index
    %c0_20 = arith.constant 0 : index
    %12 = vector.load %arg5[%c0_17, %c0_18, %c0_19, %c0_20] : memref<2x18x18x4xf32, #tpu.memory_space<vmem>>, vector<2x16x16x4xf32>
    %13 = vector.shape_cast %12 : vector<2x16x16x4xf32> to vector<512x4xf32>
    %14 = arith.truncf %13 : vector<512x4xf32> to vector<512x4xbf16>
    %c0_21 = arith.constant 0 : index
    %c0_22 = arith.constant 0 : index
    %c0_23 = arith.constant 0 : index
    %15 = vector.load %arg2[%c0_21, %c0_22, %c0_23] : memref<9x4x8xbf16, #tpu.memory_space<vmem>>, vector<1x4x8xbf16>
    %16 = vector.shape_cast %15 : vector<1x4x8xbf16> to vector<4x8xbf16>
    %cst_24 = arith.constant dense<0.000000e+00> : vector<512x8xf32>
    %17 = tpu.matmul %14, %16, %cst_24 {dimension_numbers = #tpu.dot_dimension_numbers<[1], [0], [0], [1], [0, 0, 1, 1], [], []>} : vector<512x4xbf16>, vector<4x8xbf16>, vector<512x8xf32> -> vector<512x8xf32>
    %18 = arith.addf %11, %17 : vector<512x8xf32>
    %c0_25 = arith.constant 0 : index
    %c0_26 = arith.constant 0 : index
    %c1_27 = arith.constant 1 : index
    %c0_28 = arith.constant 0 : index
    %19 = vector.load %arg5[%c0_25, %c0_26, %c1_27, %c0_28] : memref<2x18x18x4xf32, #tpu.memory_space<vmem>>, vector<2x16x16x4xf32>
    %20 = vector.shape_cast %19 : vector<2x16x16x4xf32> to vector<512x4xf32>
    %21 = arith.truncf %20 : vector<512x4xf32> to vector<512x4xbf16>
    %c1_29 = arith.constant 1 : index
    %c0_30 = arith.constant 0 : index
    %c0_31 = arith.constant 0 : index
    %22 = vector.load %arg2[%c1_29, %c0_30, %c0_31] : memref<9x4x8xbf16, #tpu.memory_space<vmem>>, vector<1x4x8xbf16>
    %23 = vector.shape_cast %22 : vector<1x4x8xbf16> to vector<4x8xbf16>
    %cst_32 = arith.constant dense<0.000000e+00> : vector<512x8xf32>
    %24 = tpu.matmul %21, %23, %cst_32 {dimension_numbers = #tpu.dot_dimension_numbers<[1], [0], [0], [1], [0, 0, 1, 1], [], []>} : vector<512x4xbf16>, vector<4x8xbf16>, vector<512x8xf32> -> vector<512x8xf32>
    %25 = arith.addf %18, %24 : vector<512x8xf32>
    %c0_33 = arith.constant 0 : index
    %c0_34 = arith.constant 0 : index
    %c2 = arith.constant 2 : index
    %c0_35 = arith.constant 0 : index
    %26 = vector.load %arg5[%c0_33, %c0_34, %c2, %c0_35] : memref<2x18x18x4xf32, #tpu.memory_space<vmem>>, vector<2x16x16x4xf32>
    %27 = vector.shape_cast %26 : vector<2x16x16x4xf32> to vector<512x4xf32>
    %28 = arith.truncf %27 : vector<512x4xf32> to vector<512x4xbf16>
    %c2_36 = arith.constant 2 : index
    %c0_37 = arith.constant 0 : index
    %c0_38 = arith.constant 0 : index
    %29 = vector.load %arg2[%c2_36, %c0_37, %c0_38] : memref<9x4x8xbf16, #tpu.memory_space<vmem>>, vector<1x4x8xbf16>
    %30 = vector.shape_cast %29 : vector<1x4x8xbf16> to vector<4x8xbf16>
    %cst_39 = arith.constant dense<0.000000e+00> : vector<512x8xf32>
    %31 = tpu.matmul %28, %30, %cst_39 {dimension_numbers = #tpu.dot_dimension_numbers<[1], [0], [0], [1], [0, 0, 1, 1], [], []>} : vector<512x4xbf16>, vector<4x8xbf16>, vector<512x8xf32> -> vector<512x8xf32>
    %32 = arith.addf %25, %31 : vector<512x8xf32>
    %c0_40 = arith.constant 0 : index
    %c1_41 = arith.constant 1 : index
    %c0_42 = arith.constant 0 : index
    %c0_43 = arith.constant 0 : index
    %33 = vector.load %arg5[%c0_40, %c1_41, %c0_42, %c0_43] : memref<2x18x18x4xf32, #tpu.memory_space<vmem>>, vector<2x16x16x4xf32>
    %34 = vector.shape_cast %33 : vector<2x16x16x4xf32> to vector<512x4xf32>
    %35 = arith.truncf %34 : vector<512x4xf32> to vector<512x4xbf16>
    %c3 = arith.constant 3 : index
    %c0_44 = arith.constant 0 : index
    %c0_45 = arith.constant 0 : index
    %36 = vector.load %arg2[%c3, %c0_44, %c0_45] : memref<9x4x8xbf16, #tpu.memory_space<vmem>>, vector<1x4x8xbf16>
    %37 = vector.shape_cast %36 : vector<1x4x8xbf16> to vector<4x8xbf16>
    %cst_46 = arith.constant dense<0.000000e+00> : vector<512x8xf32>
    %38 = tpu.matmul %35, %37, %cst_46 {dimension_numbers = #tpu.dot_dimension_numbers<[1], [0], [0], [1], [0, 0, 1, 1], [], []>} : vector<512x4xbf16>, vector<4x8xbf16>, vector<512x8xf32> -> vector<512x8xf32>
    %39 = arith.addf %32, %38 : vector<512x8xf32>
    %c0_47 = arith.constant 0 : index
    %c1_48 = arith.constant 1 : index
    %c1_49 = arith.constant 1 : index
    %c0_50 = arith.constant 0 : index
    %40 = vector.load %arg5[%c0_47, %c1_48, %c1_49, %c0_50] : memref<2x18x18x4xf32, #tpu.memory_space<vmem>>, vector<2x16x16x4xf32>
    %41 = vector.shape_cast %40 : vector<2x16x16x4xf32> to vector<512x4xf32>
    %42 = arith.truncf %41 : vector<512x4xf32> to vector<512x4xbf16>
    %c4 = arith.constant 4 : index
    %c0_51 = arith.constant 0 : index
    %c0_52 = arith.constant 0 : index
    %43 = vector.load %arg2[%c4, %c0_51, %c0_52] : memref<9x4x8xbf16, #tpu.memory_space<vmem>>, vector<1x4x8xbf16>
    %44 = vector.shape_cast %43 : vector<1x4x8xbf16> to vector<4x8xbf16>
    %cst_53 = arith.constant dense<0.000000e+00> : vector<512x8xf32>
    %45 = tpu.matmul %42, %44, %cst_53 {dimension_numbers = #tpu.dot_dimension_numbers<[1], [0], [0], [1], [0, 0, 1, 1], [], []>} : vector<512x4xbf16>, vector<4x8xbf16>, vector<512x8xf32> -> vector<512x8xf32>
    %46 = arith.addf %39, %45 : vector<512x8xf32>
    %c0_54 = arith.constant 0 : index
    %c1_55 = arith.constant 1 : index
    %c2_56 = arith.constant 2 : index
    %c0_57 = arith.constant 0 : index
    %47 = vector.load %arg5[%c0_54, %c1_55, %c2_56, %c0_57] : memref<2x18x18x4xf32, #tpu.memory_space<vmem>>, vector<2x16x16x4xf32>
    %48 = vector.shape_cast %47 : vector<2x16x16x4xf32> to vector<512x4xf32>
    %49 = arith.truncf %48 : vector<512x4xf32> to vector<512x4xbf16>
    %c5 = arith.constant 5 : index
    %c0_58 = arith.constant 0 : index
    %c0_59 = arith.constant 0 : index
    %50 = vector.load %arg2[%c5, %c0_58, %c0_59] : memref<9x4x8xbf16, #tpu.memory_space<vmem>>, vector<1x4x8xbf16>
    %51 = vector.shape_cast %50 : vector<1x4x8xbf16> to vector<4x8xbf16>
    %cst_60 = arith.constant dense<0.000000e+00> : vector<512x8xf32>
    %52 = tpu.matmul %49, %51, %cst_60 {dimension_numbers = #tpu.dot_dimension_numbers<[1], [0], [0], [1], [0, 0, 1, 1], [], []>} : vector<512x4xbf16>, vector<4x8xbf16>, vector<512x8xf32> -> vector<512x8xf32>
    %53 = arith.addf %46, %52 : vector<512x8xf32>
    %c0_61 = arith.constant 0 : index
    %c2_62 = arith.constant 2 : index
    %c0_63 = arith.constant 0 : index
    %c0_64 = arith.constant 0 : index
    %54 = vector.load %arg5[%c0_61, %c2_62, %c0_63, %c0_64] : memref<2x18x18x4xf32, #tpu.memory_space<vmem>>, vector<2x16x16x4xf32>
    %55 = vector.shape_cast %54 : vector<2x16x16x4xf32> to vector<512x4xf32>
    %56 = arith.truncf %55 : vector<512x4xf32> to vector<512x4xbf16>
    %c6 = arith.constant 6 : index
    %c0_65 = arith.constant 0 : index
    %c0_66 = arith.constant 0 : index
    %57 = vector.load %arg2[%c6, %c0_65, %c0_66] : memref<9x4x8xbf16, #tpu.memory_space<vmem>>, vector<1x4x8xbf16>
    %58 = vector.shape_cast %57 : vector<1x4x8xbf16> to vector<4x8xbf16>
    %cst_67 = arith.constant dense<0.000000e+00> : vector<512x8xf32>
    %59 = tpu.matmul %56, %58, %cst_67 {dimension_numbers = #tpu.dot_dimension_numbers<[1], [0], [0], [1], [0, 0, 1, 1], [], []>} : vector<512x4xbf16>, vector<4x8xbf16>, vector<512x8xf32> -> vector<512x8xf32>
    %60 = arith.addf %53, %59 : vector<512x8xf32>
    %c0_68 = arith.constant 0 : index
    %c2_69 = arith.constant 2 : index
    %c1_70 = arith.constant 1 : index
    %c0_71 = arith.constant 0 : index
    %61 = vector.load %arg5[%c0_68, %c2_69, %c1_70, %c0_71] : memref<2x18x18x4xf32, #tpu.memory_space<vmem>>, vector<2x16x16x4xf32>
    %62 = vector.shape_cast %61 : vector<2x16x16x4xf32> to vector<512x4xf32>
    %63 = arith.truncf %62 : vector<512x4xf32> to vector<512x4xbf16>
    %c7 = arith.constant 7 : index
    %c0_72 = arith.constant 0 : index
    %c0_73 = arith.constant 0 : index
    %64 = vector.load %arg2[%c7, %c0_72, %c0_73] : memref<9x4x8xbf16, #tpu.memory_space<vmem>>, vector<1x4x8xbf16>
    %65 = vector.shape_cast %64 : vector<1x4x8xbf16> to vector<4x8xbf16>
    %cst_74 = arith.constant dense<0.000000e+00> : vector<512x8xf32>
    %66 = tpu.matmul %63, %65, %cst_74 {dimension_numbers = #tpu.dot_dimension_numbers<[1], [0], [0], [1], [0, 0, 1, 1], [], []>} : vector<512x4xbf16>, vector<4x8xbf16>, vector<512x8xf32> -> vector<512x8xf32>
    %67 = arith.addf %60, %66 : vector<512x8xf32>
    %c0_75 = arith.constant 0 : index
    %c2_76 = arith.constant 2 : index
    %c2_77 = arith.constant 2 : index
    %c0_78 = arith.constant 0 : index
    %68 = vector.load %arg5[%c0_75, %c2_76, %c2_77, %c0_78] : memref<2x18x18x4xf32, #tpu.memory_space<vmem>>, vector<2x16x16x4xf32>
    %69 = vector.shape_cast %68 : vector<2x16x16x4xf32> to vector<512x4xf32>
    %70 = arith.truncf %69 : vector<512x4xf32> to vector<512x4xbf16>
    %c8 = arith.constant 8 : index
    %c0_79 = arith.constant 0 : index
    %c0_80 = arith.constant 0 : index
    %71 = vector.load %arg2[%c8, %c0_79, %c0_80] : memref<9x4x8xbf16, #tpu.memory_space<vmem>>, vector<1x4x8xbf16>
    %72 = vector.shape_cast %71 : vector<1x4x8xbf16> to vector<4x8xbf16>
    %cst_81 = arith.constant dense<0.000000e+00> : vector<512x8xf32>
    %73 = tpu.matmul %70, %72, %cst_81 {dimension_numbers = #tpu.dot_dimension_numbers<[1], [0], [0], [1], [0, 0, 1, 1], [], []>} : vector<512x4xbf16>, vector<4x8xbf16>, vector<512x8xf32> -> vector<512x8xf32>
    %74 = arith.addf %67, %73 : vector<512x8xf32>
    %c0_82 = arith.constant 0 : index
    %c0_83 = arith.constant 0 : index
    %75 = vector.load %arg3[%c0_82, %c0_83] : memref<1x8xf32, #tpu.memory_space<vmem>>, vector<1x8xf32>
    %76 = vector.broadcast %75 : vector<1x8xf32> to vector<512x8xf32>
    %77 = arith.addf %74, %76 : vector<512x8xf32>
    %cst_84 = arith.constant 0.000000e+00 : f32
    %78 = vector.broadcast %cst_84 : f32 to vector<512x8xf32>
    %79 = arith.maximumf %77, %78 : vector<512x8xf32>
    %c0_85 = arith.constant 0 : index
    %c0_86 = arith.constant 0 : index
    %80 = vector.load %arg4[%c0_85, %c0_86] : memref<512x8xf32, #tpu.memory_space<vmem>>, vector<512x8xf32>
    tpu.vector_store %arg4[%c0_85, %c0_86], %79 {strides = array<i32>} : memref<512x8xf32, #tpu.memory_space<vmem>>, vector<512x8xf32>,
    return
  }
}

module attributes {stable_mosaic.version = 11 : i64} {
  func.func @_mlp_head_kernel(%arg0: memref<2x2048xf32, #tpu.memory_space<vmem>>, %arg1: memref<2x2048xi32, #tpu.memory_space<vmem>>, %arg2: memref<2048x32xbf16, #tpu.memory_space<vmem>>, %arg3: memref<1x32xf32, #tpu.memory_space<vmem>>, %arg4: memref<2x32xi32, #tpu.memory_space<vmem>>, %arg5: memref<32x2xbf16, #tpu.memory_space<vmem>>, %arg6: memref<1x2xf32, #tpu.memory_space<vmem>>, %arg7: memref<2x2xf32, #tpu.memory_space<vmem>>) attributes {dimension_semantics = [], scalar_prefetch = 0 : i64, scratch_operands = 0 : i64, tpu.core_type = #tpu.core_type<tc>} {
    %c0 = arith.constant 0 : index
    %c0_0 = arith.constant 0 : index
    %0 = vector.load %arg1[%c0, %c0_0] : memref<2x2048xi32, #tpu.memory_space<vmem>>, vector<2x2048xi32>
    %c-858993460_i32 = arith.constant -858993460 : i32
    %1 = vector.broadcast %c-858993460_i32 : i32 to vector<2x2048xi32>
    %2 = arith.cmpi ult, %0, %1 : vector<2x2048xi32>
    %c0_1 = arith.constant 0 : index
    %c0_2 = arith.constant 0 : index
    %3 = vector.load %arg0[%c0_1, %c0_2] : memref<2x2048xf32, #tpu.memory_space<vmem>>, vector<2x2048xf32>
    %cst = arith.constant 1.250000e+00 : f32
    %4 = vector.broadcast %cst : f32 to vector<2x2048xf32>
    %5 = arith.mulf %3, %4 : vector<2x2048xf32>
    %cst_3 = arith.constant 0.000000e+00 : f32
    %6 = vector.broadcast %cst_3 : f32 to vector<2x2048xf32>
    %7 = arith.select %2, %5, %6 : vector<2x2048xi1>, vector<2x2048xf32>
    %8 = arith.truncf %7 : vector<2x2048xf32> to vector<2x2048xbf16>
    %c0_4 = arith.constant 0 : index
    %c0_5 = arith.constant 0 : index
    %9 = vector.load %arg2[%c0_4, %c0_5] : memref<2048x32xbf16, #tpu.memory_space<vmem>>, vector<2048x32xbf16>
    %cst_6 = arith.constant dense<0.000000e+00> : vector<2x32xf32>
    %10 = tpu.matmul %8, %9, %cst_6 {dimension_numbers = #tpu.dot_dimension_numbers<[1], [0], [0], [1], [0, 0, 1, 1], [], []>} : vector<2x2048xbf16>, vector<2048x32xbf16>, vector<2x32xf32> -> vector<2x32xf32>
    %c0_7 = arith.constant 0 : index
    %c0_8 = arith.constant 0 : index
    %11 = vector.load %arg3[%c0_7, %c0_8] : memref<1x32xf32, #tpu.memory_space<vmem>>, vector<1x32xf32>
    %12 = vector.broadcast %11 : vector<1x32xf32> to vector<2x32xf32>
    %13 = arith.addf %10, %12 : vector<2x32xf32>
    %cst_9 = arith.constant 0.000000e+00 : f32
    %14 = vector.broadcast %cst_9 : f32 to vector<2x32xf32>
    %15 = arith.maximumf %13, %14 : vector<2x32xf32>
    %c0_10 = arith.constant 0 : index
    %c0_11 = arith.constant 0 : index
    %16 = vector.load %arg4[%c0_10, %c0_11] : memref<2x32xi32, #tpu.memory_space<vmem>>, vector<2x32xi32>
    %c-858993460_i32_12 = arith.constant -858993460 : i32
    %17 = vector.broadcast %c-858993460_i32_12 : i32 to vector<2x32xi32>
    %18 = arith.cmpi ult, %16, %17 : vector<2x32xi32>
    %cst_13 = arith.constant 1.250000e+00 : f32
    %19 = vector.broadcast %cst_13 : f32 to vector<2x32xf32>
    %20 = arith.mulf %15, %19 : vector<2x32xf32>
    %cst_14 = arith.constant 0.000000e+00 : f32
    %21 = vector.broadcast %cst_14 : f32 to vector<2x32xf32>
    %22 = arith.select %18, %20, %21 : vector<2x32xi1>, vector<2x32xf32>
    %23 = arith.truncf %22 : vector<2x32xf32> to vector<2x32xbf16>
    %c0_15 = arith.constant 0 : index
    %c0_16 = arith.constant 0 : index
    %24 = vector.load %arg5[%c0_15, %c0_16] : memref<32x2xbf16, #tpu.memory_space<vmem>>, vector<32x2xbf16>
    %cst_17 = arith.constant dense<0.000000e+00> : vector<2x2xf32>
    %25 = tpu.matmul %23, %24, %cst_17 {dimension_numbers = #tpu.dot_dimension_numbers<[1], [0], [0], [1], [0, 0, 1, 1], [], []>} : vector<2x32xbf16>, vector<32x2xbf16>, vector<2x2xf32> -> vector<2x2xf32>
    %c0_18 = arith.constant 0 : index
    %c0_19 = arith.constant 0 : index
    %26 = vector.load %arg6[%c0_18, %c0_19] : memref<1x2xf32, #tpu.memory_space<vmem>>, vector<1x2xf32>
    %27 = vector.broadcast %26 : vector<1x2xf32> to vector<2x2xf32>
    %28 = arith.addf %25, %27 : vector<2x2xf32>
    %c0_20 = arith.constant 0 : index
    %c0_21 = arith.constant 0 : index
    %29 = vector.load %arg7[%c0_20, %c0_21] : memref<2x2xf32, #tpu.memory_space<vmem>>, vector<2x2xf32>
    tpu.vector_store %arg7[%c0_20, %c0_21], %28 {strides = array<i32>} : memref<2x2xf32, #tpu.memory_space<vmem>>, vector<2x2xf32>,
    return
  }
}

</mosaic_0001>

<bundles_post_ra>
// kernel: bayesian_wrapper_forward.5
= control target key start
LH: loop header
LB: loop body
LE: loop exit
PB: predicated region body
PF: predicated region fallthrough
CT: control target
= control target key end

     0   :  { %s2576_s0 = inlined_call_operand.vmem [shape: f32[2,2048], index: 0, kind: input, shape index: {}]   ;;  %s2577_s1 = inlined_call_operand.vmem [shape: u32[2,2048], index: 1, kind: input, shape index: {}]   ;;  %s2578_s2 = inlined_call_operand.vmem [shape: bf16[2048,32], index: 2, kind: input, shape index: {}]   ;;  %s2579_s3 = inlined_call_operand.vmem [shape: f32[1,32], index: 3, kind: input, shape index: {}]   ;;  %s2580_s4 = inlined_call_operand.vmem [shape: u32[2,32], index: 4, kind: input, shape index: {}]   ;;  %s2581_s5 = inlined_call_operand.vmem [shape: bf16[32,2], index: 5, kind: input, shape index: {}]   ;;  %s2582_s6 = inlined_call_operand.vmem [shape: f32[1,2], index: 6, kind: input, shape index: {}]   ;;  %s2583_s7 = inlined_call_operand.hbm [shape: f32[2,2], index: 7, kind: output, shape index: {}]  }
   0x1   :  { %v1945_v0 = vld [vmem:[%s2578_s2 + $0x38] sm:$0xff]  ;;  %v1944_v4 = vld [vmem:[%s2578_s2 + $0x30] sm:$0xff]  ;;  %v1943_v8 = vld [vmem:[%s2578_s2 + $0x28] sm:$0xff] }
   0x2   :  { %v1953_v1 = vld [vmem:[%s2578_s2 + $0x78] sm:$0xff]  ;;  %1141 = vmatpush.bf16.msra.mxu0 %v1945_v0  ;;  %v1952_v5 = vld [vmem:[%s2578_s2 + $0x70] sm:$0xff]  ;;  %v1951_v9 = vld [vmem:[%s2578_s2 + $0x68] sm:$0xff] }
   0x3   :  { %v1961_v2 = vld [vmem:[%s2578_s2 + $0xb8] sm:$0xff]  ;;  %1154 = vmatpush.bf16.msra.mxu1 %v1953_v1  ;;  %v1960_v6 = vld [vmem:[%s2578_s2 + $0xb0] sm:$0xff]  ;;  %v1959_v10 = vld [vmem:[%s2578_s2 + $0xa8] sm:$0xff] }
   0x4   :  { %v1969_v3 = vld [vmem:[%s2578_s2 + $0xf8] sm:$0xff]  ;;  %1167 = vmatpush.bf16.msra.mxu2 %v1961_v2  ;;  %v1968_v7 = vld [vmem:[%s2578_s2 + $0xf0] sm:$0xff]  ;;  %v1967_v11 = vld [vmem:[%s2578_s2 + $0xe8] sm:$0xff] }
   0x5   :  { %1180 = vmatpush.bf16.msra.mxu3 %v1969_v3  ;;  %v1942_v12 = vld [vmem:[%s2578_s2 + $0x20] sm:$0xff]  ;;  %v1941_v16 = vld [vmem:[%s2578_s2 + $0x18] sm:$0xff]  ;;  %v1940_v20 = vld [vmem:[%s2578_s2 + $0x10] sm:$0xff] }
   0x6   :  { %1142 = vmatpush.bf16.msra.mxu0 %v1944_v4  ;;  %v1950_v13 = vld [vmem:[%s2578_s2 + $0x60] sm:$0xff]  ;;  %v1949_v17 = vld [vmem:[%s2578_s2 + $0x58] sm:$0xff]  ;;  %v1948_v21 = vld [vmem:[%s2578_s2 + $0x50] sm:$0xff] }
   0x7   :  { %1155 = vmatpush.bf16.msra.mxu1 %v1952_v5  ;;  %v1958_v14 = vld [vmem:[%s2578_s2 + $0xa0] sm:$0xff]  ;;  %v1957_v18 = vld [vmem:[%s2578_s2 + $0x98] sm:$0xff]  ;;  %v1956_v25 = vld [vmem:[%s2578_s2 + $0x90] sm:$0xff] }
   0x8   :  { %1168 = vmatpush.bf16.msra.mxu2 %v1960_v6  ;;  %v1966_v15 = vld [vmem:[%s2578_s2 + $0xe0] sm:$0xff]  ;;  %v1965_v19 = vld [vmem:[%s2578_s2 + $0xd8] sm:$0xff]  ;;  %v1964_v26 = vld [vmem:[%s2578_s2 + $0xd0] sm:$0xff] }
   0x9   :  { %1181 = vmatpush.bf16.msra.mxu3 %v1968_v7  ;;  %v28_v22 = vld [vmem:[%s2577_s1] sm:$0xff] }
   0xa   :  { %1143 = vmatpush.bf16.msra.mxu0 %v1943_v8  ;;  %v1412_v23 = vxor.u32 2147483648, %v28_v22  ;;  %v44_v24 = vld [vmem:[%s2576_s0] sm:$0xff] }
   0xb   :  { %1156 = vmatpush.bf16.msra.mxu1 %v1951_v9  ;;  %v48_v27 = vmul.f32 1.25, %v44_v24 }
   0xc   :  { %1169 = vmatpush.bf16.msra.mxu2 %v1959_v10  ;;  %vm34_vm0 = vcmp.lt.s32.totalorder %v1412_v23, 1288490188 }
   0xd   :  { %1182 = vmatpush.bf16.msra.mxu3 %v1967_v11 }
   0xe   :  { %1144 = vmatpush.bf16.msra.mxu0 %v1942_v12 }
   0xf   :  { %1157 = vmatpush.bf16.msra.mxu1 %v1950_v13 }
  0x10   :  { %1170 = vmatpush.bf16.msra.mxu2 %v1958_v14 }
  0x11   :  { %1183 = vmatpush.bf16.msra.mxu3 %v1966_v15 }
  0x12   :  { %1145 = vmatpush.bf16.msra.mxu0 %v1941_v16 }
  0x13   :  { %1158 = vmatpush.bf16.msra.mxu1 %v1949_v17 }
  0x14   :  { %1171 = vmatpush.bf16.msra.mxu2 %v1957_v18 }
  0x15   :  { %1184 = vmatpush.bf16.msra.mxu3 %v1965_v19 }
  0x16   :  { %12 = vsyncpa [#allocation3], 0  ;;  %v52_v28 = vsel %vm34_vm0, %v48_v27, 0.0  ;;  %1146 = vmatpush.bf16.msra.mxu0 %v1940_v20  ;;  %v1939_v29 = vld [vmem:[%s2578_s2 + $0x8] sm:$0xff]  ;;  %v30_v34 = vld [vmem:[%s2577_s1 + $0x10] sm:$0xff]  ;;  %vm1377_vm5 = vcmask 261120  }
  0x17   :  { %1159 = vmatpush.bf16.msra.mxu1 %v1948_v21  ;;  %v1947_v30 = vld [vmem:[%s2578_s2 + $0x48] sm:$0xff]  ;;  %60 = vst [vmem:[#allocation1] ss:$4 sm:$0xff] %v52_v28  ;;  %v46_v35 = vld [vmem:[%s2576_s0 + $0x10] sm:$0xff]  ;;  %v1938_v37 = vld [vmem:[%s2578_s2] sm:$0xff]  ;;  %v1414_v39 = vxor.u32 2147483648, %v30_v34 }
  0x18   :  { %1172 = vmatpush.bf16.msra.mxu2 %v1956_v25  ;;  %v1955_v31 = vld [vmem:[%s2578_s2 + $0x88] sm:$0xff]  ;;  %v1946_v38 = vld [vmem:[%s2578_s2 + $0x40] sm:$0xff]  ;;  %v50_v40 = vmul.f32 1.25, %v46_v35  ;;  %v1977_v44 = vld [vmem:[%s2578_s2 + $0x138] sm:$0xff]  ;;  %s1403_s16 = sshll.u32 %s2583_s7, 4  ;;  %vm1394_vm6 = vcmask 9216   ;;  %s1404_s16 = int_to_ptr.hbm [resolvable:$true] %s1403_s16 }
  0x19   :  { %1185 = vmatpush.bf16.msra.mxu3 %v1964_v26  ;;  %v1963_v32 = vld [vmem:[%s2578_s2 + $0xc8] sm:$0xff]  ;;  %v1954_v42 = vld [vmem:[%s2578_s2 + $0x80] sm:$0xff]  ;;  %v1985_v47 = vld [vmem:[%s2578_s2 + $0x178] sm:$0xff]  ;;  %vm2268_vm2 = vcmp.lt.s32.totalorder %v1414_v39, 1288490188 }
  0x1a   :  { %v29_v33 = vld [vmem:[%s2577_s1 + $0x8] sm:$0xff]  ;;  %1147 = vmatpush.bf16.msra.mxu0 %v1939_v29  ;;  %v1962_v43 = vld [vmem:[%s2578_s2 + $0xc0] sm:$0xff]  ;;  %v1993_v48 = vld [vmem:[%s2578_s2 + $0x1b8] sm:$0xff]  ;;  %v54_v56 = vsel %vm2268_vm2, %v50_v40, 0.0 }
  0x1b   :  { %v1413_v36 = vxor.u32 2147483648, %v29_v33  ;;  %1160 = vmatpush.bf16.msra.mxu1 %v1947_v30  ;;  %v45_v41 = vld [vmem:[%s2576_s0 + $0x8] sm:$0xff]  ;;  %v2001_v49 = vld [vmem:[%s2578_s2 + $0x1f8] sm:$0xff]  ;;  %v1976_v60 = vld [vmem:[%s2578_s2 + $0x130] sm:$0xff] }
  0x1c   :  { %1173 = vmatpush.bf16.msra.mxu2 %v1955_v31  ;;  %v49_v46 = vmul.f32 1.25, %v45_v41  ;;  %v1984_v61 = vld [vmem:[%s2578_s2 + $0x170] sm:$0xff]  ;;  %v1975_v1 = vld [vmem:[%s2578_s2 + $0x128] sm:$0xff]  ;;  %v1974_v5 = vld [vmem:[%s2578_s2 + $0x120] sm:$0xff] }
  0x1d   :  { %1186 = vmatpush.bf16.msra.mxu3 %v1963_v32  ;;  %vm2255_vm1 = vcmp.lt.s32.totalorder %v1413_v36, 1288490188  ;;  %v1992_v63 = vld [vmem:[%s2578_s2 + $0x1b0] sm:$0xff]  ;;  %v1983_v2 = vld [vmem:[%s2578_s2 + $0x168] sm:$0xff]  ;;  %v31_v6 = vld [vmem:[%s2577_s1 + $0x18] sm:$0xff] }
  0x1e   :  { %v65_v51 = vld.sshfl [vmem:[#allocation1 + $0x10] sm:$0xff pattern:$0x73625140]  ;;  %v63_v52 = vld.sshfl [vmem:[#allocation1] sm:$0xff pattern:$0x73625140]  ;;  %1148 = vmatpush.bf16.msra.mxu0 %v1938_v37 }
  0x1f   :  { %1161 = vmatpush.bf16.msra.mxu1 %v1946_v38  ;;  %v99_v53 = vpack.c.bf16 %v65_v51, %v65_v51  ;;  %v97_v54 = vpack.c.bf16 %v63_v52, %v63_v52  ;;  %v66_v55 = vld.sshfl [vmem:[#allocation1 + $0x18] sm:$0xff pattern:$0x73625140]  ;;  %v53_v57 = vsel %vm2255_vm1, %v49_v46, 0.0  ;;  %v2000_v0 = vld [vmem:[%s2578_s2 + $0x1f0] sm:$0xff]  ;;  %v1991_v3 = vld [vmem:[%s2578_s2 + $0x1a8] sm:$0xff] }
  0x20   :  { %1174 = vmatpush.bf16.msra.mxu2 %v1954_v42  ;;  %v100_v58 = vpack.c.bf16 %v66_v55, %v66_v55  ;;  %v64_v59 = vld.sshfl [vmem:[#allocation1 + $0x8] sm:$0xff pattern:$0x73625140]  ;;  %62 = vst [vmem:[#allocation1 + $0x20] ss:$4 sm:$0xff] %v53_v57  ;;  %v47_v7 = vld [vmem:[%s2576_s0 + $0x18] sm:$0xff] }
  0x21   :  { %1187 = vmatpush.bf16.msra.mxu3 %v1962_v43  ;;  %71 = vst [vmem:[#allocation1] ss:$4 sm:$0xff] %v54_v56  ;;  %v98_v62 = vpack.c.bf16 %v64_v59, %v64_v59  ;;  %1149 = vmatmul.bf16.vlgmr.msra.gmra.mxu0 %v97_v54  ;;  %v1999_v4 = vld [vmem:[%s2578_s2 + $0x1e8] sm:$0xff]  ;;  %v1982_v8 = vld [vmem:[%s2578_s2 + $0x160] sm:$0xff]  ;;  %v1415_v11 = vxor.u32 2147483648, %v31_v6  ;;  %v51_v12 = vmul.f32 1.25, %v47_v7 }
  0x22   :  { %1193 = vmatpush.bf16.msrb.mxu0 %v1977_v44  ;;  %v1990_v9 = vld [vmem:[%s2578_s2 + $0x1a0] sm:$0xff]  ;;  %v1973_v18 = vld [vmem:[%s2578_s2 + $0x118] sm:$0xff]  ;;  %v1972_v22 = vld [vmem:[%s2578_s2 + $0x110] sm:$0xff] }
  0x23   :  { %1206 = vmatpush.bf16.msrb.mxu1 %v1985_v47  ;;  %1175 = vmatmul.bf16.vlgmr.msra.gmra.mxu2 %v99_v53  ;;  %v1998_v10 = vld [vmem:[%s2578_s2 + $0x1e0] sm:$0xff]  ;;  %vm43_vm3 = vcmp.lt.s32.totalorder %v1415_v11, 1288490188  ;;  %v1981_v19 = vld [vmem:[%s2578_s2 + $0x158] sm:$0xff]  ;;  %v1980_v23 = vld [vmem:[%s2578_s2 + $0x150] sm:$0xff] }
  0x24   :  { %1219 = vmatpush.bf16.msrb.mxu2 %v1993_v48  ;;  %1188 = vmatmul.bf16.vlgmr.msra.gmra.mxu3 %v100_v58  ;;  %v55_v16 = vsel %vm43_vm3, %v51_v12, 0.0  ;;  %v1989_v20 = vld [vmem:[%s2578_s2 + $0x198] sm:$0xff]  ;;  %v1988_v24 = vld [vmem:[%s2578_s2 + $0x190] sm:$0xff]  ;;  %v1971_v26 = vld [vmem:[%s2578_s2 + $0x108] sm:$0xff] }
  0x25   :  { %1232 = vmatpush.bf16.msrb.mxu3 %v2001_v49  ;;  %1162 = vmatmul.bf16.vlgmr.msra.gmra.mxu1 %v98_v62  ;;  %v1997_v21 = vld [vmem:[%s2578_s2 + $0x1d8] sm:$0xff]  ;;  %v1996_v25 = vld [vmem:[%s2578_s2 + $0x1d0] sm:$0xff]  ;;  %v1979_v27 = vld [vmem:[%s2578_s2 + $0x148] sm:$0xff] }
  0x26   :  { %1194 = vmatpush.bf16.msrb.mxu0 %v1976_v60  ;;  %v1987_v28 = vld [vmem:[%s2578_s2 + $0x188] sm:$0xff]  ;;  %v1970_v30 = vld [vmem:[%s2578_s2 + $0x100] sm:$0xff]  ;;  %v2009_v34 = vld [vmem:[%s2578_s2 + $0x238] sm:$0xff] }
  0x27   :  { %1207 = vmatpush.bf16.msrb.mxu1 %v1984_v61  ;;  %v69_v13 = vld.sshfl [vmem:[#allocation1 + $0x30] sm:$0xff pattern:$0x73625140]  ;;  %v67_v14 = vld.sshfl [vmem:[#allocation1 + $0x20] sm:$0xff pattern:$0x73625140] }
  0x28   :  { %1220 = vmatpush.bf16.msrb.mxu2 %v1992_v63  ;;  %v70_v15 = vld.sshfl [vmem:[#allocation1 + $0x38] sm:$0xff pattern:$0x73625140]  ;;  %v68_v17 = vld.sshfl [vmem:[#allocation1 + $0x28] sm:$0xff pattern:$0x73625140]  ;;  %v103_v38 = vpack.c.bf16 %v69_v13, %v69_v13  ;;  %v101_v39 = vpack.c.bf16 %v67_v14, %v67_v14 }
  0x29   :  { %1233 = vmatpush.bf16.msrb.mxu3 %v2000_v0  ;;  %72 = vst [vmem:[#allocation1 + $0x20] ss:$4 sm:$0xff] %v55_v16  ;;  %v1995_v29 = vld [vmem:[%s2578_s2 + $0x1c8] sm:$0xff]  ;;  %v1978_v31 = vld [vmem:[%s2578_s2 + $0x140] sm:$0xff]  ;;  %v2017_v35 = vld [vmem:[%s2578_s2 + $0x278] sm:$0xff]  ;;  %v104_v40 = vpack.c.bf16 %v70_v15, %v70_v15  ;;  %v102_v41 = vpack.c.bf16 %v68_v17, %v68_v17 }
  0x2a   :  { %1195 = vmatpush.bf16.msrb.mxu0 %v1975_v1  ;;  %v1986_v32 = vld [vmem:[%s2578_s2 + $0x180] sm:$0xff]  ;;  %v2025_v36 = vld [vmem:[%s2578_s2 + $0x2b8] sm:$0xff]  ;;  %v2008_v42 = vld [vmem:[%s2578_s2 + $0x230] sm:$0xff] }
  0x2b   :  { %1208 = vmatpush.bf16.msrb.mxu1 %v1983_v2  ;;  %v1994_v33 = vld [vmem:[%s2578_s2 + $0x1c0] sm:$0xff]  ;;  %v2033_v37 = vld [vmem:[%s2578_s2 + $0x2f8] sm:$0xff]  ;;  %v2016_v43 = vld [vmem:[%s2578_s2 + $0x270] sm:$0xff] }
  0x2c   :  { %1221 = vmatpush.bf16.msrb.mxu2 %v1991_v3  ;;  %v2024_v44 = vld [vmem:[%s2578_s2 + $0x2b0] sm:$0xff]  ;;  %v2007_v46 = vld [vmem:[%s2578_s2 + $0x228] sm:$0xff]  ;;  %v2006_v50 = vld [vmem:[%s2578_s2 + $0x220] sm:$0xff] }
  0x2d   :  { %1234 = vmatpush.bf16.msrb.mxu3 %v1999_v4  ;;  %v2032_v45 = vld [vmem:[%s2578_s2 + $0x2f0] sm:$0xff]  ;;  %v2015_v47 = vld [vmem:[%s2578_s2 + $0x268] sm:$0xff]  ;;  %v2014_v51 = vld [vmem:[%s2578_s2 + $0x260] sm:$0xff] }
  0x2e   :  { %1196 = vmatpush.bf16.msrb.mxu0 %v1974_v5  ;;  %v2023_v48 = vld [vmem:[%s2578_s2 + $0x2a8] sm:$0xff]  ;;  %v2022_v52 = vld [vmem:[%s2578_s2 + $0x2a0] sm:$0xff]  ;;  %v2005_v54 = vld [vmem:[%s2578_s2 + $0x218] sm:$0xff] }
  0x2f   :  { %1209 = vmatpush.bf16.msrb.mxu1 %v1982_v8  ;;  %v2031_v49 = vld [vmem:[%s2578_s2 + $0x2e8] sm:$0xff]  ;;  %v2030_v53 = vld [vmem:[%s2578_s2 + $0x2e0] sm:$0xff]  ;;  %v2013_v55 = vld [vmem:[%s2578_s2 + $0x258] sm:$0xff] }
  0x30   :  { %1222 = vmatpush.bf16.msrb.mxu2 %v1990_v9  ;;  %v2021_v56 = vld [vmem:[%s2578_s2 + $0x298] sm:$0xff]  ;;  %v2004_v58 = vld [vmem:[%s2578_s2 + $0x210] sm:$0xff]  ;;  %v2003_v62 = vld [vmem:[%s2578_s2 + $0x208] sm:$0xff] }
  0x31   :  { %1235 = vmatpush.bf16.msrb.mxu3 %v1998_v10  ;;  %v2029_v57 = vld [vmem:[%s2578_s2 + $0x2d8] sm:$0xff]  ;;  %v2012_v59 = vld [vmem:[%s2578_s2 + $0x250] sm:$0xff]  ;;  %v2011_v63 = vld [vmem:[%s2578_s2 + $0x248] sm:$0xff] }
  0x32   :  { %1197 = vmatpush.bf16.msrb.mxu0 %v1973_v18  ;;  %v2020_v60 = vld [vmem:[%s2578_s2 + $0x290] sm:$0xff]  ;;  %v2019_v0 = vld [vmem:[%s2578_s2 + $0x288] sm:$0xff]  ;;  %v2002_v2 = vld [vmem:[%s2578_s2 + $0x200] sm:$0xff] }
  0x33   :  { %1210 = vmatpush.bf16.msrb.mxu1 %v1981_v19  ;;  %v2028_v61 = vld [vmem:[%s2578_s2 + $0x2d0] sm:$0xff]  ;;  %v2027_v1 = vld [vmem:[%s2578_s2 + $0x2c8] sm:$0xff]  ;;  %v2010_v3 = vld [vmem:[%s2578_s2 + $0x240] sm:$0xff] }
  0x34   :  { %1223 = vmatpush.bf16.msrb.mxu2 %v1989_v20  ;;  %v2018_v4 = vld [vmem:[%s2578_s2 + $0x280] sm:$0xff]  ;;  %v2041_v6 = vld [vmem:[%s2578_s2 + $0x338] sm:$0xff]  ;;  %v75_v9 = vld.sshfl [vmem:[#allocation1 + $0x10] sm:$0xff pattern:$0x73625140] }
  0x35   :  { %1236 = vmatpush.bf16.msrb.mxu3 %v1997_v21  ;;  %v2026_v5 = vld [vmem:[%s2578_s2 + $0x2c0] sm:$0xff]  ;;  %v2049_v7 = vld [vmem:[%s2578_s2 + $0x378] sm:$0xff]  ;;  %v74_v10 = vld.sshfl [vmem:[#allocation1 + $0x8] sm:$0xff pattern:$0x73625140]  ;;  %v107_v15 = vpack.c.bf16 %v75_v9, %v75_v9 }
  0x36   :  { %1198 = vmatpush.bf16.msrb.mxu0 %v1972_v22  ;;  %v73_v8 = vld.sshfl [vmem:[#allocation1] sm:$0xff pattern:$0x73625140]  ;;  %v76_v11 = vld.sshfl [vmem:[#allocation1 + $0x18] sm:$0xff pattern:$0x73625140]  ;;  %v106_v16 = vpack.c.bf16 %v74_v10, %v74_v10 }
  0x37   :  { %1211 = vmatpush.bf16.msrb.mxu1 %v1980_v23  ;;  %v2057_v12 = vld [vmem:[%s2578_s2 + $0x3b8] sm:$0xff]  ;;  %v105_v14 = vpack.c.bf16 %v73_v8, %v73_v8  ;;  %v108_v17 = vpack.c.bf16 %v76_v11, %v76_v11  ;;  %v2040_v18 = vld [vmem:[%s2578_s2 + $0x330] sm:$0xff]  ;;  %v2039_v22 = vld [vmem:[%s2578_s2 + $0x328] sm:$0xff] }
  0x38   :  { %1224 = vmatpush.bf16.msrb.mxu2 %v1988_v24  ;;  %v2065_v13 = vld [vmem:[%s2578_s2 + $0x3f8] sm:$0xff]  ;;  %v2048_v19 = vld [vmem:[%s2578_s2 + $0x370] sm:$0xff]  ;;  %v2047_v23 = vld [vmem:[%s2578_s2 + $0x368] sm:$0xff] }
  0x39   :  { %1237 = vmatpush.bf16.msrb.mxu3 %v1996_v25  ;;  %v2056_v20 = vld [vmem:[%s2578_s2 + $0x3b0] sm:$0xff]  ;;  %v2055_v24 = vld [vmem:[%s2578_s2 + $0x3a8] sm:$0xff] }
  0x3a   :  { %1199 = vmatpush.bf16.msrb.mxu0 %v1971_v26  ;;  %v2064_v21 = vld [vmem:[%s2578_s2 + $0x3f0] sm:$0xff]  ;;  %v2063_v25 = vld [vmem:[%s2578_s2 + $0x3e8] sm:$0xff]  ;;  %v2038_v26 = vld [vmem:[%s2578_s2 + $0x320] sm:$0xff] }
  0x3b   :  { %1212 = vmatpush.bf16.msrb.mxu1 %v1979_v27  ;;  %v2046_v27 = vld [vmem:[%s2578_s2 + $0x360] sm:$0xff] }
  0x3c   :  { %1225 = vmatpush.bf16.msrb.mxu2 %v1987_v28  ;;  %v2054_v28 = vld [vmem:[%s2578_s2 + $0x3a0] sm:$0xff] }
  0x3d   :  { %1238 = vmatpush.bf16.msrb.mxu3 %v1995_v29  ;;  %v2062_v29 = vld [vmem:[%s2578_s2 + $0x3e0] sm:$0xff] }
  0x3e   :  { %1200 = vmatpush.bf16.msrb.mxu0 %v1970_v30  ;;  %v2037_v30 = vld [vmem:[%s2578_s2 + $0x318] sm:$0xff] }
  0x3f   :  { %1213 = vmatpush.bf16.msrb.mxu1 %v1978_v31  ;;  %v2045_v31 = vld [vmem:[%s2578_s2 + $0x358] sm:$0xff] }
  0x40   :  { %1226 = vmatpush.bf16.msrb.mxu2 %v1986_v32  ;;  %v2053_v32 = vld [vmem:[%s2578_s2 + $0x398] sm:$0xff] }
  0x41   :  { %1239 = vmatpush.bf16.msrb.mxu3 %v1994_v33  ;;  %1201 = vmatmul.bf16.vlgmr.msrb.gmra.mxu0 %v101_v39  ;;  %v2061_v33 = vld [vmem:[%s2578_s2 + $0x3d8] sm:$0xff]  ;;  %v2043_v39 = vld [vmem:[%s2578_s2 + $0x348] sm:$0xff] }
  0x42   :  { %1245 = vmatpush.bf16.msra.mxu0 %v2009_v34  ;;  %1214 = vmatmul.bf16.vlgmr.msrb.gmra.mxu1 %v102_v41  ;;  %v2036_v34 = vld [vmem:[%s2578_s2 + $0x310] sm:$0xff]  ;;  %v2059_v41 = vld [vmem:[%s2578_s2 + $0x3c8] sm:$0xff] }
  0x43   :  { %1258 = vmatpush.bf16.msra.mxu1 %v2017_v35  ;;  %1227 = vmatmul.bf16.vlgmr.msrb.gmra.mxu2 %v103_v38  ;;  %v2044_v35 = vld [vmem:[%s2578_s2 + $0x350] sm:$0xff]  ;;  %v2035_v38 = vld [vmem:[%s2578_s2 + $0x308] sm:$0xff] }
  0x44   :  { %1271 = vmatpush.bf16.msra.mxu2 %v2025_v36  ;;  %1240 = vmatmul.bf16.vlgmr.msrb.gmra.mxu3 %v104_v40  ;;  %v2052_v36 = vld [vmem:[%s2578_s2 + $0x390] sm:$0xff]  ;;  %v2051_v40 = vld [vmem:[%s2578_s2 + $0x388] sm:$0xff] }
  0x45   :  { %1284 = vmatpush.bf16.msra.mxu3 %v2033_v37  ;;  %v2060_v37 = vld [vmem:[%s2578_s2 + $0x3d0] sm:$0xff] }
  0x46   :  { %1246 = vmatpush.bf16.msra.mxu0 %v2008_v42  ;;  %v2034_v42 = vld [vmem:[%s2578_s2 + $0x300] sm:$0xff] }
  0x47   :  { %1259 = vmatpush.bf16.msra.mxu1 %v2016_v43  ;;  %v2042_v43 = vld [vmem:[%s2578_s2 + $0x340] sm:$0xff] }
  0x48   :  { %1272 = vmatpush.bf16.msra.mxu2 %v2024_v44  ;;  %v2050_v44 = vld [vmem:[%s2578_s2 + $0x380] sm:$0xff] }
  0x49   :  { %1285 = vmatpush.bf16.msra.mxu3 %v2032_v45  ;;  %v2058_v45 = vld [vmem:[%s2578_s2 + $0x3c0] sm:$0xff] }
  0x4a   :  { %1247 = vmatpush.bf16.msra.mxu0 %v2007_v46  ;;  %v77_v46 = vld.sshfl [vmem:[#allocation1 + $0x20] sm:$0xff pattern:$0x73625140] }
  0x4b   :  { %1260 = vmatpush.bf16.msra.mxu1 %v2015_v47  ;;  %v78_v47 = vld.sshfl [vmem:[#allocation1 + $0x28] sm:$0xff pattern:$0x73625140] }
  0x4c   :  { %1273 = vmatpush.bf16.msra.mxu2 %v2023_v48  ;;  %v79_v48 = vld.sshfl [vmem:[#allocation1 + $0x30] sm:$0xff pattern:$0x73625140] }
  0x4d   :  { %1286 = vmatpush.bf16.msra.mxu3 %v2031_v49  ;;  %v80_v49 = vld.sshfl [vmem:[#allocation1 + $0x38] sm:$0xff pattern:$0x73625140] }
  0x4e   :  { %1248 = vmatpush.bf16.msra.mxu0 %v2006_v50  ;;  %v109_v50 = vpack.c.bf16 %v77_v46, %v77_v46 }
  0x4f   :  { %1261 = vmatpush.bf16.msra.mxu1 %v2014_v51  ;;  %v110_v51 = vpack.c.bf16 %v78_v47, %v78_v47  ;;  %v2070_v47 = vld [vmem:[%s2582_s6] ss:$0 sm:$0xff] }
  0x50   :  { %1274 = vmatpush.bf16.msra.mxu2 %v2022_v52  ;;  %v111_v52 = vpack.c.bf16 %v79_v48, %v79_v48 }
  0x51   :  { %1287 = vmatpush.bf16.msra.mxu3 %v2030_v53  ;;  %v112_v53 = vpack.c.bf16 %v80_v49, %v80_v49 }
  0x52   :  { %1249 = vmatpush.bf16.msra.mxu0 %v2005_v54  ;;  %v2069_v54 = vld [vmem:[%s2579_s3] ss:$0 sm:$0xff] }
  0x53   :  { %1262 = vmatpush.bf16.msra.mxu1 %v2013_v55 }
  0x54   :  { %1275 = vmatpush.bf16.msra.mxu2 %v2021_v56 }
  0x55   :  { %1288 = vmatpush.bf16.msra.mxu3 %v2029_v57 }
  0x56   :  { %1250 = vmatpush.bf16.msra.mxu0 %v2004_v58 }
  0x57   :  { %1263 = vmatpush.bf16.msra.mxu1 %v2012_v59 }
  0x58   :  { %1276 = vmatpush.bf16.msra.mxu2 %v2020_v60 }
  0x59   :  { %1289 = vmatpush.bf16.msra.mxu3 %v2028_v61 }
  0x5a   :  { %1251 = vmatpush.bf16.msra.mxu0 %v2003_v62 }
  0x5b   :  { %1264 = vmatpush.bf16.msra.mxu1 %v2011_v63 }
  0x5c   :  { %1277 = vmatpush.bf16.msra.mxu2 %v2019_v0 }
  0x5d   :  { %1290 = vmatpush.bf16.msra.mxu3 %v2027_v1 }
  0x5e   :  { %1252 = vmatpush.bf16.msra.mxu0 %v2002_v2 }
  0x5f   :  { %1265 = vmatpush.bf16.msra.mxu1 %v2010_v3 }
  0x60   :  { %1278 = vmatpush.bf16.msra.mxu2 %v2018_v4 }
  0x61   :  { %1291 = vmatpush.bf16.msra.mxu3 %v2026_v5  ;;  %1253 = vmatmul.bf16.vlgmr.msra.gmra.mxu0 %v105_v14 }
  0x62   :  { %1297 = vmatpush.bf16.msrb.mxu0 %v2041_v6  ;;  %1266 = vmatmul.bf16.vlgmr.msra.gmra.mxu1 %v106_v16 }
  0x63   :  { %1310 = vmatpush.bf16.msrb.mxu1 %v2049_v7  ;;  %1279 = vmatmul.bf16.vlgmr.msra.gmra.mxu2 %v107_v15 }
  0x64   :  { %1323 = vmatpush.bf16.msrb.mxu2 %v2057_v12  ;;  %1292 = vmatmul.bf16.vlgmr.msra.gmra.mxu3 %v108_v17  ;;  %v2067_v12 = vld [vmem:[%s2581_s5 + $0x8] sm:$0xff] }
  0x65   :  { %1336 = vmatpush.bf16.msrb.mxu3 %v2065_v13 }
  0x66   :  { %1298 = vmatpush.bf16.msrb.mxu0 %v2040_v18 }
  0x67   :  { %1311 = vmatpush.bf16.msrb.mxu1 %v2048_v19 }
  0x68   :  { %1324 = vmatpush.bf16.msrb.mxu2 %v2056_v20  ;;  %v2066_v20 = vld [vmem:[%s2581_s5] sm:$0xff] }
  0x69   :  { %1337 = vmatpush.bf16.msrb.mxu3 %v2064_v21 }
  0x6a   :  { %1299 = vmatpush.bf16.msrb.mxu0 %v2039_v22 }
  0x6b   :  { %1312 = vmatpush.bf16.msrb.mxu1 %v2047_v23 }
  0x6c   :  { %1325 = vmatpush.bf16.msrb.mxu2 %v2055_v24 }
  0x6d   :  { %1338 = vmatpush.bf16.msrb.mxu3 %v2063_v25 }
  0x6e   :  { %1300 = vmatpush.bf16.msrb.mxu0 %v2038_v26 }
  0x6f   :  { %1313 = vmatpush.bf16.msrb.mxu1 %v2046_v27 }
  0x70   :  { %1326 = vmatpush.bf16.msrb.mxu2 %v2054_v28 }
  0x71   :  { %1339 = vmatpush.bf16.msrb.mxu3 %v2062_v29 }
  0x72   :  { %1301 = vmatpush.bf16.msrb.mxu0 %v2037_v30 }
  0x73   :  { %1314 = vmatpush.bf16.msrb.mxu1 %v2045_v31 }
  0x74   :  { %1327 = vmatpush.bf16.msrb.mxu2 %v2053_v32 }
  0x75   :  { %1340 = vmatpush.bf16.msrb.mxu3 %v2061_v33  ;;  %v1350_v33 = vld [vmem:[%s2580_s4] sm:$0x3]  ;;  %s2097_s4 = smov [#allocation2]  }
  0x76   :  { %1302 = vmatpush.bf16.msrb.mxu0 %v2036_v34  ;;  %s1401_s13 = sshll.u32 %s2097_s4, 4  ;;  %s1402_s13 = int_to_ptr.vmem [resolvable:$true] %s1401_s13 }
  0x77   :  { %1315 = vmatpush.bf16.msrb.mxu1 %v2044_v35 }
  0x78   :  { %1328 = vmatpush.bf16.msrb.mxu2 %v2052_v36 }
  0x79   :  { %1341 = vmatpush.bf16.msrb.mxu3 %v2060_v37 }
  0x7a   :  { %1303 = vmatpush.bf16.msrb.mxu0 %v2035_v38 }
  0x7b   :  { %1316 = vmatpush.bf16.msrb.mxu1 %v2043_v39  ;;  %v1928_v39 = vxor.u32 2147483648, %v1350_v33 }
  0x7c   :  { %1329 = vmatpush.bf16.msrb.mxu2 %v2051_v40 }
  0x7d   :  { %1342 = vmatpush.bf16.msrb.mxu3 %v2059_v41  ;;  %vm1353_vm4 = vcmp.lt.s32.totalorder %v1928_v39, 1288490188 }
  0x7e   :  { %1304 = vmatpush.bf16.msrb.mxu0 %v2034_v42 }
  0x7f   :  { %1317 = vmatpush.bf16.msrb.mxu1 %v2042_v43 }
  0x80   :  { %1330 = vmatpush.bf16.msrb.mxu2 %v2050_v44 }
  0x81   :  { %1343 = vmatpush.bf16.msrb.mxu3 %v2058_v45  ;;  %1305 = vmatmul.bf16.vlgmr.msrb.gmra.mxu0 %v109_v50 }
  0x82   :  { %1318 = vmatmul.bf16.vlgmr.msrb.gmra.mxu1 %v110_v51  ;;  %1387 = vmatpush.bf16.msra.mxu0 %v2067_v12 }
  0x83   :  { %1331 = vmatmul.bf16.vlgmr.msrb.gmra.mxu2 %v111_v52 }
  0x84   :  { %1344 = vmatmul.bf16.vlgmr.msrb.gmra.mxu3 %v112_v53 }
  0x86   :  { %1388 = vmatpush.bf16.msra.mxu0 %v2066_v20 }
  0x9e   :  { %v1150_v55 = vpop.f32.mrf.mxu0 }
  0x9f   :  { %v1151_v56 = vadd.f32 %v2069_v54, %v1150_v55 }
  0xa2   :  { %v1163_v57 = vpop.f32.mrf.mxu1 }
  0xa3   :  { %v1164_v58 = vadd.f32 %v1163_v57, %v1151_v56 }
  0xa6   :  { %v1176_v59 = vpop.f32.mrf.mxu2  ;;  %v1152_v62 = vpop.f32.mrf.mxu0 }
  0xa7   :  { %v1177_v60 = vadd.f32 %v1176_v59, %v1164_v58  ;;  %v1189_v61 = vpop.f32.mrf.mxu3 }
  0xa9   :  { %v1190_v63 = vadd.f32 %v1189_v61, %v1177_v60 }
  0xaa   :  { %v1165_v0 = vpop.f32.mrf.mxu1 }
  0xae   :  { %v1178_v1 = vpop.f32.mrf.mxu2 }
  0xaf   :  { %v1191_v2 = vpop.f32.mrf.mxu3 }
  0xbe   :  { %v1202_v3 = vpop.f32.mrf.mxu0 }
  0xbf   :  { %v1215_v4 = vpop.f32.mrf.mxu1  ;;  %v1203_v14 = vadd.f32 %v1202_v3, %v1190_v63 }
  0xc1   :  { %v1216_v18 = vadd.f32 %v1215_v4, %v1203_v14 }
  0xc6   :  { %v1228_v5 = vpop.f32.mrf.mxu2  ;;  %v1204_v7 = vpop.f32.mrf.mxu0 }
  0xc7   :  { %v1241_v6 = vpop.f32.mrf.mxu3  ;;  %v1217_v8 = vpop.f32.mrf.mxu1  ;;  %v1229_v21 = vadd.f32 %v1228_v5, %v1216_v18 }
  0xc9   :  { %v1242_v24 = vadd.f32 %v1241_v6, %v1229_v21 }
  0xce   :  { %v1230_v9 = vpop.f32.mrf.mxu2 }
  0xcf   :  { %v1243_v10 = vpop.f32.mrf.mxu3 }
  0xde   :  { %v1254_v11 = vpop.f32.mrf.mxu0 }
  0xdf   :  { %v1267_v13 = vpop.f32.mrf.mxu1  ;;  %v1255_v25 = vadd.f32 %v1254_v11, %v1242_v24 }
  0xe1   :  { %v1268_v26 = vadd.f32 %v1267_v13, %v1255_v25 }
  0xe6   :  { %v1280_v15 = vpop.f32.mrf.mxu2  ;;  %v1256_v17 = vpop.f32.mrf.mxu0 }
  0xe7   :  { %v1293_v16 = vpop.f32.mrf.mxu3  ;;  %v1269_v19 = vpop.f32.mrf.mxu1  ;;  %v1281_v27 = vadd.f32 %v1280_v15, %v1268_v26 }
  0xe9   :  { %v1294_v28 = vadd.f32 %v1293_v16, %v1281_v27 }
  0xee   :  { %v1282_v22 = vpop.f32.mrf.mxu2 }
  0xef   :  { %v1295_v23 = vpop.f32.mrf.mxu3 }
  0xfe   :  { %v1306_v29 = vpop.f32.mrf.mxu0 }
  0xff   :  { %v1319_v30 = vpop.f32.mrf.mxu1  ;;  %v1307_v31 = vadd.f32 %v1306_v29, %v1294_v28 }
 0x101   :  { %v1320_v32 = vadd.f32 %v1319_v30, %v1307_v31 }
 0x106   :  { %v1332_v34 = vpop.f32.mrf.mxu2  ;;  %v1308_v37 = vpop.f32.mrf.mxu0 }
 0x107   :  { %v1345_v35 = vpop.f32.mrf.mxu3  ;;  %v1333_v36 = vadd.f32 %v1332_v34, %v1320_v32  ;;  %v1321_v38 = vpop.f32.mrf.mxu1 }
 0x109   :  { %v1346_v40 = vadd.f32 %v1345_v35, %v1333_v36 }
 0x10b   :  { %v1349_v41 = vmax.f32 %v1346_v40, 0.0 }
 0x10d   :  { %v1354_v42 = vmul.f32 1.25, %v1349_v41 }
 0x10e   :  { %v1334_v43 = vpop.f32.mrf.mxu2 }
 0x10f   :  { %v1347_v44 = vpop.f32.mrf.mxu3  ;;  %v1355_v45 = vsel %vm1353_vm4, %v1354_v42, 0.0 }
 0x110   :  { %v1356_v46 = vpack.c.bf16 %v1355_v45, %v1355_v45 }
 0x112   :  { %1937 = vmatmul.msk.bf16.vlgmr.msra.gmra.mxu0 %vm1377_vm5, %v1356_v46 }
 0x18f   :  { %v1390_v48 = vpop.f32.mrf.mxu0 }
 0x190   :  { %v1391_v49 = vadd.f32 %v2070_v47, %v1390_v48 }
 0x192   :  { %1395 = vst.msk [vmem:[#allocation2] sm:$0x3] %vm1394_vm6, %v1391_v49 }
 0x193   :  { %1406 = dma.vmem_to_hbm [thread:$0]  %s1402_s13, 32, %s1404_s16, [#allocation3]  }
 0x197   :  { %v1392_v50 = vpop.f32.mrf.mxu0 }
 0x198   :  { %2095 = dma.done.wait [#allocation3], 32  }
 0x199   :  { %2096 = vsyncadd [#allocation3], 4294967264 }
 0x19a   :  { %1411 = vsyncpa [#allocation3], 1 }

// kernel: bayesian_wrapper_forward.4
= control target key start
LH: loop header
LB: loop body
LE: loop exit
PB: predicated region body
PF: predicated region fallthrough
CT: control target
= control target key end

     0   :  { %vm932_vm0 = vcmask 1041408   ;;  %vm466_vm1 = vcmask 31744   ;;  %vm469_vm2 = vcmask 25600   ;;  %v4951_v1 = vmov 0.0   ;;  %s7030_s2 = inlined_call_operand.vmem [shape: bf16[9,4,8], index: 2, kind: input, shape index: {}]   ;;  %s7031_s1 = inlined_call_operand.vmem [shape: u32[2,16,16,4], index: 1, kind: input, shape index: {}]   ;;  %s7032_s0 = inlined_call_operand.vmem [shape: f32[2,16,16,4], index: 0, kind: input, shape index: {}]   ;;  %s7033_s3 = inlined_call_operand.vmem [shape: f32[1,8], index: 3, kind: input, shape index: {}]   ;;  %s7034_s4 = inlined_call_operand.vmem [shape: f32[512,8], index: 4, kind: output, shape index: {}]  }
   0x1   :  { %v4649_v0 = vld [vmem:[%s7030_s2 + $0x2] sm:$0x3]  ;;  %522 = vst.msk [vmem:[#allocation2 + $0x1b0] sm:$0xff] %vm466_vm1, %v4951_v1  ;;  %v4714_v9 = vld [vmem:[%s7030_s2 + $0x4] sm:$0x3]  ;;  %v32_v11 = vld [vmem:[%s7031_s1 + $0x70] sm:$0xff] }
   0x2   :  { %v934_v2 = vsel %vm932_vm0, %v4649_v0, 0  ;;  %523 = vst.msk [vmem:[#allocation2 + $0x1b8] sm:$0xff] %vm466_vm1, %v4951_v1  ;;  %v1568_v10 = vsel %vm932_vm0, %v4714_v9, 0  ;;  %v33_v12 = vld [vmem:[%s7031_s1 + $0x78] sm:$0xff]  ;;  %v4599_v13 = vxor.u32 2147483648, %v32_v11  ;;  %v288_v15 = vld [vmem:[%s7032_s0 + $0x70] sm:$0xff] }
   0x3   :  { %4946 = vmatpush.bf16.msra.mxu2 %v934_v2  ;;  %524 = vst.msk [vmem:[#allocation2 + $0x1c0] sm:$0x3] %vm469_vm2, %v4951_v1  ;;  %943 = vmatpush.bf16.msra.mxu0 %v934_v2  ;;  %v4600_v14 = vxor.u32 2147483648, %v33_v12  ;;  %v64_v16 = vld [vmem:[%s7031_s1 + $0x170] sm:$0xff]  ;;  %v65_v17 = vld [vmem:[%s7031_s1 + $0x178] sm:$0xff]  ;;  %v50_v23 = vld [vmem:[%s7031_s1 + $0x100] sm:$0xff] }
   0x4   :  { %467 = vst.msk [vmem:[#allocation2] sm:$0xff] %vm466_vm1, %v4951_v1  ;;  %4945 = vmatpush.bf16.msra.mxu1 %v934_v2  ;;  %4947 = vmatpush.bf16.msra.mxu3 %v934_v2  ;;  %v4747_v18 = vld [vmem:[%s7030_s2 + $0x6] sm:$0x3]  ;;  %v737_v19 = vld [vmem:[%s7030_s2] sm:$0x3]  ;;  %v289_v24 = vld [vmem:[%s7032_s0 + $0x78] sm:$0xff] }
   0x5   :  { %468 = vst.msk [vmem:[#allocation2 + $0x8] sm:$0xff] %vm466_vm1, %v4951_v1  ;;  %v1998_v20 = vsel %vm932_vm0, %v4747_v18, 0  ;;  %v1202_v21 = vsel %vm932_vm0, %v737_v19, 0  ;;  %v4780_v22 = vld [vmem:[%s7030_s2 + $0x8] sm:$0x3]  ;;  %v4631_v25 = vxor.u32 2147483648, %v64_v16 }
   0x6   :  { %470 = vst.msk [vmem:[#allocation2 + $0x10] sm:$0x3] %vm469_vm2, %v4951_v1  ;;  %v320_v26 = vld [vmem:[%s7032_s0 + $0x170] sm:$0xff]  ;;  %v2428_v27 = vsel %vm932_vm0, %v4780_v22, 0  ;;  %v51_v28 = vld [vmem:[%s7031_s1 + $0x108] sm:$0xff]  ;;  %v4632_v30 = vxor.u32 2147483648, %v65_v17 }
   0x7   :  { %471 = vst.msk [vmem:[#allocation2 + $0x18] sm:$0xff] %vm466_vm1, %v4951_v1  ;;  %1577 = vmatpush.bf16.msrb.mxu2 %v1568_v10  ;;  %vm5212_vm3 = vcmp.lt.s32.totalorder %v4599_v13, 1288490188  ;;  %v321_v31 = vld [vmem:[%s7032_s0 + $0x178] sm:$0xff]  ;;  %2437 = vmatpush.bf16.msrb.mxu0 %v2428_v27  ;;  %vm5221_vm4 = vcmp.lt.s32.totalorder %v4600_v14, 1288490188 }
   0x8   :  { %472 = vst.msk [vmem:[#allocation2 + $0x20] sm:$0xff] %vm466_vm1, %v4951_v1  ;;  %2007 = vmatpush.bf16.msrb.mxu3 %v1998_v20  ;;  %1211 = vmatpush.bf16.msrb.mxu1 %v1202_v21  ;;  %v5225_v33 = vmul.f32 1.25, %v288_v15  ;;  %v4617_v34 = vxor.u32 2147483648, %v50_v23  ;;  %v18_v35 = vld [vmem:[%s7031_s1] sm:$0xff]  ;;  %v5232_v36 = vmul.f32 1.25, %v289_v24  ;;  %v5234_v37 = vmul.f32 1.25, %v320_v26 }
   0x9   :  { %v770_v3 = vld [vmem:[#allocation2 + $0x1b1] sm:$0xff]  ;;  %473 = vst.msk [vmem:[#allocation2 + $0x28] sm:$0x3] %vm469_vm2, %v4951_v1  ;;  %v4618_v38 = vxor.u32 2147483648, %v51_v28  ;;  %v306_v39 = vld [vmem:[%s7032_s0 + $0x100] sm:$0xff]  ;;  %v307_v40 = vld [vmem:[%s7032_s0 + $0x108] sm:$0xff] }
   0xa   :  { %v771_v4 = vld [vmem:[#allocation2 + $0x1b9] sm:$0xff]  ;;  %474 = vst.msk [vmem:[#allocation2 + $0x30] sm:$0xff] %vm466_vm1, %v4951_v1  ;;  %vm5244_vm5 = vcmp.lt.s32.totalorder %v4631_v25, 1288490188  ;;  %v5248_v42 = vmul.f32 1.25, %v321_v31  ;;  %v19_v43 = vld [vmem:[%s7031_s1 + $0x8] sm:$0xff] }
   0xb   :  { %v818_v5 = vpack.c.bf16 %v771_v4, %v770_v3  ;;  %475 = vst.msk [vmem:[#allocation2 + $0x38] sm:$0xff] %vm466_vm1, %v4951_v1  ;;  %vm5255_vm6 = vcmp.lt.s32.totalorder %v4632_v30, 1288490188  ;;  %v4585_v45 = vxor.u32 2147483648, %v18_v35  ;;  %v274_v46 = vld [vmem:[%s7032_s0] sm:$0xff]  ;;  %v5271_v49 = vmul.f32 1.25, %v306_v39 }
   0xc   :  { %476 = vst.msk [vmem:[#allocation2 + $0x40] sm:$0x3] %vm469_vm2, %v4951_v1  ;;  %v738_v6 = vld [vmem:[#allocation2 + $0x1] sm:$0xff]  ;;  %vm5267_vm7 = vcmp.lt.s32.totalorder %v4617_v34, 1288490188  ;;  %v5273_v50 = vmul.f32 1.25, %v307_v40 }
   0xd   :  { %4666 = vmatmul.msk.bf16.vlgmr.msra.gmra.mxu2 %vm466_vm1, %v818_v5  ;;  %477 = vst.msk [vmem:[#allocation2 + $0x48] sm:$0xff] %vm466_vm1, %v4951_v1  ;;  %v739_v7 = vld [vmem:[#allocation2 + $0x9] sm:$0xff]  ;;  %v34_v47 = vld [vmem:[%s7031_s1 + $0x80] sm:$0xff]  ;;  %vm5280_vm8 = vcmp.lt.s32.totalorder %v4618_v38, 1288490188  ;;  %v4586_v53 = vxor.u32 2147483648, %v19_v43 }
   0xe   :  { %478 = vst.msk [vmem:[#allocation2 + $0x50] sm:$0xff] %vm466_vm1, %v4951_v1  ;;  %v802_v8 = vpack.c.bf16 %v739_v7, %v738_v6  ;;  %v35_v51 = vld [vmem:[%s7031_s1 + $0x88] sm:$0xff]  ;;  %v66_v54 = vld [vmem:[%s7031_s1 + $0x180] sm:$0xff]  ;;  %v416_v55 = vsel %vm5212_vm3, %v5225_v33, 0.0  ;;  %v417_v56 = vsel %vm5221_vm4, %v5232_v36, 0.0  ;;  %v5298_v58 = vmul.f32 1.25, %v274_v46 }
   0xf   :  { %479 = vst.msk [vmem:[#allocation2 + $0x58] sm:$0x3] %vm469_vm2, %v4951_v1  ;;  %v275_v57 = vld [vmem:[%s7032_s0 + $0x8] sm:$0xff]  ;;  %v4601_v59 = vxor.u32 2147483648, %v34_v47  ;;  %v448_v60 = vsel %vm5244_vm5, %v5234_v37, 0.0  ;;  %v449_v61 = vsel %vm5255_vm6, %v5248_v42, 0.0 }
  0x10   :  { %480 = vst.msk [vmem:[#allocation2 + $0x60] sm:$0xff] %vm466_vm1, %v4951_v1  ;;  %4650 = vmatmul.msk.bf16.vlgmr.msra.gmra.mxu0 %vm466_vm1, %v802_v8  ;;  %vm5308_vm9 = vcmp.lt.s32.totalorder %v4585_v45, 1288490188  ;;  %v4602_v63 = vxor.u32 2147483648, %v35_v51  ;;  %v434_v0 = vsel %vm5267_vm7, %v5271_v49, 0.0  ;;  %v435_v2 = vsel %vm5280_vm8, %v5273_v50, 0.0 }
  0x11   :  { %481 = vst.msk [vmem:[#allocation2 + $0x68] sm:$0xff] %vm466_vm1, %v4951_v1  ;;  %v67_v3 = vld [vmem:[%s7031_s1 + $0x188] sm:$0xff]  ;;  %v4633_v4 = vxor.u32 2147483648, %v66_v54  ;;  %vm5325_vm10 = vcmp.lt.s32.totalorder %v4586_v53, 1288490188  ;;  %v5329_v6 = vmul.f32 1.25, %v275_v57 }
  0x12   :  { %482 = vst.msk [vmem:[#allocation2 + $0x70] sm:$0x3] %vm469_vm2, %v4951_v1  ;;  %v290_v7 = vld [vmem:[%s7032_s0 + $0x80] sm:$0xff]  ;;  %v52_v8 = vld [vmem:[%s7031_s1 + $0x110] sm:$0xff]  ;;  %v402_v9 = vsel %vm5308_vm9, %v5298_v58, 0.0  ;;  %v291_v11 = vld [vmem:[%s7032_s0 + $0x88] sm:$0xff] }
  0x13   :  { %483 = vst.msk [vmem:[#allocation2 + $0x78] sm:$0xff] %vm466_vm1, %v4951_v1  ;;  %vm5342_vm11 = vcmp.lt.s32.totalorder %v4601_v59, 1288490188  ;;  %v53_v12 = vld [vmem:[%s7031_s1 + $0x118] sm:$0xff]  ;;  %vm5354_vm12 = vcmp.lt.s32.totalorder %v4602_v63, 1288490188 }
  0x14   :  { %484 = vst.msk [vmem:[#allocation2 + $0x80] sm:$0xff] %vm466_vm1, %v4951_v1  ;;  %v4634_v14 = vxor.u32 2147483648, %v67_v3  ;;  %v322_v15 = vld [vmem:[%s7032_s0 + $0x180] sm:$0xff]  ;;  %vm5363_vm13 = vcmp.lt.s32.totalorder %v4633_v4, 1288490188  ;;  %v323_v17 = vld [vmem:[%s7032_s0 + $0x188] sm:$0xff] }
  0x15   :  { %485 = vst.msk [vmem:[#allocation2 + $0x88] sm:$0x3] %vm469_vm2, %v4951_v1  ;;  %v4619_v18 = vxor.u32 2147483648, %v52_v8  ;;  %v308_v19 = vld [vmem:[%s7032_s0 + $0x110] sm:$0xff]  ;;  %v354_v20 = vmul.f32 1.25, %v290_v7  ;;  %v4620_v21 = vxor.u32 2147483648, %v53_v12 }
  0x16   :  { %486 = vst.msk [vmem:[#allocation2 + $0x90] sm:$0xff] %vm466_vm1, %v4951_v1  ;;  %v309_v22 = vld [vmem:[%s7032_s0 + $0x118] sm:$0xff]  ;;  %v20_v23 = vld [vmem:[%s7031_s1 + $0x10] sm:$0xff]  ;;  %v355_v29 = vmul.f32 1.25, %v291_v11  ;;  %vm5393_vm14 = vcmp.lt.s32.totalorder %v4634_v14, 1288490188 }
  0x17   :  { %487 = vst.msk [vmem:[#allocation2 + $0x98] sm:$0xff] %vm466_vm1, %v4951_v1  ;;  %v21_v24 = vld [vmem:[%s7031_s1 + $0x18] sm:$0xff]  ;;  %v4587_v25 = vxor.u32 2147483648, %v20_v23  ;;  %v276_v27 = vld [vmem:[%s7032_s0 + $0x10] sm:$0xff]  ;;  %v386_v31 = vmul.f32 1.25, %v322_v15  ;;  %v387_v32 = vmul.f32 1.25, %v323_v17 }
  0x18   :  { %488 = vst.msk [vmem:[#allocation2 + $0xa0] sm:$0x3] %vm469_vm2, %v4951_v1  ;;  %v4588_v26 = vxor.u32 2147483648, %v21_v24  ;;  %v277_v28 = vld [vmem:[%s7032_s0 + $0x18] sm:$0xff]  ;;  %vm5401_vm15 = vcmp.lt.s32.totalorder %v4619_v18, 1288490188 }
  0x19   :  { %489 = vst.msk [vmem:[#allocation2 + $0xa8] sm:$0xff] %vm466_vm1, %v4951_v1  ;;  %v372_v34 = vmul.f32 1.25, %v308_v19  ;;  %v5405_v35 = vmul.f32 1.25, %v309_v22  ;;  %v5412_v37 = vmul.f32 1.25, %v276_v27  ;;  %v5414_v38 = vmul.f32 1.25, %v277_v28  ;;  %v37_v39 = vld [vmem:[%s7031_s1 + $0x98] sm:$0xff] }
  0x1a   :  { %490 = vst.msk [vmem:[#allocation2 + $0xb0] sm:$0xff] %vm466_vm1, %v4951_v1  ;;  %vm5420_vm3 = vcmp.lt.s32.totalorder %v4587_v25, 1288490188  ;;  %vm5424_vm4 = vcmp.lt.s32.totalorder %v4588_v26, 1288490188  ;;  %v403_v43 = vsel %vm5325_vm10, %v5329_v6, 0.0 }
  0x1b   :  { %491 = vst.msk [vmem:[#allocation2 + $0xb8] sm:$0x3] %vm469_vm2, %v4951_v1  ;;  %v418_v44 = vsel %vm5342_vm11, %v354_v20, 0.0  ;;  %v419_v45 = vsel %vm5354_vm12, %v355_v29, 0.0  ;;  %v292_v46 = vld [vmem:[%s7032_s0 + $0x90] sm:$0xff]  ;;  %v450_v48 = vsel %vm5363_vm13, %v386_v31, 0.0 }
  0x1c   :  { %492 = vst.msk [vmem:[#allocation2 + $0xc0] sm:$0xff] %vm466_vm1, %v4951_v1  ;;  %v68_v47 = vld [vmem:[%s7031_s1 + $0x190] sm:$0xff]  ;;  %v451_v49 = vsel %vm5393_vm14, %v387_v32, 0.0  ;;  %v4604_v50 = vxor.u32 2147483648, %v37_v39  ;;  %v293_v51 = vld [vmem:[%s7032_s0 + $0x98] sm:$0xff]  ;;  %v436_v53 = vsel %vm5401_vm15, %v372_v34, 0.0 }
  0x1d   :  { %493 = vst.msk [vmem:[#allocation2 + $0xc8] sm:$0xff] %vm466_vm1, %v4951_v1  ;;  %v69_v52 = vld [vmem:[%s7031_s1 + $0x198] sm:$0xff]  ;;  %v356_v59 = vmul.f32 1.25, %v292_v46  ;;  %v357_v62 = vmul.f32 1.25, %v293_v51  ;;  %v54_v6 = vld [vmem:[%s7031_s1 + $0x120] sm:$0xff]  ;;  %v55_v7 = vld [vmem:[%s7031_s1 + $0x128] sm:$0xff] }
  0x1e   :  { %494 = vst.msk [vmem:[#allocation2 + $0xd0] sm:$0x3] %vm469_vm2, %v4951_v1  ;;  %v4636_v63 = vxor.u32 2147483648, %v69_v52  ;;  %vm5478_vm6 = vcmp.lt.s32.totalorder %v4604_v50, 1288490188  ;;  %v4622_v10 = vxor.u32 2147483648, %v55_v7 }
  0x1f   :  { %495 = vst.msk [vmem:[#allocation2 + $0xd8] sm:$0xff] %vm466_vm1, %v4951_v1  ;;  %v310_v11 = vld [vmem:[%s7032_s0 + $0x120] sm:$0xff]  ;;  %v311_v12 = vld [vmem:[%s7032_s0 + $0x128] sm:$0xff]  ;;  %v421_v19 = vsel %vm5478_vm6, %v357_v62, 0.0  ;;  %v25_v28 = vld [vmem:[%s7031_s1 + $0x38] sm:$0xff] }
  0x20   :  { %496 = vst.msk [vmem:[#allocation2 + $0xe0] sm:$0xff] %vm466_vm1, %v4951_v1  ;;  %vm5506_vm8 = vcmp.lt.s32.totalorder %v4636_v63, 1288490188  ;;  %v374_v25 = vmul.f32 1.25, %v310_v11  ;;  %v375_v26 = vmul.f32 1.25, %v311_v12  ;;  %v22_v29 = vld [vmem:[%s7031_s1 + $0x20] sm:$0xff] }
  0x21   :  { %497 = vst.msk [vmem:[#allocation2 + $0xe8] sm:$0x3] %vm469_vm2, %v4951_v1  ;;  %vm5517_vm10 = vcmp.lt.s32.totalorder %v4622_v10, 1288490188  ;;  %v23_v30 = vld [vmem:[%s7031_s1 + $0x28] sm:$0xff]  ;;  %v4589_v32 = vxor.u32 2147483648, %v22_v29 }
  0x22   :  { %498 = vst.msk [vmem:[#allocation2 + $0xf0] sm:$0xff] %vm466_vm1, %v4951_v1  ;;  %v4590_v33 = vxor.u32 2147483648, %v23_v30  ;;  %v278_v34 = vld [vmem:[%s7032_s0 + $0x20] sm:$0xff]  ;;  %v39_v40 = vld [vmem:[%s7031_s1 + $0xa8] sm:$0xff]  ;;  %v4592_v30 = vxor.u32 2147483648, %v25_v28 }
  0x23   :  { %499 = vst.msk [vmem:[#allocation2 + $0xf8] sm:$0xff] %vm466_vm1, %v4951_v1  ;;  %v38_v39 = vld [vmem:[%s7031_s1 + $0xa0] sm:$0xff]  ;;  %vm5553_vm11 = vcmp.lt.s32.totalorder %v4589_v32, 1288490188  ;;  %v295_v51 = vld [vmem:[%s7032_s0 + $0xa8] sm:$0xff]  ;;  %v281_v32 = vld [vmem:[%s7032_s0 + $0x38] sm:$0xff] }
  0x24   :  { %500 = vst.msk [vmem:[#allocation2 + $0x100] sm:$0x3] %vm469_vm2, %v4951_v1  ;;  %vm5557_vm12 = vcmp.lt.s32.totalorder %v4590_v33, 1288490188  ;;  %v4605_v46 = vxor.u32 2147483648, %v38_v39  ;;  %v294_v50 = vld [vmem:[%s7032_s0 + $0xa0] sm:$0xff] }
  0x25   :  { %501 = vst.msk [vmem:[#allocation2 + $0x108] sm:$0xff] %vm466_vm1, %v4951_v1  ;;  %v70_v58 = vld [vmem:[%s7031_s1 + $0x1a0] sm:$0xff]  ;;  %vm105_vm6 = vcmp.lt.s32.totalorder %v4592_v30, 1288490188  ;;  %v43_v28 = vld [vmem:[%s7031_s1 + $0xc8] sm:$0xff] }
  0x26   :  { %502 = vst.msk [vmem:[#allocation2 + $0x110] sm:$0xff] %vm466_vm1, %v4951_v1  ;;  %vm5576_vm13 = vcmp.lt.s32.totalorder %v4605_v46, 1288490188  ;;  %v326_v63 = vld [vmem:[%s7032_s0 + $0x1a0] sm:$0xff] }
  0x27   :  { %503 = vst.msk [vmem:[#allocation2 + $0x118] sm:$0x3] %vm469_vm2, %v4951_v1 }
  0x28   :  { %504 = vst.msk [vmem:[#allocation2 + $0x120] sm:$0xff] %vm466_vm1, %v4951_v1 }
  0x29   :  { %505 = vst.msk [vmem:[#allocation2 + $0x128] sm:$0xff] %vm466_vm1, %v4951_v1 }
  0x2a   :  { %506 = vst.msk [vmem:[#allocation2 + $0x130] sm:$0x3] %vm469_vm2, %v4951_v1 }
  0x2b   :  { %507 = vst.msk [vmem:[#allocation2 + $0x138] sm:$0xff] %vm466_vm1, %v4951_v1 }
  0x2c   :  { %508 = vst.msk [vmem:[#allocation2 + $0x140] sm:$0xff] %vm466_vm1, %v4951_v1 }
  0x2d   :  { %509 = vst.msk [vmem:[#allocation2 + $0x148] sm:$0x3] %vm469_vm2, %v4951_v1 }
  0x2e   :  { %510 = vst.msk [vmem:[#allocation2 + $0x150] sm:$0xff] %vm466_vm1, %v4951_v1 }
  0x2f   :  { %511 = vst.msk [vmem:[#allocation2 + $0x158] sm:$0xff] %vm466_vm1, %v4951_v1 }
  0x30   :  { %512 = vst.msk [vmem:[#allocation2 + $0x160] sm:$0x3] %vm469_vm2, %v4951_v1 }
  0x31   :  { %513 = vst.msk [vmem:[#allocation2 + $0x168] sm:$0xff] %vm466_vm1, %v4951_v1 }
  0x32   :  { %514 = vst.msk [vmem:[#allocation2 + $0x170] sm:$0xff] %vm466_vm1, %v4951_v1 }
  0x33   :  { %515 = vst.msk [vmem:[#allocation2 + $0x178] sm:$0x3] %vm469_vm2, %v4951_v1 }
  0x34   :  { %516 = vst.msk [vmem:[#allocation2 + $0x180] sm:$0xff] %vm466_vm1, %v4951_v1 }
  0x35   :  { %517 = vst.msk [vmem:[#allocation2 + $0x188] sm:$0xff] %vm466_vm1, %v4951_v1 }
  0x36   :  { %518 = vst.msk [vmem:[#allocation2 + $0x190] sm:$0x3] %vm469_vm2, %v4951_v1 }
  0x37   :  { %519 = vst.msk [vmem:[#allocation2 + $0x198] sm:$0xff] %vm466_vm1, %v4951_v1 }
  0x38   :  { %520 = vst.msk [vmem:[#allocation2 + $0x1a0] sm:$0xff] %vm466_vm1, %v4951_v1 }
  0x39   :  { %521 = vst.msk [vmem:[#allocation2 + $0x1a8] sm:$0x3] %vm469_vm2, %v4951_v1 }
  0x3a   :  { %525 = vst.msk [vmem:[#allocation2 + $0x1c8] sm:$0xff] %vm466_vm1, %v4951_v1 }
  0x3b   :  { %526 = vst.msk [vmem:[#allocation2 + $0x1d0] sm:$0xff] %vm466_vm1, %v4951_v1 }
  0x3c   :  { %527 = vst.msk [vmem:[#allocation2 + $0x1d8] sm:$0x3] %vm469_vm2, %v4951_v1 }
  0x3d   :  { %528 = vst.msk [vmem:[#allocation2 + $0x1e0] sm:$0xff] %vm466_vm1, %v4951_v1 }
  0x3e   :  { %529 = vst.msk [vmem:[#allocation2 + $0x1e8] sm:$0xff] %vm466_vm1, %v4951_v1 }
  0x3f   :  { %530 = vst.msk [vmem:[#allocation2 + $0x1f0] sm:$0x3] %vm469_vm2, %v4951_v1 }
  0x40   :  { %531 = vst.msk [vmem:[#allocation2 + $0x1f8] sm:$0xff] %vm466_vm1, %v4951_v1 }
  0x41   :  { %532 = vst.msk [vmem:[#allocation2 + $0x200] sm:$0xff] %vm466_vm1, %v4951_v1 }
  0x42   :  { %533 = vst.msk [vmem:[#allocation2 + $0x208] sm:$0x3] %vm469_vm2, %v4951_v1 }
  0x43   :  { %534 = vst.msk [vmem:[#allocation2 + $0x210] sm:$0xff] %vm466_vm1, %v4951_v1 }
  0x44   :  { %535 = vst.msk [vmem:[#allocation2 + $0x218] sm:$0xff] %vm466_vm1, %v4951_v1 }
  0x45   :  { %536 = vst.msk [vmem:[#allocation2 + $0x220] sm:$0x3] %vm469_vm2, %v4951_v1 }
  0x46   :  { %537 = vst.msk [vmem:[#allocation2 + $0x228] sm:$0xff] %vm466_vm1, %v4951_v1 }
  0x47   :  { %538 = vst.msk [vmem:[#allocation2 + $0x230] sm:$0xff] %vm466_vm1, %v4951_v1 }
  0x48   :  { %539 = vst.msk [vmem:[#allocation2 + $0x238] sm:$0x3] %vm469_vm2, %v4951_v1 }
  0x49   :  { %540 = vst.msk [vmem:[#allocation2 + $0x240] sm:$0xff] %vm466_vm1, %v4951_v1 }
  0x4a   :  { %541 = vst.msk [vmem:[#allocation2 + $0x248] sm:$0xff] %vm466_vm1, %v4951_v1 }
  0x4b   :  { %542 = vst.msk [vmem:[#allocation2 + $0x250] sm:$0x3] %vm469_vm2, %v4951_v1 }
  0x4c   :  { %543 = vst.msk [vmem:[#allocation2 + $0x258] sm:$0xff] %vm466_vm1, %v4951_v1 }
  0x4d   :  { %544 = vst.msk [vmem:[#allocation2 + $0x260] sm:$0xff] %vm466_vm1, %v4951_v1 }
  0x4e   :  { %545 = vst.msk [vmem:[#allocation2 + $0x268] sm:$0x3] %vm469_vm2, %v4951_v1 }
  0x4f   :  { %546 = vst.msk [vmem:[#allocation2 + $0x270] sm:$0xff] %vm466_vm1, %v4951_v1 }
  0x50   :  { %547 = vst.msk [vmem:[#allocation2 + $0x278] sm:$0xff] %vm466_vm1, %v4951_v1 }
  0x51   :  { %548 = vst.msk [vmem:[#allocation2 + $0x280] sm:$0x3] %vm469_vm2, %v4951_v1 }
  0x52   :  { %549 = vst.msk [vmem:[#allocation2 + $0x288] sm:$0xff] %vm466_vm1, %v4951_v1 }
  0x53   :  { %550 = vst.msk [vmem:[#allocation2 + $0x290] sm:$0xff] %vm466_vm1, %v4951_v1 }
  0x54   :  { %551 = vst.msk [vmem:[#allocation2 + $0x298] sm:$0x3] %vm469_vm2, %v4951_v1 }
  0x55   :  { %552 = vst.msk [vmem:[#allocation2 + $0x2a0] sm:$0xff] %vm466_vm1, %v4951_v1 }
  0x56   :  { %553 = vst.msk [vmem:[#allocation2 + $0x2a8] sm:$0xff] %vm466_vm1, %v4951_v1 }
  0x57   :  { %554 = vst.msk [vmem:[#allocation2 + $0x2b0] sm:$0x3] %vm469_vm2, %v4951_v1 }
  0x58   :  { %555 = vst.msk [vmem:[#allocation2 + $0x2b8] sm:$0xff] %vm466_vm1, %v4951_v1 }
  0x59   :  { %556 = vst.msk [vmem:[#allocation2 + $0x2c0] sm:$0xff] %vm466_vm1, %v4951_v1 }
  0x5a   :  { %557 = vst.msk [vmem:[#allocation2 + $0x2c8] sm:$0x3] %vm469_vm2, %v4951_v1 }
  0x5b   :  { %558 = vst.msk [vmem:[#allocation2 + $0x2d0] sm:$0xff] %vm466_vm1, %v4951_v1 }
  0x5c   :  { %559 = vst.msk [vmem:[#allocation2 + $0x2d8] sm:$0xff] %vm466_vm1, %v4951_v1 }
  0x5d   :  { %560 = vst.msk [vmem:[#allocation2 + $0x2e0] sm:$0x3] %vm469_vm2, %v4951_v1 }
  0x5e   :  { %561 = vst.msk [vmem:[#allocation2 + $0x2e8] sm:$0xff] %vm466_vm1, %v4951_v1 }
  0x5f   :  { %562 = vst.msk [vmem:[#allocation2 + $0x2f0] sm:$0xff] %vm466_vm1, %v4951_v1 }
  0x60   :  { %563 = vst.msk [vmem:[#allocation2 + $0x2f8] sm:$0x3] %vm469_vm2, %v4951_v1 }
  0x61   :  { %564 = vst.msk [vmem:[#allocation2 + $0x300] sm:$0xff] %vm466_vm1, %v4951_v1 }
  0x62   :  { %565 = vst.msk [vmem:[#allocation2 + $0x308] sm:$0xff] %vm466_vm1, %v4951_v1 }
  0x63   :  { %566 = vst.msk [vmem:[#allocation2 + $0x310] sm:$0x3] %vm469_vm2, %v4951_v1 }
  0x64   :  { %567 = vst.msk [vmem:[#allocation2 + $0x318] sm:$0xff] %vm466_vm1, %v4951_v1 }
  0x65   :  { %568 = vst.msk [vmem:[#allocation2 + $0x320] sm:$0xff] %vm466_vm1, %v4951_v1 }
  0x66   :  { %569 = vst.msk [vmem:[#allocation2 + $0x328] sm:$0x3] %vm469_vm2, %v4951_v1 }
  0x67   :  { %570 = vst.msk [vmem:[#allocation2 + $0x330] sm:$0xff] %vm466_vm1, %v4951_v1 }
  0x68   :  { %571 = vst.msk [vmem:[#allocation2 + $0x338] sm:$0xff] %vm466_vm1, %v4951_v1 }
  0x69   :  { %572 = vst.msk [vmem:[#allocation2 + $0x340] sm:$0x3] %vm469_vm2, %v4951_v1 }
  0x6a   :  { %573 = vst.msk [vmem:[#allocation2 + $0x348] sm:$0xff] %vm466_vm1, %v4951_v1 }
  0x6b   :  { %574 = vst.msk [vmem:[#allocation2 + $0x350] sm:$0xff] %vm466_vm1, %v4951_v1 }
  0x6c   :  { %575 = vst.msk [vmem:[#allocation2 + $0x358] sm:$0x3] %vm469_vm2, %v4951_v1  ;;  %v36_v1 = vld [vmem:[%s7031_s1 + $0x90] sm:$0xff]  ;;  %vm5408_vm2 = vcmp.lt.s32.totalorder %v4620_v21, 1288490188 }
  0x6d   :  { %591 = vst.msk [vmem:[#allocation2 + $0xc1] sm:$0xff] %vm466_vm1, %v416_v55  ;;  %v4603_v42 = vxor.u32 2147483648, %v36_v1  ;;  %v437_v54 = vsel %vm5408_vm2, %v5405_v35, 0.0  ;;  %v404_v55 = vsel %vm5420_vm3, %v5412_v37, 0.0  ;;  %v279_v35 = vld [vmem:[%s7032_s0 + $0x28] sm:$0xff]  ;;  %v342_v37 = vmul.f32 1.25, %v278_v34 }
  0x6e   :  { %592 = vst.msk [vmem:[#allocation2 + $0xc9] sm:$0xff] %vm466_vm1, %v417_v56  ;;  %v405_v56 = vsel %vm5424_vm4, %v5414_v38, 0.0  ;;  %v343_v38 = vmul.f32 1.25, %v279_v35  ;;  %v345_v34 = vmul.f32 1.25, %v281_v32  ;;  %v40_v35 = vld [vmem:[%s7031_s1 + $0xb0] sm:$0xff] }
  0x6f   :  { %623 = vst.msk [vmem:[#allocation2 + $0x271] sm:$0xff] %vm466_vm1, %v448_v60  ;;  %vm5466_vm5 = vcmp.lt.s32.totalorder %v4603_v42, 1288490188  ;;  %v4635_v60 = vxor.u32 2147483648, %v68_v47  ;;  %v4606_v47 = vxor.u32 2147483648, %v39_v40  ;;  %v296_v42 = vld [vmem:[%s7032_s0 + $0xb0] sm:$0xff] }
  0x70   :  { %624 = vst.msk [vmem:[#allocation2 + $0x279] sm:$0xff] %vm466_vm1, %v449_v61  ;;  %v420_v15 = vsel %vm5466_vm5, %v356_v59, 0.0  ;;  %v407_v52 = vsel %vm5557_vm12, %v343_v38, 0.0  ;;  %v71_v59 = vld [vmem:[%s7031_s1 + $0x1a8] sm:$0xff]  ;;  %v409_v40 = vsel %vm105_vm6, %v345_v34, 0.0 }
  0x71   :  { %609 = vst.msk [vmem:[#allocation2 + $0x1c9] sm:$0xff] %vm466_vm1, %v434_v0  ;;  %v324_v0 = vld [vmem:[%s7032_s0 + $0x190] sm:$0xff]  ;;  %vm5499_vm7 = vcmp.lt.s32.totalorder %v4635_v60, 1288490188  ;;  %vm5580_vm14 = vcmp.lt.s32.totalorder %v4606_v47, 1288490188 }
  0x72   :  { %610 = vst.msk [vmem:[#allocation2 + $0x1d1] sm:$0xff] %vm466_vm1, %v435_v2  ;;  %v325_v2 = vld [vmem:[%s7032_s0 + $0x198] sm:$0xff]  ;;  %v388_v17 = vmul.f32 1.25, %v324_v0  ;;  %v4638_v62 = vxor.u32 2147483648, %v71_v59  ;;  %v327_v0 = vld [vmem:[%s7032_s0 + $0x1a8] sm:$0xff]  ;;  %v360_v47 = vmul.f32 1.25, %v296_v42 }
  0x73   :  { %577 = vst.msk [vmem:[#allocation2 + $0x19] sm:$0xff] %vm466_vm1, %v402_v9  ;;  %v4621_v9 = vxor.u32 2147483648, %v54_v6  ;;  %v389_v21 = vmul.f32 1.25, %v325_v2  ;;  %v390_v6 = vmul.f32 1.25, %v326_v63  ;;  %v391_v11 = vmul.f32 1.25, %v327_v0 }
  0x74   :  { %v754_v57 = vld [vmem:[#allocation2 + $0xc1] sm:$0xff]  ;;  %578 = vst.msk [vmem:[#allocation2 + $0x21] sm:$0xff] %vm466_vm1, %v403_v43  ;;  %v452_v1 = vsel %vm5499_vm7, %v388_v17, 0.0  ;;  %vm5604_vm2 = vcmp.lt.s32.totalorder %v4638_v62, 1288490188  ;;  %v297_v43 = vld [vmem:[%s7032_s0 + $0xb8] sm:$0xff] }
  0x75   :  { %v755_v61 = vld [vmem:[#allocation2 + $0xc9] sm:$0xff]  ;;  %593 = vst.msk [vmem:[#allocation2 + $0xd9] sm:$0xff] %vm466_vm1, %v418_v44  ;;  %vm5512_vm9 = vcmp.lt.s32.totalorder %v4621_v9, 1288490188  ;;  %v453_v36 = vsel %vm5506_vm8, %v389_v21, 0.0  ;;  %v455_v21 = vsel %vm5604_vm2, %v391_v11, 0.0 }
  0x76   :  { %v810_v3 = vpack.c.bf16 %v755_v61, %v754_v57  ;;  %v786_v4 = vld [vmem:[#allocation2 + $0x271] sm:$0xff]  ;;  %594 = vst.msk [vmem:[#allocation2 + $0xe1] sm:$0xff] %vm466_vm1, %v419_v45  ;;  %v438_v41 = vsel %vm5512_vm9, %v374_v25, 0.0  ;;  %v439_v45 = vsel %vm5517_vm10, %v375_v26, 0.0  ;;  %v359_v57 = vmul.f32 1.25, %v295_v51  ;;  %v315_v11 = vld [vmem:[%s7032_s0 + $0x148] sm:$0xff] }
  0x77   :  { %v787_v8 = vld [vmem:[#allocation2 + $0x279] sm:$0xff]  ;;  %625 = vst.msk [vmem:[#allocation2 + $0x289] sm:$0xff] %vm466_vm1, %v450_v48  ;;  %v4637_v61 = vxor.u32 2147483648, %v70_v58 }
  0x78   :  { %4658 = vmatmul.msk.bf16.vlgmr.msra.gmra.mxu1 %vm466_vm1, %v810_v3  ;;  %v826_v13 = vpack.c.bf16 %v787_v8, %v786_v4  ;;  %v772_v14 = vld [vmem:[#allocation2 + $0x1c9] sm:$0xff]  ;;  %626 = vst.msk [vmem:[#allocation2 + $0x291] sm:$0xff] %vm466_vm1, %v451_v49  ;;  %v406_v49 = vsel %vm5553_vm11, %v342_v37, 0.0  ;;  %v423_v5 = vsel %vm5580_vm14, %v359_v57, 0.0  ;;  %v4607_v37 = vxor.u32 2147483648, %v40_v35 }
  0x79   :  { %v773_v18 = vld [vmem:[#allocation2 + $0x1d1] sm:$0xff]  ;;  %611 = vst.msk [vmem:[#allocation2 + $0x1e1] sm:$0xff] %vm466_vm1, %v436_v53  ;;  %vm240_vm15 = vcmp.lt.s32.totalorder %v4637_v61, 1288490188 }
  0x7a   :  { %4674 = vmatmul.msk.bf16.vlgmr.msra.gmra.mxu3 %vm466_vm1, %v826_v13  ;;  %v819_v22 = vpack.c.bf16 %v773_v18, %v772_v14  ;;  %v740_v23 = vld [vmem:[#allocation2 + $0x19] sm:$0xff]  ;;  %612 = vst.msk [vmem:[#allocation2 + $0x1e9] sm:$0xff] %vm466_vm1, %v437_v54  ;;  %v454_v12 = vsel %vm240_vm15, %v390_v6, 0.0  ;;  %v56_v13 = vld [vmem:[%s7031_s1 + $0x130] sm:$0xff]  ;;  %vm5662_vm7 = vcmp.lt.s32.totalorder %v4607_v37, 1288490188 }
  0x7b   :  { %v741_v27 = vld [vmem:[#allocation2 + $0x21] sm:$0xff]  ;;  %579 = vst.msk [vmem:[#allocation2 + $0x31] sm:$0xff] %vm466_vm1, %v404_v55  ;;  %v57_v14 = vld [vmem:[%s7031_s1 + $0x138] sm:$0xff]  ;;  %v4623_v16 = vxor.u32 2147483648, %v56_v13  ;;  %v312_v18 = vld [vmem:[%s7032_s0 + $0x130] sm:$0xff]  ;;  %v424_v53 = vsel %vm5662_vm7, %v360_v47, 0.0 }
  0x7c   :  { %4667 = vmatmul.msk.bf16.gmra.mxu2 %vm466_vm1, %v819_v22  ;;  %v5528_v31 = vpack.c.bf16 %v741_v27, %v740_v23  ;;  %580 = vst.msk [vmem:[#allocation2 + $0x39] sm:$0xff] %vm466_vm1, %v405_v56  ;;  %v756_v44 = vld [vmem:[#allocation2 + $0xd9] sm:$0xff]  ;;  %v358_v56 = vmul.f32 1.25, %v294_v50  ;;  %v4624_v17 = vxor.u32 2147483648, %v57_v14  ;;  %v376_v22 = vmul.f32 1.25, %v312_v18  ;;  %v24_v27 = vld [vmem:[%s7031_s1 + $0x30] sm:$0xff] }
  0x7d   :  { %595 = vst.msk [vmem:[#allocation2 + $0xf1] sm:$0xff] %vm466_vm1, %v420_v15  ;;  %v757_v48 = vld [vmem:[#allocation2 + $0xe1] sm:$0xff]  ;;  %vm198_vm3 = vcmp.lt.s32.totalorder %v4623_v16, 1288490188  ;;  %v4591_v29 = vxor.u32 2147483648, %v24_v27  ;;  %v73_v50 = vld [vmem:[%s7031_s1 + $0x1b8] sm:$0xff] }
  0x7e   :  { %4651 = vmatmul.msk.bf16.gmra.mxu0 %vm466_vm1, %v5528_v31  ;;  %596 = vst.msk [vmem:[#allocation2 + $0xf9] sm:$0xff] %vm466_vm1, %v421_v19  ;;  %v788_v55 = vld [vmem:[#allocation2 + $0x289] sm:$0xff]  ;;  %v811_v2 = vpack.c.bf16 %v757_v48, %v756_v44  ;;  %v422_v4 = vsel %vm5576_vm13, %v358_v56, 0.0  ;;  %v313_v19 = vld [vmem:[%s7032_s0 + $0x138] sm:$0xff]  ;;  %vm201_vm4 = vcmp.lt.s32.totalorder %v4624_v17, 1288490188 }
  0x7f   :  { %627 = vst.msk [vmem:[#allocation2 + $0x2a1] sm:$0xff] %vm466_vm1, %v452_v1  ;;  %v789_v60 = vld [vmem:[#allocation2 + $0x291] sm:$0xff]  ;;  %v377_v23 = vmul.f32 1.25, %v313_v19  ;;  %v440_v25 = vsel %vm198_vm3, %v376_v22, 0.0  ;;  %vm102_vm5 = vcmp.lt.s32.totalorder %v4591_v29, 1288490188 }
  0x80   :  { %628 = vst.msk [vmem:[#allocation2 + $0x2a9] sm:$0xff] %vm466_vm1, %v453_v36  ;;  %v774_v3 = vld [vmem:[#allocation2 + $0x1e1] sm:$0xff]  ;;  %v827_v9 = vpack.c.bf16 %v789_v60, %v788_v55  ;;  %v280_v1 = vld [vmem:[%s7032_s0 + $0x30] sm:$0xff]  ;;  %v41_v36 = vld [vmem:[%s7031_s1 + $0xb8] sm:$0xff]  ;;  %v361_v48 = vmul.f32 1.25, %v297_v43  ;;  %v4640_v55 = vxor.u32 2147483648, %v73_v50 }
  0x81   :  { %613 = vst.msk [vmem:[#allocation2 + $0x1f9] sm:$0xff] %vm466_vm1, %v438_v41  ;;  %v775_v7 = vld [vmem:[#allocation2 + $0x1e9] sm:$0xff]  ;;  %v441_v26 = vsel %vm201_vm4, %v377_v23, 0.0  ;;  %v344_v33 = vmul.f32 1.25, %v280_v1  ;;  %v4608_v41 = vxor.u32 2147483648, %v41_v36  ;;  %v329_v56 = vld [vmem:[%s7032_s0 + $0x1b8] sm:$0xff] }
  0x82   :  { %614 = vst.msk [vmem:[#allocation2 + $0x201] sm:$0xff] %vm466_vm1, %v439_v45  ;;  %v742_v10 = vld [vmem:[#allocation2 + $0x31] sm:$0xff]  ;;  %v820_v20 = vpack.c.bf16 %v775_v7, %v774_v3  ;;  %v393_v60 = vmul.f32 1.25, %v329_v56  ;;  %vm249_vm10 = vcmp.lt.s32.totalorder %v4640_v55, 1288490188  ;;  %v59_v6 = vld [vmem:[%s7031_s1 + $0x148] sm:$0xff] }
  0x83   :  { %581 = vst.msk [vmem:[#allocation2 + $0x49] sm:$0xff] %vm466_vm1, %v406_v49  ;;  %v743_v15 = vld [vmem:[#allocation2 + $0x39] sm:$0xff]  ;;  %v408_v39 = vsel %vm102_vm5, %v344_v33, 0.0  ;;  %v72_v44 = vld [vmem:[%s7031_s1 + $0x1b0] sm:$0xff]  ;;  %vm5667_vm8 = vcmp.lt.s32.totalorder %v4608_v41, 1288490188 }
  0x84   :  { %582 = vst.msk [vmem:[#allocation2 + $0x51] sm:$0xff] %vm466_vm1, %v407_v52  ;;  %v5627_v24 = vpack.c.bf16 %v743_v15, %v742_v10  ;;  %v758_v38 = vld [vmem:[#allocation2 + $0xf1] sm:$0xff]  ;;  %v4639_v51 = vxor.u32 2147483648, %v72_v44  ;;  %v425_v54 = vsel %vm5667_vm8, %v361_v48, 0.0  ;;  %v314_v10 = vld [vmem:[%s7032_s0 + $0x140] sm:$0xff]  ;;  %v379_v14 = vmul.f32 1.25, %v315_v11 }
  0x85   :  { %597 = vst.msk [vmem:[#allocation2 + $0x109] sm:$0xff] %vm466_vm1, %v422_v4  ;;  %v759_v45 = vld [vmem:[#allocation2 + $0xf9] sm:$0xff]  ;;  %v328_v52 = vld [vmem:[%s7032_s0 + $0x1b0] sm:$0xff]  ;;  %v378_v13 = vmul.f32 1.25, %v314_v10  ;;  %v27_v19 = vld [vmem:[%s7031_s1 + $0x48] sm:$0xff]  ;;  %v4610_v36 = vxor.u32 2147483648, %v43_v28 }
  0x86   :  { %598 = vst.msk [vmem:[#allocation2 + $0x111] sm:$0xff] %vm466_vm1, %v423_v5  ;;  %v392_v57 = vmul.f32 1.25, %v328_v52  ;;  %v790_v58 = vld [vmem:[#allocation2 + $0x2a1] sm:$0xff]  ;;  %vm246_vm9 = vcmp.lt.s32.totalorder %v4639_v51, 1288490188  ;;  %v812_v61 = vpack.c.bf16 %v759_v45, %v758_v38  ;;  %v29_v10 = vld [vmem:[%s7031_s1 + $0x58] sm:$0xff] }
  0x87   :  { %629 = vst.msk [vmem:[#allocation2 + $0x2b9] sm:$0xff] %vm466_vm1, %v454_v12  ;;  %v791_v59 = vld [vmem:[#allocation2 + $0x2a9] sm:$0xff]  ;;  %v58_v5 = vld [vmem:[%s7031_s1 + $0x140] sm:$0xff]  ;;  %vm159_vm2 = vcmp.lt.s32.totalorder %v4610_v36, 1288490188 }
  0x88   :  { %4659 = vmatmul.msk.bf16.gmra.mxu1 %vm466_vm1, %v811_v2  ;;  %630 = vst.msk [vmem:[#allocation2 + $0x2c1] sm:$0xff] %vm466_vm1, %v455_v21  ;;  %v456_v62 = vsel %vm246_vm9, %v392_v57, 0.0  ;;  %v776_v63 = vld [vmem:[#allocation2 + $0x1f9] sm:$0xff]  ;;  %v457_v2 = vsel %vm249_vm10, %v393_v60, 0.0  ;;  %v828_v3 = vpack.c.bf16 %v791_v59, %v790_v58  ;;  %v4625_v8 = vxor.u32 2147483648, %v58_v5  ;;  %v283_v23 = vld [vmem:[%s7032_s0 + $0x48] sm:$0xff] }
  0x89   :  { %615 = vst.msk [vmem:[#allocation2 + $0x211] sm:$0xff] %vm466_vm1, %v440_v25  ;;  %v777_v0 = vld [vmem:[#allocation2 + $0x201] sm:$0xff]  ;;  %v4594_v21 = vxor.u32 2147483648, %v27_v19  ;;  %v60_v59 = vld [vmem:[%s7031_s1 + $0x150] sm:$0xff]  ;;  %v61_v60 = vld [vmem:[%s7031_s1 + $0x158] sm:$0xff] }
  0x8a   :  { %4675 = vmatmul.msk.bf16.gmra.mxu3 %vm466_vm1, %v827_v9  ;;  %616 = vst.msk [vmem:[#allocation2 + $0x219] sm:$0xff] %vm466_vm1, %v441_v26  ;;  %v744_v4 = vld [vmem:[#allocation2 + $0x49] sm:$0xff]  ;;  %v4626_v9 = vxor.u32 2147483648, %v59_v6  ;;  %v821_v12 = vpack.c.bf16 %v777_v0, %v776_v63  ;;  %vm204_vm11 = vcmp.lt.s32.totalorder %v4625_v8, 1288490188  ;;  %v26_v18 = vld [vmem:[%s7031_s1 + $0x40] sm:$0xff] }
  0x8b   :  { %583 = vst.msk [vmem:[#allocation2 + $0x61] sm:$0xff] %vm466_vm1, %v408_v39  ;;  %v745_v7 = vld [vmem:[#allocation2 + $0x51] sm:$0xff]  ;;  %v442_v16 = vsel %vm204_vm11, %v378_v13, 0.0  ;;  %v282_v22 = vld [vmem:[%s7032_s0 + $0x40] sm:$0xff]  ;;  %v347_v26 = vmul.f32 1.25, %v283_v23  ;;  %v299_v37 = vld [vmem:[%s7032_s0 + $0xc8] sm:$0xff] }
  0x8c   :  { %4668 = vmatmul.msk.bf16.gmra.mxu2 %vm466_vm1, %v820_v20  ;;  %584 = vst.msk [vmem:[#allocation2 + $0x69] sm:$0xff] %vm466_vm1, %v409_v40  ;;  %vm207_vm12 = vcmp.lt.s32.totalorder %v4626_v9, 1288490188  ;;  %v5702_v15 = vpack.c.bf16 %v745_v7, %v744_v4  ;;  %v4593_v20 = vxor.u32 2147483648, %v26_v18  ;;  %v346_v25 = vmul.f32 1.25, %v282_v22  ;;  %v42_v27 = vld [vmem:[%s7031_s1 + $0xc0] sm:$0xff] }
  0x8d   :  { %599 = vst.msk [vmem:[#allocation2 + $0x121] sm:$0xff] %vm466_vm1, %v424_v53  ;;  %v443_v17 = vsel %vm207_vm12, %v379_v14, 0.0  ;;  %vm5727_vm14 = vcmp.lt.s32.totalorder %v4594_v21, 1288490188  ;;  %v4609_v30 = vxor.u32 2147483648, %v42_v27  ;;  %v298_v1 = vld [vmem:[%s7032_s0 + $0xc0] sm:$0xff] }
  0x8e   :  { %4652 = vmatmul.msk.bf16.gmra.mxu0 %vm466_vm1, %v5627_v24  ;;  %600 = vst.msk [vmem:[#allocation2 + $0x129] sm:$0xff] %vm466_vm1, %v425_v54  ;;  %vm108_vm13 = vcmp.lt.s32.totalorder %v4593_v20, 1288490188  ;;  %v760_v32 = vld [vmem:[#allocation2 + $0x109] sm:$0xff]  ;;  %v761_v33 = vld [vmem:[#allocation2 + $0x111] sm:$0xff]  ;;  %v411_v35 = vsel %vm5727_vm14, %v347_v26, 0.0 }
  0x8f   :  { %631 = vst.msk [vmem:[#allocation2 + $0x2d1] sm:$0xff] %vm466_vm1, %v456_v62  ;;  %v410_v34 = vsel %vm108_vm13, %v346_v25, 0.0  ;;  %v362_v38 = vmul.f32 1.25, %v298_v1  ;;  %v74_v39 = vld [vmem:[%s7031_s1 + $0x1c0] sm:$0xff]  ;;  %vm156_vm15 = vcmp.lt.s32.totalorder %v4609_v30, 1288490188  ;;  %v813_v52 = vpack.c.bf16 %v761_v33, %v760_v32 }
  0x90   :  { %632 = vst.msk [vmem:[#allocation2 + $0x2d9] sm:$0xff] %vm466_vm1, %v457_v2  ;;  %v363_v40 = vmul.f32 1.25, %v299_v37  ;;  %v75_v41 = vld [vmem:[%s7031_s1 + $0x1c8] sm:$0xff]  ;;  %v4641_v42 = vxor.u32 2147483648, %v74_v39  ;;  %v330_v45 = vld [vmem:[%s7032_s0 + $0x1c0] sm:$0xff]  ;;  %v778_v53 = vld [vmem:[#allocation2 + $0x211] sm:$0xff] }
  0x91   :  { %617 = vst.msk [vmem:[#allocation2 + $0x229] sm:$0xff] %vm466_vm1, %v442_v16  ;;  %v426_v43 = vsel %vm156_vm15, %v362_v38, 0.0  ;;  %v4642_v44 = vxor.u32 2147483648, %v75_v41  ;;  %v792_v46 = vld [vmem:[#allocation2 + $0x2b9] sm:$0xff]  ;;  %v331_v48 = vld [vmem:[%s7032_s0 + $0x1c8] sm:$0xff]  ;;  %v394_v50 = vmul.f32 1.25, %v330_v45 }
  0x92   :  { %618 = vst.msk [vmem:[#allocation2 + $0x231] sm:$0xff] %vm466_vm1, %v443_v17  ;;  %v427_v47 = vsel %vm159_vm2, %v363_v40, 0.0  ;;  %vm252_vm3 = vcmp.lt.s32.totalorder %v4641_v42, 1288490188  ;;  %v793_v49 = vld [vmem:[#allocation2 + $0x2c1] sm:$0xff]  ;;  %v395_v51 = vmul.f32 1.25, %v331_v48 }
  0x93   :  { %585 = vst.msk [vmem:[#allocation2 + $0x79] sm:$0xff] %vm466_vm1, %v410_v34  ;;  %vm255_vm4 = vcmp.lt.s32.totalorder %v4642_v44, 1288490188  ;;  %v779_v54 = vld [vmem:[#allocation2 + $0x219] sm:$0xff]  ;;  %v458_v55 = vsel %vm252_vm3, %v394_v50, 0.0  ;;  %v829_v57 = vpack.c.bf16 %v793_v49, %v792_v46  ;;  %v746_v58 = vld [vmem:[#allocation2 + $0x61] sm:$0xff] }
  0x94   :  { %586 = vst.msk [vmem:[#allocation2 + $0x81] sm:$0xff] %vm466_vm1, %v411_v35  ;;  %v459_v56 = vsel %vm255_vm4, %v395_v51, 0.0  ;;  %v4627_v62 = vxor.u32 2147483648, %v60_v59  ;;  %v4628_v63 = vxor.u32 2147483648, %v61_v60  ;;  %v316_v0 = vld [vmem:[%s7032_s0 + $0x150] sm:$0xff]  ;;  %v317_v2 = vld [vmem:[%s7032_s0 + $0x158] sm:$0xff] }
  0x95   :  { %601 = vst.msk [vmem:[#allocation2 + $0x139] sm:$0xff] %vm466_vm1, %v426_v43  ;;  %v380_v4 = vmul.f32 1.25, %v316_v0  ;;  %v381_v5 = vmul.f32 1.25, %v317_v2  ;;  %v28_v9 = vld [vmem:[%s7031_s1 + $0x50] sm:$0xff]  ;;  %v4596_v13 = vxor.u32 2147483648, %v29_v10  ;;  %v285_v16 = vld [vmem:[%s7032_s0 + $0x58] sm:$0xff] }
  0x96   :  { %602 = vst.msk [vmem:[#allocation2 + $0x141] sm:$0xff] %vm466_vm1, %v427_v47  ;;  %vm210_vm5 = vcmp.lt.s32.totalorder %v4627_v62, 1288490188  ;;  %vm213_vm6 = vcmp.lt.s32.totalorder %v4628_v63, 1288490188  ;;  %v44_v11 = vld [vmem:[%s7031_s1 + $0xd0] sm:$0xff] }
  0x97   :  { %633 = vst.msk [vmem:[#allocation2 + $0x2e9] sm:$0xff] %vm466_vm1, %v458_v55  ;;  %v444_v7 = vsel %vm210_vm5, %v380_v4, 0.0  ;;  %v445_v8 = vsel %vm213_vm6, %v381_v5, 0.0  ;;  %v284_v14 = vld [vmem:[%s7032_s0 + $0x50] sm:$0xff]  ;;  %v45_v17 = vld [vmem:[%s7031_s1 + $0xd8] sm:$0xff]  ;;  %v349_v19 = vmul.f32 1.25, %v285_v16 }
  0x98   :  { %4660 = vmatmul.msk.bf16.gmra.mxu1 %vm466_vm1, %v812_v61  ;;  %v747_v61 = vld [vmem:[#allocation2 + $0x69] sm:$0xff]  ;;  %634 = vst.msk [vmem:[#allocation2 + $0x2f1] sm:$0xff] %vm466_vm1, %v459_v56  ;;  %v348_v18 = vmul.f32 1.25, %v284_v14  ;;  %v4611_v20 = vxor.u32 2147483648, %v44_v11  ;;  %v4612_v21 = vxor.u32 2147483648, %v45_v17  ;;  %v301_v23 = vld [vmem:[%s7032_s0 + $0xd8] sm:$0xff] }
  0x99   :  { %v5771_v6 = vpack.c.bf16 %v747_v61, %v746_v58  ;;  %619 = vst.msk [vmem:[#allocation2 + $0x241] sm:$0xff] %vm466_vm1, %v444_v7  ;;  %v300_v22 = vld [vmem:[%s7032_s0 + $0xd0] sm:$0xff]  ;;  %vm117_vm8 = vcmp.lt.s32.totalorder %v4596_v13, 1288490188  ;;  %v762_v25 = vld [vmem:[#allocation2 + $0x121] sm:$0xff]  ;;  %v77_v30 = vld [vmem:[%s7031_s1 + $0x1d8] sm:$0xff] }
  0x9a   :  { %4676 = vmatmul.msk.bf16.gmra.mxu3 %vm466_vm1, %v828_v3  ;;  %v822_v3 = vpack.c.bf16 %v779_v54, %v778_v53  ;;  %620 = vst.msk [vmem:[#allocation2 + $0x249] sm:$0xff] %vm466_vm1, %v445_v8  ;;  %v413_v27 = vsel %vm117_vm8, %v349_v19, 0.0  ;;  %vm5802_vm9 = vcmp.lt.s32.totalorder %v4611_v20, 1288490188  ;;  %v76_v29 = vld [vmem:[%s7031_s1 + $0x1d0] sm:$0xff]  ;;  %v364_v32 = vmul.f32 1.25, %v300_v22 }
  0x9b   :  { %vm5813_vm10 = vcmp.lt.s32.totalorder %v4612_v21, 1288490188  ;;  %v365_v33 = vmul.f32 1.25, %v301_v23  ;;  %v4643_v34 = vxor.u32 2147483648, %v76_v29  ;;  %v763_v35 = vld [vmem:[#allocation2 + $0x129] sm:$0xff]  ;;  %588 = vst.msk [vmem:[#allocation2 + $0x99] sm:$0xff] %vm466_vm1, %v413_v27 }
  0x9c   :  { %4669 = vmatmul.msk.bf16.gmra.mxu2 %vm466_vm1, %v821_v12  ;;  %v4595_v12 = vxor.u32 2147483648, %v28_v9  ;;  %v4644_v36 = vxor.u32 2147483648, %v77_v30  ;;  %v332_v37 = vld [vmem:[%s7032_s0 + $0x1d0] sm:$0xff]  ;;  %v333_v38 = vld [vmem:[%s7032_s0 + $0x1d8] sm:$0xff]  ;;  %v428_v39 = vsel %vm5802_vm9, %v364_v32, 0.0  ;;  %v814_v45 = vpack.c.bf16 %v763_v35, %v762_v25  ;;  %v63_v53 = vld [vmem:[%s7031_s1 + $0x168] sm:$0xff] }
  0x9d   :  { %v429_v40 = vsel %vm5813_vm10, %v365_v33, 0.0  ;;  %vm258_vm11 = vcmp.lt.s32.totalorder %v4643_v34, 1288490188  ;;  %v396_v41 = vmul.f32 1.25, %v332_v37  ;;  %v794_v42 = vld [vmem:[#allocation2 + $0x2d1] sm:$0xff]  ;;  %v795_v43 = vld [vmem:[#allocation2 + $0x2d9] sm:$0xff] }
  0x9e   :  { %4653 = vmatmul.msk.bf16.gmra.mxu0 %vm466_vm1, %v5702_v15  ;;  %vm114_vm7 = vcmp.lt.s32.totalorder %v4595_v12, 1288490188  ;;  %603 = vst.msk [vmem:[#allocation2 + $0x151] sm:$0xff] %vm466_vm1, %v428_v39  ;;  %vm261_vm12 = vcmp.lt.s32.totalorder %v4644_v36, 1288490188  ;;  %v397_v44 = vmul.f32 1.25, %v333_v38  ;;  %v830_v50 = vpack.c.bf16 %v795_v43, %v794_v42 }
  0x9f   :  { %v412_v26 = vsel %vm114_vm7, %v348_v18, 0.0  ;;  %604 = vst.msk [vmem:[#allocation2 + $0x159] sm:$0xff] %vm466_vm1, %v429_v40  ;;  %v460_v46 = vsel %vm258_vm11, %v396_v41, 0.0  ;;  %v780_v47 = vld [vmem:[#allocation2 + $0x229] sm:$0xff]  ;;  %v781_v48 = vld [vmem:[#allocation2 + $0x231] sm:$0xff]  ;;  %v748_v51 = vld [vmem:[#allocation2 + $0x79] sm:$0xff] }
  0xa0   :  { %587 = vst.msk [vmem:[#allocation2 + $0x91] sm:$0xff] %vm466_vm1, %v412_v26  ;;  %v461_v49 = vsel %vm261_vm12, %v397_v44, 0.0  ;;  %v749_v54 = vld [vmem:[#allocation2 + $0x81] sm:$0xff]  ;;  %v4630_v56 = vxor.u32 2147483648, %v63_v53  ;;  %v823_v59 = vpack.c.bf16 %v781_v48, %v780_v47  ;;  %v764_v17 = vld [vmem:[#allocation2 + $0x139] sm:$0xff]  ;;  %v796_v32 = vld [vmem:[#allocation2 + $0x2e9] sm:$0xff] }
  0xa1   :  { %635 = vst.msk [vmem:[#allocation2 + $0x301] sm:$0xff] %vm466_vm1, %v460_v46  ;;  %v319_v58 = vld [vmem:[%s7032_s0 + $0x168] sm:$0xff]  ;;  %v5846_v62 = vpack.c.bf16 %v749_v54, %v748_v51  ;;  %v30_v2 = vld [vmem:[%s7031_s1 + $0x60] sm:$0xff]  ;;  %v797_v35 = vld [vmem:[#allocation2 + $0x2f1] sm:$0xff]  ;;  %vm4516_vm10 = vcmask 64512  }
  0xa2   :  { %636 = vst.msk [vmem:[#allocation2 + $0x309] sm:$0xff] %vm466_vm1, %v461_v49  ;;  %v383_v61 = vmul.f32 1.25, %v319_v58  ;;  %vm219_vm14 = vcmp.lt.s32.totalorder %v4630_v56, 1288490188  ;;  %v4597_v4 = vxor.u32 2147483648, %v30_v2  ;;  %v286_v7 = vld [vmem:[%s7032_s0 + $0x60] sm:$0xff]  ;;  %v831_v43 = vpack.c.bf16 %v797_v35, %v796_v32 }
  0xa3   :  { %v287_v8 = vld [vmem:[%s7032_s0 + $0x68] sm:$0xff]  ;;  %v350_v9 = vmul.f32 1.25, %v286_v7  ;;  %v46_v11 = vld [vmem:[%s7031_s1 + $0xe0] sm:$0xff]  ;;  %v1805_v35 = vld [vmem:[#allocation2 + $0x30] sm:$0xff] }
  0xa4   :  { %v447_v0 = vsel %vm219_vm14, %v383_v61, 0.0  ;;  %v351_v10 = vmul.f32 1.25, %v287_v8  ;;  %v47_v12 = vld [vmem:[%s7031_s1 + $0xe8] sm:$0xff]  ;;  %vm120_vm15 = vcmp.lt.s32.totalorder %v4597_v4, 1288490188  ;;  %v4613_v14 = vxor.u32 2147483648, %v46_v11 }
  0xa5   :  { %622 = vst.msk [vmem:[#allocation2 + $0x261] sm:$0xff] %vm466_vm1, %v447_v0  ;;  %v302_v16 = vld [vmem:[%s7032_s0 + $0xe0] sm:$0xff]  ;;  %v414_v19 = vsel %vm120_vm15, %v350_v9, 0.0  ;;  %v4614_v21 = vxor.u32 2147483648, %v47_v12  ;;  %v303_v22 = vld [vmem:[%s7032_s0 + $0xe8] sm:$0xff]  ;;  %v766_v48 = vld [vmem:[#allocation2 + $0x151] sm:$0xff] }
  0xa6   :  { %v765_v18 = vld [vmem:[#allocation2 + $0x141] sm:$0xff]  ;;  %v366_v23 = vmul.f32 1.25, %v302_v16  ;;  %589 = vst.msk [vmem:[#allocation2 + $0xa9] sm:$0xff] %vm466_vm1, %v414_v19  ;;  %vm168_vm3 = vcmp.lt.s32.totalorder %v4613_v14, 1288490188  ;;  %v367_v26 = vmul.f32 1.25, %v303_v22  ;;  %v5939_v16 = vpop.f32.mrf.mxu0 }
  0xa7   :  { %v78_v25 = vld [vmem:[%s7031_s1 + $0x1e0] sm:$0xff]  ;;  %v79_v27 = vld [vmem:[%s7031_s1 + $0x1e8] sm:$0xff]  ;;  %vm171_vm4 = vcmp.lt.s32.totalorder %v4614_v21, 1288490188  ;;  %v5899_v38 = vpack.c.bf16 %v765_v18, %v764_v17  ;;  %v750_v44 = vld [vmem:[#allocation2 + $0x91] sm:$0xff]  ;;  %v5944_v18 = vpop.f32.mrf.mxu2 }
  0xa8   :  { %4661 = vmatmul.msk.bf16.gmra.mxu1 %vm466_vm1, %v813_v52  ;;  %v62_v52 = vld [vmem:[%s7031_s1 + $0x160] sm:$0xff]  ;;  %v4645_v28 = vxor.u32 2147483648, %v78_v25  ;;  %v430_v29 = vsel %vm168_vm3, %v366_v23, 0.0  ;;  %v4646_v30 = vxor.u32 2147483648, %v79_v27  ;;  %v431_v33 = vsel %vm171_vm4, %v367_v26, 0.0  ;;  %v335_v34 = vld [vmem:[%s7032_s0 + $0x1e8] sm:$0xff] }
  0xa9   :  { %v4629_v55 = vxor.u32 2147483648, %v62_v52  ;;  %v334_v1 = vld [vmem:[%s7032_s0 + $0x1e0] sm:$0xff]  ;;  %605 = vst.msk [vmem:[#allocation2 + $0x169] sm:$0xff] %vm466_vm1, %v430_v29  ;;  %v399_v37 = vmul.f32 1.25, %v335_v34  ;;  %v783_v40 = vld [vmem:[#allocation2 + $0x249] sm:$0xff]  ;;  %v1803_v22 = vld [vmem:[#allocation2 + $0x18] sm:$0xff] }
  0xaa   :  { %4677 = vmatmul.msk.bf16.gmra.mxu3 %vm466_vm1, %v829_v57  ;;  %v318_v57 = vld [vmem:[%s7032_s0 + $0x160] sm:$0xff]  ;;  %vm264_vm5 = vcmp.lt.s32.totalorder %v4645_v28, 1288490188  ;;  %606 = vst.msk [vmem:[#allocation2 + $0x171] sm:$0xff] %vm466_vm1, %v431_v33  ;;  %vm267_vm6 = vcmp.lt.s32.totalorder %v4646_v30, 1288490188 }
  0xab   :  { %v382_v60 = vmul.f32 1.25, %v318_v57  ;;  %vm216_vm13 = vcmp.lt.s32.totalorder %v4629_v55, 1288490188  ;;  %v398_v36 = vmul.f32 1.25, %v334_v1  ;;  %v782_v39 = vld [vmem:[#allocation2 + $0x241] sm:$0xff]  ;;  %v463_v42 = vsel %vm267_vm6, %v399_v37, 0.0 }
  0xac   :  { %4670 = vmatmul.msk.bf16.gmra.mxu2 %vm466_vm1, %v822_v3  ;;  %v31_v3 = vld [vmem:[%s7031_s1 + $0x68] sm:$0xff]  ;;  %638 = vst.msk [vmem:[#allocation2 + $0x321] sm:$0xff] %vm466_vm1, %v463_v42  ;;  %v824_v46 = vpack.c.bf16 %v783_v40, %v782_v39  ;;  %v767_v49 = vld [vmem:[#allocation2 + $0x159] sm:$0xff]  ;;  %v4912_v4 = vld [vmem:[%s7030_s2 + $0x10] sm:$0x3] }
  0xad   :  { %v446_v63 = vsel %vm216_vm13, %v382_v60, 0.0  ;;  %v4598_v5 = vxor.u32 2147483648, %v31_v3  ;;  %v462_v41 = vsel %vm264_vm5, %v398_v36, 0.0  ;;  %v799_v51 = vld [vmem:[#allocation2 + $0x309] sm:$0xff]  ;;  %v5911_v52 = vpack.c.bf16 %v767_v49, %v766_v48  ;;  %v785_v54 = vld [vmem:[#allocation2 + $0x261] sm:$0xff]  ;;  %v1806_v36 = vld [vmem:[#allocation2 + $0x38] sm:$0xff] }
  0xae   :  { %4654 = vmatmul.msk.bf16.gmra.mxu0 %vm466_vm1, %v5771_v6  ;;  %621 = vst.msk [vmem:[#allocation2 + $0x259] sm:$0xff] %vm466_vm1, %v446_v63  ;;  %v4846_v55 = vld [vmem:[%s7030_s2 + $0xc] sm:$0x3]  ;;  %v4879_v63 = vld [vmem:[%s7030_s2 + $0xe] sm:$0x3]  ;;  %v1373_v12 = vld [vmem:[#allocation2 + $0x2] sm:$0xff]  ;;  %v5949_v21 = vpop.f32.mrf.mxu0 }
  0xaf   :  { %vm5871_vm2 = vcmp.lt.s32.totalorder %v4598_v5, 1288490188  ;;  %637 = vst.msk [vmem:[#allocation2 + $0x319] sm:$0xff] %vm466_vm1, %v462_v41  ;;  %v3289_v57 = vsel %vm932_vm0, %v4846_v55, 0  ;;  %v752_v58 = vld [vmem:[#allocation2 + $0xa9] sm:$0xff]  ;;  %v3719_v2 = vsel %vm932_vm0, %v4879_v63, 0  ;;  %v5953_v27 = vpop.f32.mrf.mxu2 }
  0xb0   :  { %v415_v20 = vsel %vm5871_vm2, %v351_v10, 0.0  ;;  %3298 = vmatpush.bf16.msra.mxu2 %v3289_v57  ;;  %v4813_v0 = vld [vmem:[%s7030_s2 + $0xa] sm:$0x3]  ;;  %3728 = vmatpush.bf16.msra.mxu3 %v3719_v2  ;;  %v4149_v5 = vsel %vm932_vm0, %v4912_v4, 0  ;;  %v641_v19 = vld [vmem:[#allocation2] sm:$0xff]  ;;  %v1377_v41 = vld [vmem:[#allocation2 + $0x32] sm:$0xff] }
  0xb1   :  { %590 = vst.msk [vmem:[#allocation2 + $0xb1] sm:$0xff] %vm466_vm1, %v415_v20  ;;  %v2858_v3 = vsel %vm932_vm0, %v4813_v0, 0  ;;  %4158 = vmatpush.bf16.msra.mxu0 %v4149_v5  ;;  %v768_v7 = vld [vmem:[#allocation2 + $0x169] sm:$0xff]  ;;  %v769_v8 = vld [vmem:[#allocation2 + $0x171] sm:$0xff]  ;;  %v1804_v23 = vld [vmem:[#allocation2 + $0x20] sm:$0xff] }
  0xb2   :  { %2867 = vmatpush.bf16.msra.mxu1 %v2858_v3  ;;  %v5937_v11 = vpack.c.bf16 %v769_v8, %v768_v7  ;;  %v1374_v13 = vld [vmem:[#allocation2 + $0xa] sm:$0xff]  ;;  %v1375_v28 = vld [vmem:[#allocation2 + $0x1a] sm:$0xff]  ;;  %v1376_v29 = vld [vmem:[#allocation2 + $0x22] sm:$0xff]  ;;  %v1867_v30 = vpack.c.bf16 %v1804_v23, %v1803_v22 }
  0xb3   :  { %v801_v10 = vld [vmem:[#allocation2 + $0x321] sm:$0xff]  ;;  %v1437_v17 = vpack.c.bf16 %v1374_v13, %v1373_v12  ;;  %v1438_v1 = vpack.c.bf16 %v1376_v29, %v1375_v28  ;;  %v1380_v57 = vld [vmem:[#allocation2 + $0x52] sm:$0xff] }
  0xb4   :  { %v642_v20 = vld [vmem:[#allocation2 + $0x8] sm:$0xff]  ;;  %v1378_v42 = vld [vmem:[#allocation2 + $0x3a] sm:$0xff] }
  0xb5   :  { %v784_v53 = vld [vmem:[#allocation2 + $0x259] sm:$0xff]  ;;  %v705_v25 = vpack.c.bf16 %v642_v20, %v641_v19  ;;  %v1810_v4 = vld [vmem:[#allocation2 + $0x68] sm:$0xff] }
  0xb6   :  { %v825_v60 = vpack.c.bf16 %v785_v54, %v784_v53  ;;  %v800_v9 = vld [vmem:[#allocation2 + $0x319] sm:$0xff] }
  0xb7   :  { %v833_v14 = vpack.c.bf16 %v801_v10, %v800_v9  ;;  %v1809_v3 = vld [vmem:[#allocation2 + $0x60] sm:$0xff]  ;;  %v1382_v10 = vld [vmem:[#allocation2 + $0x6a] sm:$0xff]  ;;  %v1811_v22 = vld [vmem:[#allocation2 + $0x78] sm:$0xff] }
  0xb8   :  { %4662 = vmatmul.msk.bf16.gmra.mxu1 %vm466_vm1, %v814_v45  ;;  %v751_v45 = vld [vmem:[#allocation2 + $0x99] sm:$0xff]  ;;  %v1381_v9 = vld [vmem:[#allocation2 + $0x62] sm:$0xff]  ;;  %v1870_v12 = vpack.c.bf16 %v1810_v4, %v1809_v3 }
  0xb9   :  { %v5906_v47 = vpack.c.bf16 %v751_v45, %v750_v44  ;;  %v1439_v45 = vpack.c.bf16 %v1378_v42, %v1377_v41  ;;  %v1812_v23 = vld [vmem:[#allocation2 + $0x80] sm:$0xff] }
  0xba   :  { %4678 = vmatmul.msk.bf16.gmra.mxu3 %vm466_vm1, %v830_v50  ;;  %v798_v50 = vld [vmem:[#allocation2 + $0x301] sm:$0xff] }
  0xbb   :  { %v832_v56 = vpack.c.bf16 %v799_v51, %v798_v50  ;;  %v1807_v50 = vld [vmem:[#allocation2 + $0x48] sm:$0xff]  ;;  %v1808_v51 = vld [vmem:[#allocation2 + $0x50] sm:$0xff]  ;;  %v1386_v3 = vld [vmem:[#allocation2 + $0x9a] sm:$0xff] }
  0xbc   :  { %4671 = vmatmul.msk.bf16.gmra.mxu2 %vm466_vm1, %v823_v59  ;;  %v753_v59 = vld [vmem:[#allocation2 + $0xb1] sm:$0xff] }
  0xbd   :  { %v5920_v61 = vpack.c.bf16 %v753_v59, %v752_v58  ;;  %v1869_v58 = vpack.c.bf16 %v1808_v51, %v1807_v50  ;;  %v1813_v50 = vld [vmem:[#allocation2 + $0x90] sm:$0xff]  ;;  %v1814_v51 = vld [vmem:[#allocation2 + $0x98] sm:$0xff] }
  0xbe   :  { %4655 = vmatmul.msk.bf16.gmra.mxu0 %vm466_vm1, %v5846_v62  ;;  %v1872_v4 = vpack.c.bf16 %v1814_v51, %v1813_v50  ;;  %v1387_v50 = vld [vmem:[#allocation2 + $0xaa] sm:$0xff]  ;;  %v1388_v51 = vld [vmem:[#allocation2 + $0xb2] sm:$0xff] }
  0xc8   :  { %4663 = vmatmul.msk.bf16.gmra.mxu1 %vm466_vm1, %v5899_v38 }
  0xca   :  { %4679 = vmatmul.msk.bf16.gmra.mxu3 %vm466_vm1, %v831_v43  ;;  %v1868_v43 = vpack.c.bf16 %v1806_v36, %v1805_v35  ;;  %v1871_v35 = vpack.c.bf16 %v1812_v23, %v1811_v22  ;;  %v1815_v23 = vld [vmem:[#allocation2 + $0xa8] sm:$0xff] }
  0xcc   :  { %4672 = vmatmul.msk.bf16.gmra.mxu2 %vm466_vm1, %v824_v46 }
  0xce   :  { %4656 = vmatmul.msk.bf16.gmra.mxu0 %vm466_vm1, %v5906_v47 }
  0xd8   :  { %4664 = vmatmul.msk.bf16.gmra.mxu1 %vm466_vm1, %v5911_v52 }
  0xda   :  { %4680 = vmatmul.msk.bf16.gmra.mxu3 %vm466_vm1, %v832_v56  ;;  %v1379_v56 = vld [vmem:[#allocation2 + $0x4a] sm:$0xff] }
  0xdc   :  { %4673 = vmatmul.msk.bf16.gmra.mxu2 %vm466_vm1, %v825_v60  ;;  %v1440_v60 = vpack.c.bf16 %v1380_v57, %v1379_v56 }
  0xde   :  { %4657 = vmatmul.msk.bf16.gmra.mxu0 %vm466_vm1, %v5920_v61 }
  0xe8   :  { %4665 = vmatmul.msk.bf16.gmra.mxu1 %vm466_vm1, %v5937_v11 }
  0xea   :  { %4681 = vmatmul.msk.bf16.gmra.mxu3 %vm466_vm1, %v833_v14  ;;  %v1441_v14 = vpack.c.bf16 %v1382_v10, %v1381_v9 }
  0xec   :  { %4715 = vmatmul.msk.bf16.vlgmr.msrb.gmra.mxu2 %vm466_vm1, %v1437_v17 }
  0xee   :  { %4781 = vmatmul.msk.bf16.vlgmr.msrb.gmra.mxu0 %vm466_vm1, %v5528_v31 }
  0xf5   :  { %v5951_v26 = vpop.f32.mrf.mxu1 }
  0xf8   :  { %4682 = vmatmul.msk.bf16.vlgmr.msrb.gmra.mxu1 %vm466_vm1, %v705_v25 }
  0xfa   :  { %4748 = vmatmul.msk.bf16.vlgmr.msrb.gmra.mxu3 %vm466_vm1, %v1867_v30 }
  0xfb   :  { %v5957_v31 = vpop.f32.mrf.mxu0 }
  0xfc   :  { %4716 = vmatmul.msk.bf16.gmra.mxu2 %vm466_vm1, %v1438_v1  ;;  %v1384_v1 = vld [vmem:[#allocation2 + $0x82] sm:$0xff] }
  0xfd   :  { %v5960_v32 = vpop.f32.mrf.mxu3  ;;  %v5962_v33 = vpop.f32.mrf.mxu1 }
  0xfe   :  { %7101 = vst [vmem:[#allocation3_spill] sm:$0xff] %v5960_v32  ;;  %4782 = vmatmul.msk.bf16.gmra.mxu0 %vm466_vm1, %v5627_v24  ;;  %v1820_v32 = vld [vmem:[#allocation2 + $0xe0] sm:$0xff] }
  0xff   :  { %v5966_v34 = vpop.f32.mrf.mxu2 }
 0x103   :  { %v5968_v37 = vpop.f32.mrf.mxu0 }
 0x105   :  { %v5970_v39 = vpop.f32.mrf.mxu3  ;;  %v5972_v40 = vpop.f32.mrf.mxu1 }
 0x106   :  { %7102 = vst [vmem:[#allocation4_spill] sm:$0xff] %v5970_v39 }
 0x107   :  { %v5974_v44 = vpop.f32.mrf.mxu2 }
 0x108   :  { %4683 = vmatmul.msk.bf16.gmra.mxu1 %vm466_vm1, %v1867_v30  ;;  %v1383_v30 = vld [vmem:[#allocation2 + $0x7a] sm:$0xff] }
 0x109   :  { %v1442_v41 = vpack.c.bf16 %v1384_v1, %v1383_v30  ;;  %v1816_v30 = vld [vmem:[#allocation2 + $0xb0] sm:$0xff] }
 0x10a   :  { %4749 = vmatmul.msk.bf16.gmra.mxu3 %vm466_vm1, %v1868_v43 }
 0x10b   :  { %v5978_v24 = vpop.f32.mrf.mxu0 }
 0x10c   :  { %4717 = vmatmul.msk.bf16.gmra.mxu2 %vm466_vm1, %v1439_v45 }
 0x10d   :  { %v5981_v46 = vpop.f32.mrf.mxu3  ;;  %v5983_v48 = vpop.f32.mrf.mxu1 }
 0x10e   :  { %7103 = vst [vmem:[#allocation5_spill] sm:$0xff] %v5981_v46  ;;  %4783 = vmatmul.msk.bf16.gmra.mxu0 %vm466_vm1, %v5702_v15 }
 0x10f   :  { %v5987_v49 = vpop.f32.mrf.mxu2 }
 0x113   :  { %v5989_v53 = vpop.f32.mrf.mxu0 }
 0x115   :  { %v5991_v54 = vpop.f32.mrf.mxu3  ;;  %v5993_v55 = vpop.f32.mrf.mxu1 }
 0x116   :  { %7104 = vst [vmem:[#allocation6_spill] sm:$0xff] %v5991_v54 }
 0x117   :  { %v5995_v59 = vpop.f32.mrf.mxu2 }
 0x118   :  { %4684 = vmatmul.msk.bf16.gmra.mxu1 %vm466_vm1, %v1868_v43 }
 0x11a   :  { %4750 = vmatmul.msk.bf16.gmra.mxu3 %vm466_vm1, %v1869_v58 }
 0x11b   :  { %v5999_v15 = vpop.f32.mrf.mxu0 }
 0x11c   :  { %4718 = vmatmul.msk.bf16.gmra.mxu2 %vm466_vm1, %v1440_v60  ;;  %v1385_v60 = vld [vmem:[#allocation2 + $0x92] sm:$0xff] }
 0x11d   :  { %v6002_v63 = vpop.f32.mrf.mxu3  ;;  %v6004_v0 = vpop.f32.mrf.mxu1  ;;  %v1443_v10 = vpack.c.bf16 %v1386_v3, %v1385_v60  ;;  %v1873_v60 = vpack.c.bf16 %v1816_v30, %v1815_v23  ;;  %v1817_v30 = vld [vmem:[#allocation2 + $0xc0] sm:$0xff] }
 0x11e   :  { %7105 = vst [vmem:[#allocation7_spill] sm:$0xff] %v6002_v63  ;;  %4784 = vmatmul.msk.bf16.gmra.mxu0 %vm466_vm1, %v5771_v6  ;;  %v2250_v63 = vld [vmem:[#allocation2 + $0xe1] sm:$0xff] }
 0x11f   :  { %v6008_v2 = vpop.f32.mrf.mxu2 }
 0x120   :  { %7106 = vst [vmem:[#allocation8_spill] sm:$0xff] %v6008_v2 }
 0x123   :  { %v6010_v5 = vpop.f32.mrf.mxu0 }
 0x125   :  { %v6012_v7 = vpop.f32.mrf.mxu3  ;;  %v6014_v8 = vpop.f32.mrf.mxu1 }
 0x126   :  { %7107 = vst [vmem:[#allocation9_spill] sm:$0xff] %v6012_v7 }
 0x127   :  { %v6016_v13 = vpop.f32.mrf.mxu2 }
 0x128   :  { %7108 = vst [vmem:[#allocation10_spill] sm:$0xff] %v6016_v13  ;;  %4685 = vmatmul.msk.bf16.gmra.mxu1 %vm466_vm1, %v1869_v58 }
 0x12a   :  { %4751 = vmatmul.msk.bf16.gmra.mxu3 %vm466_vm1, %v1870_v12 }
 0x12b   :  { %v6020_v6 = vpop.f32.mrf.mxu0 }
 0x12c   :  { %4719 = vmatmul.msk.bf16.gmra.mxu2 %vm466_vm1, %v1441_v14 }
 0x12d   :  { %v6023_v17 = vpop.f32.mrf.mxu3  ;;  %v6025_v19 = vpop.f32.mrf.mxu1 }
 0x12e   :  { %7109 = vst [vmem:[#allocation11_spill] sm:$0xff] %v6023_v17  ;;  %4785 = vmatmul.msk.bf16.gmra.mxu0 %vm466_vm1, %v5846_v62  ;;  %v1818_v17 = vld [vmem:[#allocation2 + $0xc8] sm:$0xff] }
 0x12f   :  { %v6029_v20 = vpop.f32.mrf.mxu2 }
 0x130   :  { %7110 = vst [vmem:[#allocation12_spill] sm:$0xff] %v6029_v20 }
 0x133   :  { %v6031_v25 = vpop.f32.mrf.mxu0 }
 0x135   :  { %v6033_v28 = vpop.f32.mrf.mxu3  ;;  %v6035_v29 = vpop.f32.mrf.mxu1 }
 0x136   :  { %7111 = vst [vmem:[#allocation13_spill] sm:$0xff] %v6033_v28 }
 0x137   :  { %v6037_v36 = vpop.f32.mrf.mxu2 }
 0x138   :  { %7112 = vst [vmem:[#allocation14_spill] sm:$0xff] %v6037_v36  ;;  %4686 = vmatmul.msk.bf16.gmra.mxu1 %vm466_vm1, %v1870_v12 }
 0x13a   :  { %4752 = vmatmul.msk.bf16.gmra.mxu3 %vm466_vm1, %v1871_v35 }
 0x13b   :  { %v6041_v62 = vpop.f32.mrf.mxu0 }
 0x13c   :  { %4720 = vmatmul.msk.bf16.gmra.mxu2 %vm466_vm1, %v1442_v41 }
 0x13d   :  { %v6044_v42 = vpop.f32.mrf.mxu3  ;;  %v6046_v43 = vpop.f32.mrf.mxu1 }
 0x13e   :  { %7113 = vst [vmem:[#allocation15_spill] sm:$0xff] %v6044_v42  ;;  %4786 = vmatmul.msk.bf16.gmra.mxu0 %vm466_vm1, %v5906_v47 }
 0x13f   :  { %v6050_v45 = vpop.f32.mrf.mxu2 }
 0x140   :  { %7114 = vst [vmem:[#allocation16_spill] sm:$0xff] %v6050_v45 }
 0x143   :  { %v6052_v56 = vpop.f32.mrf.mxu0 }
 0x145   :  { %v6054_v57 = vpop.f32.mrf.mxu3  ;;  %v6056_v58 = vpop.f32.mrf.mxu1 }
 0x146   :  { %7115 = vst [vmem:[#allocation17_spill] sm:$0xff] %v6054_v57 }
 0x147   :  { %v6058_v9 = vpop.f32.mrf.mxu2 }
 0x148   :  { %7116 = vst [vmem:[#allocation18_spill] sm:$0xff] %v6058_v9  ;;  %4687 = vmatmul.msk.bf16.gmra.mxu1 %vm466_vm1, %v1871_v35 }
 0x14a   :  { %4753 = vmatmul.msk.bf16.gmra.mxu3 %vm466_vm1, %v1872_v4 }
 0x14b   :  { %v6062_v47 = vpop.f32.mrf.mxu0 }
 0x14c   :  { %4721 = vmatmul.msk.bf16.gmra.mxu2 %vm466_vm1, %v1443_v10  ;;  %v2247_v10 = vld [vmem:[#allocation2 + $0xc1] sm:$0xff] }
 0x14d   :  { %v6065_v12 = vpop.f32.mrf.mxu3  ;;  %v6067_v14 = vpop.f32.mrf.mxu1 }
 0x14e   :  { %7117 = vst [vmem:[#allocation19_spill] sm:$0xff] %v6065_v12  ;;  %4787 = vmatmul.msk.bf16.gmra.mxu0 %vm466_vm1, %v5920_v61  ;;  %v2248_v12 = vld [vmem:[#allocation2 + $0xc9] sm:$0xff]  ;;  %v1444_v61 = vpack.c.bf16 %v1388_v51, %v1387_v50 }
 0x14f   :  { %v6071_v22 = vpop.f32.mrf.mxu2  ;;  %v2304_v57 = vpack.c.bf16 %v2248_v12, %v2247_v10  ;;  %v1389_v12 = vld [vmem:[#allocation2 + $0xc2] sm:$0xff]  ;;  %v1390_v51 = vld [vmem:[#allocation2 + $0xca] sm:$0xff]  ;;  %v1874_v10 = vpack.c.bf16 %v1818_v17, %v1817_v30  ;;  %v1819_v30 = vld [vmem:[#allocation2 + $0xd8] sm:$0xff] }
 0x150   :  { %7118 = vst [vmem:[#allocation20_spill] sm:$0xff] %v6071_v22  ;;  %v2252_v22 = vld [vmem:[#allocation2 + $0xf9] sm:$0xff] }
 0x153   :  { %v6073_v1 = vpop.f32.mrf.mxu0 }
 0x155   :  { %v6075_v35 = vpop.f32.mrf.mxu3  ;;  %v6077_v41 = vpop.f32.mrf.mxu1 }
 0x156   :  { %7119 = vst [vmem:[#allocation21_spill] sm:$0xff] %v6075_v35 }
 0x157   :  { %v6079_v3 = vpop.f32.mrf.mxu2 }
 0x158   :  { %7120 = vst [vmem:[#allocation22_spill] sm:$0xff] %v6079_v3  ;;  %4688 = vmatmul.msk.bf16.gmra.mxu1 %vm466_vm1, %v1872_v4 }
 0x15a   :  { %4754 = vmatmul.msk.bf16.gmra.mxu3 %vm466_vm1, %v1873_v60 }
 0x15b   :  { %v6083_v42 = vpop.f32.mrf.mxu0 }
 0x15c   :  { %4722 = vmatmul.msk.bf16.gmra.mxu2 %vm466_vm1, %v1444_v61 }
 0x15d   :  { %v6086_v35 = vpop.f32.mrf.mxu3  ;;  %v6088_v28 = vpop.f32.mrf.mxu1 }
 0x15e   :  { %7121 = vst [vmem:[#allocation23_spill] sm:$0xff] %v6086_v35  ;;  %4788 = vmatmul.msk.bf16.gmra.mxu0 %vm466_vm1, %v2304_v57  ;;  %v2249_v35 = vld [vmem:[#allocation2 + $0xd9] sm:$0xff]  ;;  %v1445_v57 = vpack.c.bf16 %v1390_v51, %v1389_v12  ;;  %v1392_v51 = vld [vmem:[#allocation2 + $0xe2] sm:$0xff] }
 0x15f   :  { %v6091_v23 = vpop.f32.mrf.mxu2  ;;  %v2305_v54 = vpack.c.bf16 %v2250_v63, %v2249_v35  ;;  %v1391_v12 = vld [vmem:[#allocation2 + $0xda] sm:$0xff]  ;;  %v1875_v35 = vpack.c.bf16 %v1820_v32, %v1819_v30 }
 0x160   :  { %7122 = vst [vmem:[#allocation24_spill] sm:$0xff] %v6091_v23  ;;  %v1446_v9 = vpack.c.bf16 %v1392_v51, %v1391_v12 }
 0x163   :  { %v6093_v7 = vpop.f32.mrf.mxu0 }
 0x165   :  { %v6095_v4 = vpop.f32.mrf.mxu3  ;;  %v6097_v50 = vpop.f32.mrf.mxu1 }
 0x166   :  { %7123 = vst [vmem:[#allocation25_spill] sm:$0xff] %v6095_v4 }
 0x167   :  { %v6099_v61 = vpop.f32.mrf.mxu2 }
 0x168   :  { %7124 = vst [vmem:[#allocation26_spill] sm:$0xff] %v6099_v61  ;;  %4689 = vmatmul.msk.bf16.gmra.mxu1 %vm466_vm1, %v1873_v60 }
 0x16a   :  { %4755 = vmatmul.msk.bf16.gmra.mxu3 %vm466_vm1, %v1874_v10 }
 0x16b   :  { %v2439_v46 = vpop.f32.mrf.mxu0 }
 0x16c   :  { %4723 = vmatmul.msk.bf16.gmra.mxu2 %vm466_vm1, %v1445_v57  ;;  %v2251_v57 = vld [vmem:[#allocation2 + $0xf1] sm:$0xff] }
 0x16d   :  { %v6104_v39 = vpop.f32.mrf.mxu3  ;;  %v6106_v4 = vpop.f32.mrf.mxu1 }
 0x16e   :  { %7125 = vst [vmem:[#allocation27_spill] sm:$0xff] %v6104_v39  ;;  %4789 = vmatmul.msk.bf16.gmra.mxu0 %vm466_vm1, %v2305_v54  ;;  %v2306_v54 = vpack.c.bf16 %v2252_v22, %v2251_v57  ;;  %v1393_v22 = vld [vmem:[#allocation2 + $0xf2] sm:$0xff] }
 0x16f   :  { %v1579_v17 = vpop.f32.mrf.mxu2 }
 0x173   :  { %v2441_v61 = vpop.f32.mrf.mxu0 }
 0x175   :  { %v6109_v23 = vpop.f32.mrf.mxu3  ;;  %v1213_v60 = vpop.f32.mrf.mxu1 }
 0x176   :  { %7126 = vst [vmem:[#allocation28_spill] sm:$0xff] %v6109_v23  ;;  %v1214_v63 = vadd.f32 %v1213_v60, %v5939_v16 }
 0x177   :  { %v1581_v3 = vpop.f32.mrf.mxu2 }
 0x178   :  { %v1739_v39 = vadd.f32 %v1579_v17, %v1214_v63  ;;  %4690 = vmatmul.msk.bf16.gmra.mxu1 %vm466_vm1, %v1874_v10  ;;  %v1821_v17 = vld [vmem:[#allocation2 + $0xf0] sm:$0xff]  ;;  %v1822_v10 = vld [vmem:[#allocation2 + $0xf8] sm:$0xff] }
 0x179   :  { %v1394_v63 = vld [vmem:[#allocation2 + $0xfa] sm:$0xff]  ;;  %v1876_v2 = vpack.c.bf16 %v1822_v10, %v1821_v17 }
 0x17a   :  { %4756 = vmatmul.msk.bf16.gmra.mxu3 %vm466_vm1, %v1875_v35 }
 0x17b   :  { %v2444_v45 = vpop.f32.mrf.mxu0 }
 0x17c   :  { %4724 = vmatmul.msk.bf16.gmra.mxu2 %vm466_vm1, %v1446_v9 }
 0x17d   :  { %v2009_v23 = vpop.f32.mrf.mxu3  ;;  %v1215_v36 = vpop.f32.mrf.mxu1 }
 0x17e   :  { %v2169_v20 = vadd.f32 %v2009_v23, %v1739_v39  ;;  %v1216_v13 = vadd.f32 %v1215_v36, %v5949_v21  ;;  %4790 = vmatmul.msk.bf16.gmra.mxu0 %vm466_vm1, %v2306_v54  ;;  %v2253_v23 = vld [vmem:[#allocation2 + $0x109] sm:$0xff]  ;;  %v2254_v21 = vld [vmem:[#allocation2 + $0x111] sm:$0xff] }
 0x17f   :  { %v1584_v16 = vpop.f32.mrf.mxu2 }
 0x180   :  { %v1740_v32 = vadd.f32 %v1581_v3, %v1216_v13  ;;  %v6117_v30 = vadd.f32 %v2439_v46, %v2169_v20  ;;  %v1447_v13 = vpack.c.bf16 %v1394_v63, %v1393_v22  ;;  %v2307_v20 = vpack.c.bf16 %v2254_v21, %v2253_v23 }
 0x183   :  { %v2446_v60 = vpop.f32.mrf.mxu0 }
 0x185   :  { %v2011_v12 = vpop.f32.mrf.mxu3  ;;  %v1218_v51 = vpop.f32.mrf.mxu1 }
 0x186   :  { %v2170_v57 = vadd.f32 %v2011_v12, %v1740_v32  ;;  %v1219_v9 = vadd.f32 %v1218_v51, %v5957_v31 }
 0x187   :  { %v1586_v39 = vpop.f32.mrf.mxu2 }
 0x188   :  { %v1741_v36 = vadd.f32 %v1584_v16, %v1219_v9  ;;  %4691 = vmatmul.msk.bf16.gmra.mxu1 %vm466_vm1, %v1875_v35  ;;  %v6121_v46 = vadd.f32 %v2441_v61, %v2170_v57  ;;  %v1823_v35 = vld [vmem:[#allocation2 + $0x108] sm:$0xff]  ;;  %v1824_v61 = vld [vmem:[#allocation2 + $0x110] sm:$0xff] }
 0x189   :  { %v1395_v57 = vld [vmem:[#allocation2 + $0x10a] sm:$0xff]  ;;  %v1396_v9 = vld [vmem:[#allocation2 + $0x112] sm:$0xff] }
 0x18a   :  { %4757 = vmatmul.msk.bf16.gmra.mxu3 %vm466_vm1, %v1876_v2 }
 0x18b   :  { %v2449_v3 = vpop.f32.mrf.mxu0 }
 0x18c   :  { %4725 = vmatmul.msk.bf16.gmra.mxu2 %vm466_vm1, %v1447_v13  ;;  %v1877_v13 = vpack.c.bf16 %v1824_v61, %v1823_v35 }
 0x18d   :  { %v2014_v54 = vpop.f32.mrf.mxu3  ;;  %v1220_v32 = vpop.f32.mrf.mxu1 }
 0x18e   :  { %v2171_v12 = vadd.f32 %v2014_v54, %v1741_v36  ;;  %v1221_v31 = vadd.f32 %v1220_v32, %v5968_v37  ;;  %4791 = vmatmul.msk.bf16.gmra.mxu0 %vm466_vm1, %v2307_v20  ;;  %v2255_v54 = vld [vmem:[#allocation2 + $0x121] sm:$0xff]  ;;  %v2256_v37 = vld [vmem:[#allocation2 + $0x129] sm:$0xff] }
 0x18f   :  { %v1589_v17 = vpop.f32.mrf.mxu2  ;;  %v2308_v20 = vpack.c.bf16 %v2256_v37, %v2255_v54 }
 0x190   :  { %v1742_v16 = vadd.f32 %v1586_v39, %v1221_v31  ;;  %v6127_v10 = vadd.f32 %v2444_v45, %v2171_v12  ;;  %v1448_v39 = vpack.c.bf16 %v1396_v9, %v1395_v57 }
 0x193   :  { %v2451_v51 = vpop.f32.mrf.mxu0 }
 0x195   :  { %v2016_v22 = vpop.f32.mrf.mxu3  ;;  %v1223_v63 = vpop.f32.mrf.mxu1 }
 0x196   :  { %v2172_v23 = vadd.f32 %v2016_v22, %v1742_v16  ;;  %v1224_v21 = vadd.f32 %v1223_v63, %v5978_v24 }
 0x197   :  { %v1591_v36 = vpop.f32.mrf.mxu2 }
 0x198   :  { %v1743_v32 = vadd.f32 %v1589_v17, %v1224_v21  ;;  %4692 = vmatmul.msk.bf16.gmra.mxu1 %vm466_vm1, %v1876_v2  ;;  %v6131_v45 = vadd.f32 %v2446_v60, %v2172_v23  ;;  %v1825_v2 = vld [vmem:[#allocation2 + $0x120] sm:$0xff]  ;;  %v1826_v60 = vld [vmem:[#allocation2 + $0x128] sm:$0xff] }
 0x199   :  { %v1397_v23 = vld [vmem:[#allocation2 + $0x122] sm:$0xff]  ;;  %v1398_v21 = vld [vmem:[#allocation2 + $0x12a] sm:$0xff] }
 0x19a   :  { %4758 = vmatmul.msk.bf16.gmra.mxu3 %vm466_vm1, %v1877_v13 }
 0x19b   :  { %v2454_v12 = vpop.f32.mrf.mxu0 }
 0x19c   :  { %4726 = vmatmul.msk.bf16.gmra.mxu2 %vm466_vm1, %v1448_v39  ;;  %v1878_v39 = vpack.c.bf16 %v1826_v60, %v1825_v2 }
 0x19d   :  { %v2019_v31 = vpop.f32.mrf.mxu3  ;;  %v1225_v16 = vpop.f32.mrf.mxu1 }
 0x19e   :  { %v2173_v22 = vadd.f32 %v2019_v31, %v1743_v32  ;;  %v1226_v24 = vadd.f32 %v1225_v16, %v5989_v53  ;;  %4792 = vmatmul.msk.bf16.gmra.mxu0 %vm466_vm1, %v2308_v20  ;;  %v1449_v53 = vpack.c.bf16 %v1398_v21, %v1397_v23  ;;  %v1400_v23 = vld [vmem:[#allocation2 + $0x142] sm:$0xff] }
 0x19f   :  { %v1594_v35 = vpop.f32.mrf.mxu2 }
 0x1a0   :  { %v1744_v17 = vadd.f32 %v1591_v36, %v1226_v24  ;;  %v6137_v61 = vadd.f32 %v2449_v3, %v2173_v22 }
 0x1a3   :  { %v2456_v63 = vpop.f32.mrf.mxu0 }
 0x1a5   :  { %v2021_v57 = vpop.f32.mrf.mxu3  ;;  %v1228_v9 = vpop.f32.mrf.mxu1 }
 0x1a6   :  { %v2174_v54 = vadd.f32 %v2021_v57, %v1744_v17  ;;  %v1229_v37 = vadd.f32 %v1228_v9, %v5999_v15  ;;  %v1399_v9 = vld [vmem:[#allocation2 + $0x13a] sm:$0xff] }
 0x1a7   :  { %v1596_v32 = vpop.f32.mrf.mxu2 }
 0x1a8   :  { %v1745_v31 = vadd.f32 %v1594_v35, %v1229_v37  ;;  %4693 = vmatmul.msk.bf16.gmra.mxu1 %vm466_vm1, %v1877_v13  ;;  %v6141_v20 = vadd.f32 %v2451_v51, %v2174_v54  ;;  %v1827_v13 = vld [vmem:[#allocation2 + $0x138] sm:$0xff]  ;;  %v1828_v51 = vld [vmem:[#allocation2 + $0x140] sm:$0xff] }
 0x1a9   :  { %v1879_v37 = vpack.c.bf16 %v1828_v51, %v1827_v13 }
 0x1aa   :  { %4759 = vmatmul.msk.bf16.gmra.mxu3 %vm466_vm1, %v1878_v39 }
 0x1ab   :  { %v2459_v3 = vpop.f32.mrf.mxu0 }
 0x1ac   :  { %4727 = vmatmul.msk.bf16.gmra.mxu2 %vm466_vm1, %v1449_v53 }
 0x1ad   :  { %v2024_v36 = vpop.f32.mrf.mxu3  ;;  %v1230_v16 = vpop.f32.mrf.mxu1 }
 0x1ae   :  { %v2175_v22 = vadd.f32 %v2024_v36, %v1745_v31  ;;  %v1231_v24 = vadd.f32 %v1230_v16, %v6010_v5  ;;  %4793 = vmatmul.msk.bf16.gmra.mxu0 %vm466_vm1, %v5899_v38  ;;  %v1450_v38 = vpack.c.bf16 %v1400_v23, %v1399_v9  ;;  %v49_v36 = vld [vmem:[%s7031_s1 + $0xf8] sm:$0xff] }
 0x1af   :  { %v1599_v15 = vpop.f32.mrf.mxu2  ;;  %v4616_v16 = vxor.u32 2147483648, %v49_v36  ;;  %v1401_v36 = vld [vmem:[#allocation2 + $0x152] sm:$0xff] }
 0x1b0   :  { %v1746_v35 = vadd.f32 %v1596_v32, %v1231_v24  ;;  %v6148_v17 = vadd.f32 %v2454_v12, %v2175_v22  ;;  %v48_v32 = vld [vmem:[%s7031_s1 + $0xf0] sm:$0xff] }
 0x1b1   :  { %vm177_vm7 = vcmp.lt.s32.totalorder %v4616_v16, 1288490188 }
 0x1b3   :  { %v2461_v2 = vpop.f32.mrf.mxu0 }
 0x1b5   :  { %v2026_v60 = vpop.f32.mrf.mxu3  ;;  %v1233_v57 = vpop.f32.mrf.mxu1 }
 0x1b6   :  { %v2176_v21 = vadd.f32 %v2026_v60, %v1746_v35  ;;  %v1234_v54 = vadd.f32 %v1233_v57, %v6020_v6  ;;  %v4615_v6 = vxor.u32 2147483648, %v48_v32 }
 0x1b7   :  { %v1601_v31 = vpop.f32.mrf.mxu2 }
 0x1b8   :  { %v1747_v5 = vadd.f32 %v1599_v15, %v1234_v54  ;;  %4694 = vmatmul.msk.bf16.gmra.mxu1 %vm466_vm1, %v1878_v39  ;;  %v6152_v53 = vadd.f32 %v2456_v63, %v2176_v21  ;;  %v304_v63 = vld [vmem:[%s7032_s0 + $0xf0] sm:$0xff]  ;;  %v305_v39 = vld [vmem:[%s7032_s0 + $0xf8] sm:$0xff]  ;;  %vm174_vm0 = vcmp.lt.s32.totalorder %v4615_v6, 1288490188 }
 0x1b9   :  { %v368_v15 = vmul.f32 1.25, %v304_v63  ;;  %v369_v35 = vmul.f32 1.25, %v305_v39  ;;  %v1829_v54 = vld [vmem:[#allocation2 + $0x150] sm:$0xff]  ;;  %v1402_v63 = vld [vmem:[#allocation2 + $0x15a] sm:$0xff] }
 0x1ba   :  { %4760 = vmatmul.msk.bf16.gmra.mxu3 %vm466_vm1, %v1879_v37 }
 0x1bb   :  { %v2464_v12 = vpop.f32.mrf.mxu0  ;;  %v432_v57 = vsel %vm174_vm0, %v368_v15, 0.0  ;;  %v433_v9 = vsel %vm177_vm7, %v369_v35, 0.0 }
 0x1bc   :  { %4728 = vmatmul.msk.bf16.gmra.mxu2 %vm466_vm1, %v1450_v38  ;;  %607 = vst.msk [vmem:[#allocation2 + $0x181] sm:$0xff] %vm466_vm1, %v432_v57  ;;  %v1830_v38 = vld [vmem:[#allocation2 + $0x158] sm:$0xff] }
 0x1bd   :  { %v2029_v22 = vpop.f32.mrf.mxu3  ;;  %v1235_v24 = vpop.f32.mrf.mxu1  ;;  %608 = vst.msk [vmem:[#allocation2 + $0x189] sm:$0xff] %vm466_vm1, %v433_v9  ;;  %v1880_v16 = vpack.c.bf16 %v1830_v38, %v1829_v54  ;;  %v1403_v38 = vld [vmem:[#allocation2 + $0x16a] sm:$0xff] }
 0x1be   :  { %v2177_v13 = vadd.f32 %v2029_v22, %v1747_v5  ;;  %v1236_v51 = vadd.f32 %v1235_v24, %v6031_v25  ;;  %4794 = vmatmul.msk.bf16.gmra.mxu0 %vm466_vm1, %v5911_v52 }
 0x1bf   :  { %v1604_v60 = vpop.f32.mrf.mxu2 }
 0x1c0   :  { %v1748_v23 = vadd.f32 %v1601_v31, %v1236_v51  ;;  %v6172_v21 = vadd.f32 %v2459_v3, %v2177_v13  ;;  %v1451_v31 = vpack.c.bf16 %v1402_v63, %v1401_v36 }
 0x1c3   :  { %v2466_v5 = vpop.f32.mrf.mxu0 }
 0x1c5   :  { %v2031_v32 = vpop.f32.mrf.mxu3  ;;  %v1238_v25 = vpop.f32.mrf.mxu1 }
 0x1c6   :  { %v2178_v52 = vadd.f32 %v2031_v32, %v1748_v23  ;;  %v1239_v6 = vadd.f32 %v1238_v25, %v6041_v62  ;;  %v1404_v32 = vld [vmem:[#allocation2 + $0x172] sm:$0xff] }
 0x1c7   :  { %v1606_v39 = vpop.f32.mrf.mxu2 }
 0x1c8   :  { %v1749_v22 = vadd.f32 %v1604_v60, %v1239_v6  ;;  %4695 = vmatmul.msk.bf16.gmra.mxu1 %vm466_vm1, %v1879_v37  ;;  %v6177_v3 = vadd.f32 %v2461_v2, %v2178_v52  ;;  %v1831_v37 = vld [vmem:[#allocation2 + $0x168] sm:$0xff]  ;;  %v1832_v2 = vld [vmem:[#allocation2 + $0x170] sm:$0xff] }
 0x1c9   :  { %v1881_v63 = vpack.c.bf16 %v1832_v2, %v1831_v37  ;;  %v2264_v6 = vld [vmem:[#allocation2 + $0x189] sm:$0xff] }
 0x1ca   :  { %4761 = vmatmul.msk.bf16.gmra.mxu3 %vm466_vm1, %v1880_v16 }
 0x1cb   :  { %v2469_v24 = vpop.f32.mrf.mxu0 }
 0x1cc   :  { %4729 = vmatmul.msk.bf16.gmra.mxu2 %vm466_vm1, %v1451_v31 }
 0x1cd   :  { %v2034_v15 = vpop.f32.mrf.mxu3  ;;  %v1240_v35 = vpop.f32.mrf.mxu1 }
 0x1ce   :  { %v2179_v13 = vadd.f32 %v2034_v15, %v1749_v22  ;;  %v1241_v51 = vadd.f32 %v1240_v35, %v6052_v56  ;;  %4795 = vmatmul.msk.bf16.gmra.mxu0 %vm466_vm1, %v5937_v11  ;;  %v2263_v56 = vld [vmem:[#allocation2 + $0x181] sm:$0xff]  ;;  %v1452_v11 = vpack.c.bf16 %v1404_v32, %v1403_v38 }
 0x1cf   :  { %v1609_v62 = vpop.f32.mrf.mxu2  ;;  %v1406_v38 = vld [vmem:[#allocation2 + $0x1ba] sm:$0xff] }
 0x1d0   :  { %v1750_v60 = vadd.f32 %v1606_v39, %v1241_v51  ;;  %v6184_v57 = vadd.f32 %v2464_v12, %v2179_v13  ;;  %v2312_v39 = vpack.c.bf16 %v2264_v6, %v2263_v56  ;;  %v2265_v6 = vld [vmem:[#allocation2 + $0x1c9] sm:$0xff] }
 0x1d3   :  { %v2471_v9 = vpop.f32.mrf.mxu0 }
 0x1d5   :  { %v2036_v23 = vpop.f32.mrf.mxu3  ;;  %v1243_v54 = vpop.f32.mrf.mxu1 }
 0x1d6   :  { %v2180_v25 = vadd.f32 %v2036_v23, %v1750_v60  ;;  %v1244_v36 = vadd.f32 %v1243_v54, %v6062_v47  ;;  %v1405_v54 = vld [vmem:[#allocation2 + $0x1b2] sm:$0xff] }
 0x1d7   :  { %v1611_v52 = vpop.f32.mrf.mxu2 }
 0x1d8   :  { %v1751_v22 = vadd.f32 %v1609_v62, %v1244_v36  ;;  %4696 = vmatmul.msk.bf16.gmra.mxu1 %vm466_vm1, %v1880_v16  ;;  %v6188_v12 = vadd.f32 %v2466_v5, %v2180_v25  ;;  %v1833_v16 = vld [vmem:[#allocation2 + $0x180] sm:$0xff]  ;;  %v1834_v5 = vld [vmem:[#allocation2 + $0x188] sm:$0xff] }
 0x1d9   :  { %v1882_v36 = vpack.c.bf16 %v1834_v5, %v1833_v16  ;;  %v1835_v16 = vld [vmem:[#allocation2 + $0x1c8] sm:$0xff]  ;;  %v1836_v5 = vld [vmem:[#allocation2 + $0x1d0] sm:$0xff] }
 0x1da   :  { %4762 = vmatmul.msk.bf16.gmra.mxu3 %vm466_vm1, %v1881_v63 }
 0x1db   :  { %v2474_v31 = vpop.f32.mrf.mxu0 }
 0x1dc   :  { %4730 = vmatmul.msk.bf16.gmra.mxu2 %vm466_vm1, %v1452_v11 }
 0x1dd   :  { %v2039_v15 = vpop.f32.mrf.mxu3  ;;  %v1245_v35 = vpop.f32.mrf.mxu1 }
 0x1de   :  { %v2181_v13 = vadd.f32 %v2039_v15, %v1751_v22  ;;  %v1246_v47 = vadd.f32 %v1245_v35, %v6073_v1  ;;  %4796 = vmatmul.msk.bf16.gmra.mxu0 %vm466_vm1, %v2312_v39  ;;  %v2266_v1 = vld [vmem:[#allocation2 + $0x1d1] sm:$0xff] }
 0x1df   :  { %v1614_v51 = vpop.f32.mrf.mxu2  ;;  %v2313_v11 = vpack.c.bf16 %v2266_v1, %v2265_v6 }
 0x1e0   :  { %v1752_v62 = vadd.f32 %v1611_v52, %v1246_v47  ;;  %v6194_v60 = vadd.f32 %v2469_v24, %v2181_v13  ;;  %v1453_v52 = vpack.c.bf16 %v1406_v38, %v1405_v54 }
 0x1e3   :  { %v2476_v37 = vpop.f32.mrf.mxu0 }
 0x1e5   :  { %v2041_v2 = vpop.f32.mrf.mxu3  ;;  %v1248_v23 = vpop.f32.mrf.mxu1 }
 0x1e6   :  { %v2182_v32 = vadd.f32 %v2041_v2, %v1752_v62  ;;  %v1249_v25 = vadd.f32 %v1248_v23, %v6083_v42 }
 0x1e7   :  { %v1616_v56 = vpop.f32.mrf.mxu2 }
 0x1e8   :  { %v1753_v22 = vadd.f32 %v1614_v51, %v1249_v25  ;;  %4697 = vmatmul.msk.bf16.gmra.mxu1 %vm466_vm1, %v1881_v63  ;;  %v6198_v24 = vadd.f32 %v2471_v9, %v2182_v32  ;;  %v673_v63 = vld [vmem:[#allocation2 + $0x1b0] sm:$0xff]  ;;  %v674_v9 = vld [vmem:[#allocation2 + $0x1b8] sm:$0xff] }
 0x1e9   :  { %v721_v23 = vpack.c.bf16 %v674_v9, %v673_v63  ;;  %v1407_v32 = vld [vmem:[#allocation2 + $0x1ca] sm:$0xff]  ;;  %v1408_v25 = vld [vmem:[#allocation2 + $0x1d2] sm:$0xff] }
 0x1ea   :  { %4763 = vmatmul.msk.bf16.gmra.mxu3 %vm466_vm1, %v1882_v36 }
 0x1eb   :  { %v2479_v39 = vpop.f32.mrf.mxu0 }
 0x1ec   :  { %4731 = vmatmul.msk.bf16.gmra.mxu2 %vm466_vm1, %v1453_v52  ;;  %v2268_v52 = vld [vmem:[#allocation2 + $0x1e9] sm:$0xff] }
 0x1ed   :  { %v2044_v15 = vpop.f32.mrf.mxu3  ;;  %v1250_v35 = vpop.f32.mrf.mxu1 }
 0x1ee   :  { %v2183_v13 = vadd.f32 %v2044_v15, %v1753_v22  ;;  %v1251_v42 = vadd.f32 %v1250_v35, %v6093_v7  ;;  %4797 = vmatmul.msk.bf16.gmra.mxu0 %vm466_vm1, %v2313_v11  ;;  %v1883_v7 = vpack.c.bf16 %v1836_v5, %v1835_v16  ;;  %v2267_v22 = vld [vmem:[#allocation2 + $0x1e1] sm:$0xff] }
 0x1ef   :  { %v1619_v47 = vpop.f32.mrf.mxu2  ;;  %v2314_v15 = vpack.c.bf16 %v2268_v52, %v2267_v22  ;;  %v1837_v16 = vld [vmem:[#allocation2 + $0x1e0] sm:$0xff] }
 0x1f0   :  { %v1754_v51 = vadd.f32 %v1616_v56, %v1251_v42  ;;  %v6204_v62 = vadd.f32 %v2474_v31, %v2183_v13  ;;  %v1454_v31 = vpack.c.bf16 %v1408_v25, %v1407_v32  ;;  %v1410_v32 = vld [vmem:[#allocation2 + $0x1ea] sm:$0xff]  ;;  %v2269_v52 = vld [vmem:[#allocation2 + $0x1f9] sm:$0xff] }
 0x1f3   :  { %v2481_v2 = vpop.f32.mrf.mxu0 }
 0x1f5   :  { %v2046_v54 = vpop.f32.mrf.mxu3  ;;  %v1253_v38 = vpop.f32.mrf.mxu1 }
 0x1f6   :  { %v2184_v36 = vadd.f32 %v2046_v54, %v1754_v51  ;;  %v1254_v6 = vadd.f32 %v1253_v38, %v5951_v26  ;;  %v1409_v38 = vld [vmem:[#allocation2 + $0x1e2] sm:$0xff] }
 0x1f7   :  { %v1621_v1 = vpop.f32.mrf.mxu2 }
 0x1f8   :  { %v1755_v56 = vadd.f32 %v1619_v47, %v1254_v6  ;;  %4698 = vmatmul.msk.bf16.gmra.mxu1 %vm466_vm1, %v721_v23  ;;  %v6208_v11 = vadd.f32 %v2476_v37, %v2184_v36  ;;  %v1838_v37 = vld [vmem:[#allocation2 + $0x1e8] sm:$0xff] }
 0x1f9   :  { %v1884_v6 = vpack.c.bf16 %v1838_v37, %v1837_v16 }
 0x1fa   :  { %4764 = vmatmul.msk.bf16.gmra.mxu3 %vm466_vm1, %v1883_v7 }
 0x1fb   :  { %v2484_v35 = vpop.f32.mrf.mxu0 }
 0x1fc   :  { %4732 = vmatmul.msk.bf16.gmra.mxu2 %vm466_vm1, %v1454_v31 }
 0x1fd   :  { %v2049_v13 = vpop.f32.mrf.mxu3  ;;  %v1255_v42 = vpop.f32.mrf.mxu1 }
 0x1fe   :  { %v2185_v51 = vadd.f32 %v2049_v13, %v1755_v56  ;;  %v1256_v26 = vadd.f32 %v1255_v42, %v5962_v33  ;;  %4798 = vmatmul.msk.bf16.gmra.mxu0 %vm466_vm1, %v2314_v15  ;;  %v2270_v33 = vld [vmem:[#allocation2 + $0x201] sm:$0xff] }
 0x1ff   :  { %v1624_v63 = vpop.f32.mrf.mxu2  ;;  %v2315_v31 = vpack.c.bf16 %v2270_v33, %v2269_v52  ;;  %v2271_v33 = vld [vmem:[#allocation2 + $0x211] sm:$0xff] }
 0x200   :  { %v1756_v47 = vadd.f32 %v1621_v1, %v1256_v26  ;;  %v6214_v9 = vadd.f32 %v2479_v39, %v2185_v51  ;;  %v1455_v1 = vpack.c.bf16 %v1410_v32, %v1409_v38  ;;  %v1412_v38 = vld [vmem:[#allocation2 + $0x202] sm:$0xff] }
 0x203   :  { %v2486_v5 = vpop.f32.mrf.mxu0 }
 0x205   :  { %v2051_v23 = vpop.f32.mrf.mxu3  ;;  %v1258_v54 = vpop.f32.mrf.mxu1 }
 0x206   :  { %v2186_v25 = vadd.f32 %v2051_v23, %v1756_v47  ;;  %v1259_v36 = vadd.f32 %v1258_v54, %v5972_v40  ;;  %v1411_v54 = vld [vmem:[#allocation2 + $0x1fa] sm:$0xff] }
 0x207   :  { %v1626_v22 = vpop.f32.mrf.mxu2 }
 0x208   :  { %v1757_v56 = vadd.f32 %v1624_v63, %v1259_v36  ;;  %4699 = vmatmul.msk.bf16.gmra.mxu1 %vm466_vm1, %v1883_v7  ;;  %v6218_v39 = vadd.f32 %v2481_v2, %v2186_v25  ;;  %v1839_v7 = vld [vmem:[#allocation2 + $0x1f8] sm:$0xff]  ;;  %v1840_v2 = vld [vmem:[#allocation2 + $0x200] sm:$0xff] }
 0x209   :  { %v1885_v36 = vpack.c.bf16 %v1840_v2, %v1839_v7 }
 0x20a   :  { %4765 = vmatmul.msk.bf16.gmra.mxu3 %vm466_vm1, %v1884_v6 }
 0x20b   :  { %v2489_v15 = vpop.f32.mrf.mxu0 }
 0x20c   :  { %4733 = vmatmul.msk.bf16.gmra.mxu2 %vm466_vm1, %v1455_v1 }
 0x20d   :  { %v2054_v13 = vpop.f32.mrf.mxu3  ;;  %v1260_v42 = vpop.f32.mrf.mxu1 }
 0x20e   :  { %v2187_v51 = vadd.f32 %v2054_v13, %v1757_v56  ;;  %v1261_v40 = vadd.f32 %v1260_v42, %v5983_v48  ;;  %4799 = vmatmul.msk.bf16.gmra.mxu0 %vm466_vm1, %v2315_v31  ;;  %v2272_v48 = vld [vmem:[#allocation2 + $0x219] sm:$0xff] }
 0x20f   :  { %v1629_v26 = vpop.f32.mrf.mxu2  ;;  %v2316_v1 = vpack.c.bf16 %v2272_v48, %v2271_v33  ;;  %v2273_v48 = vld [vmem:[#allocation2 + $0x229] sm:$0xff] }
 0x210   :  { %v1758_v63 = vadd.f32 %v1626_v22, %v1261_v40  ;;  %v6224_v47 = vadd.f32 %v2484_v35, %v2187_v51  ;;  %v1456_v22 = vpack.c.bf16 %v1412_v38, %v1411_v54  ;;  %v1414_v54 = vld [vmem:[#allocation2 + $0x21a] sm:$0xff] }
 0x213   :  { %v2491_v16 = vpop.f32.mrf.mxu0 }
 0x215   :  { %v2056_v37 = vpop.f32.mrf.mxu3  ;;  %v1263_v23 = vpop.f32.mrf.mxu1 }
 0x216   :  { %v2188_v32 = vadd.f32 %v2056_v37, %v1758_v63  ;;  %v1264_v25 = vadd.f32 %v1263_v23, %v5993_v55  ;;  %v1413_v23 = vld [vmem:[#allocation2 + $0x212] sm:$0xff] }
 0x217   :  { %v1631_v52 = vpop.f32.mrf.mxu2 }
 0x218   :  { %v1759_v56 = vadd.f32 %v1629_v26, %v1264_v25  ;;  %4700 = vmatmul.msk.bf16.gmra.mxu1 %vm466_vm1, %v1884_v6  ;;  %v6228_v35 = vadd.f32 %v2486_v5, %v2188_v32  ;;  %v1841_v6 = vld [vmem:[#allocation2 + $0x210] sm:$0xff]  ;;  %v1842_v5 = vld [vmem:[#allocation2 + $0x218] sm:$0xff] }
 0x219   :  { %v1886_v25 = vpack.c.bf16 %v1842_v5, %v1841_v6 }
 0x21a   :  { %4766 = vmatmul.msk.bf16.gmra.mxu3 %vm466_vm1, %v1885_v36 }
 0x21b   :  { %v2494_v31 = vpop.f32.mrf.mxu0 }
 0x21c   :  { %4734 = vmatmul.msk.bf16.gmra.mxu2 %vm466_vm1, %v1456_v22 }
 0x21d   :  { %v2059_v13 = vpop.f32.mrf.mxu3  ;;  %v1265_v42 = vpop.f32.mrf.mxu1 }
 0x21e   :  { %v2189_v51 = vadd.f32 %v2059_v13, %v1759_v56  ;;  %v1266_v55 = vadd.f32 %v1265_v42, %v6004_v0  ;;  %4800 = vmatmul.msk.bf16.gmra.mxu0 %vm466_vm1, %v2316_v1  ;;  %v2274_v0 = vld [vmem:[#allocation2 + $0x231] sm:$0xff] }
 0x21f   :  { %v1634_v40 = vpop.f32.mrf.mxu2  ;;  %v2317_v22 = vpack.c.bf16 %v2274_v0, %v2273_v48  ;;  %v2275_v0 = vld [vmem:[#allocation2 + $0x241] sm:$0xff] }
 0x220   :  { %v1760_v26 = vadd.f32 %v1631_v52, %v1266_v55  ;;  %v6234_v63 = vadd.f32 %v2489_v15, %v2189_v51  ;;  %v1457_v52 = vpack.c.bf16 %v1414_v54, %v1413_v23  ;;  %v1416_v23 = vld [vmem:[#allocation2 + $0x232] sm:$0xff] }
 0x223   :  { %v2496_v7 = vpop.f32.mrf.mxu0 }
 0x225   :  { %v2061_v2 = vpop.f32.mrf.mxu3  ;;  %v1268_v37 = vpop.f32.mrf.mxu1 }
 0x226   :  { %v2190_v38 = vadd.f32 %v2061_v2, %v1760_v26  ;;  %v1269_v32 = vadd.f32 %v1268_v37, %v6014_v8  ;;  %v1415_v37 = vld [vmem:[#allocation2 + $0x22a] sm:$0xff] }
 0x227   :  { %v1636_v33 = vpop.f32.mrf.mxu2 }
 0x228   :  { %v1761_v56 = vadd.f32 %v1634_v40, %v1269_v32  ;;  %4701 = vmatmul.msk.bf16.gmra.mxu1 %vm466_vm1, %v1885_v36  ;;  %v6238_v15 = vadd.f32 %v2491_v16, %v2190_v38  ;;  %v1843_v36 = vld [vmem:[#allocation2 + $0x228] sm:$0xff]  ;;  %v1844_v16 = vld [vmem:[#allocation2 + $0x230] sm:$0xff] }
 0x229   :  { %v1887_v32 = vpack.c.bf16 %v1844_v16, %v1843_v36 }
 0x22a   :  { %4767 = vmatmul.msk.bf16.gmra.mxu3 %vm466_vm1, %v1886_v25 }
 0x22b   :  { %v2499_v1 = vpop.f32.mrf.mxu0 }
 0x22c   :  { %4735 = vmatmul.msk.bf16.gmra.mxu2 %vm466_vm1, %v1457_v52 }
 0x22d   :  { %v2064_v13 = vpop.f32.mrf.mxu3  ;;  %v1270_v42 = vpop.f32.mrf.mxu1 }
 0x22e   :  { %v2191_v51 = vadd.f32 %v2064_v13, %v1761_v56  ;;  %v1271_v8 = vadd.f32 %v1270_v42, %v6025_v19  ;;  %4801 = vmatmul.msk.bf16.gmra.mxu0 %vm466_vm1, %v2317_v22  ;;  %v2276_v19 = vld [vmem:[#allocation2 + $0x249] sm:$0xff] }
 0x22f   :  { %v1639_v55 = vpop.f32.mrf.mxu2  ;;  %v2318_v52 = vpack.c.bf16 %v2276_v19, %v2275_v0  ;;  %v2277_v19 = vld [vmem:[#allocation2 + $0x259] sm:$0xff] }
 0x230   :  { %v1762_v40 = vadd.f32 %v1636_v33, %v1271_v8  ;;  %v6244_v26 = vadd.f32 %v2494_v31, %v2191_v51  ;;  %v1458_v33 = vpack.c.bf16 %v1416_v23, %v1415_v37  ;;  %v1418_v37 = vld [vmem:[#allocation2 + $0x24a] sm:$0xff] }
 0x233   :  { %v2501_v6 = vpop.f32.mrf.mxu0 }
 0x235   :  { %v2066_v5 = vpop.f32.mrf.mxu3  ;;  %v1273_v2 = vpop.f32.mrf.mxu1 }
 0x236   :  { %v2192_v54 = vadd.f32 %v2066_v5, %v1762_v40  ;;  %v1274_v38 = vadd.f32 %v1273_v2, %v6035_v29  ;;  %v1417_v2 = vld [vmem:[#allocation2 + $0x242] sm:$0xff] }
 0x237   :  { %v1641_v48 = vpop.f32.mrf.mxu2 }
 0x238   :  { %v1763_v56 = vadd.f32 %v1639_v55, %v1274_v38  ;;  %4702 = vmatmul.msk.bf16.gmra.mxu1 %vm466_vm1, %v1886_v25  ;;  %v6248_v31 = vadd.f32 %v2496_v7, %v2192_v54  ;;  %v1845_v25 = vld [vmem:[#allocation2 + $0x240] sm:$0xff]  ;;  %v1846_v7 = vld [vmem:[#allocation2 + $0x248] sm:$0xff] }
 0x239   :  { %v1888_v38 = vpack.c.bf16 %v1846_v7, %v1845_v25 }
 0x23a   :  { %4768 = vmatmul.msk.bf16.gmra.mxu3 %vm466_vm1, %v1887_v32 }
 0x23b   :  { %v2504_v22 = vpop.f32.mrf.mxu0 }
 0x23c   :  { %4736 = vmatmul.msk.bf16.gmra.mxu2 %vm466_vm1, %v1458_v33 }
 0x23d   :  { %v2069_v13 = vpop.f32.mrf.mxu3  ;;  %v1275_v42 = vpop.f32.mrf.mxu1 }
 0x23e   :  { %v2193_v51 = vadd.f32 %v2069_v13, %v1763_v56  ;;  %v1276_v29 = vadd.f32 %v1275_v42, %v6046_v43  ;;  %4802 = vmatmul.msk.bf16.gmra.mxu0 %vm466_vm1, %v2318_v52  ;;  %v2278_v43 = vld [vmem:[#allocation2 + $0x261] sm:$0xff] }
 0x23f   :  { %v1644_v8 = vpop.f32.mrf.mxu2  ;;  %v2319_v33 = vpack.c.bf16 %v2278_v43, %v2277_v19  ;;  %v2279_v43 = vld [vmem:[#allocation2 + $0x271] sm:$0xff] }
 0x240   :  { %v1764_v55 = vadd.f32 %v1641_v48, %v1276_v29  ;;  %v6254_v40 = vadd.f32 %v2499_v1, %v2193_v51  ;;  %v1459_v48 = vpack.c.bf16 %v1418_v37, %v1417_v2  ;;  %v1420_v2 = vld [vmem:[#allocation2 + $0x262] sm:$0xff] }
 0x243   :  { %v2506_v36 = vpop.f32.mrf.mxu0 }
 0x245   :  { %v2071_v16 = vpop.f32.mrf.mxu3  ;;  %v1278_v5 = vpop.f32.mrf.mxu1 }
 0x246   :  { %v2194_v23 = vadd.f32 %v2071_v16, %v1764_v55  ;;  %v1279_v54 = vadd.f32 %v1278_v5, %v6056_v58  ;;  %v1419_v5 = vld [vmem:[#allocation2 + $0x25a] sm:$0xff] }
 0x247   :  { %v1646_v0 = vpop.f32.mrf.mxu2 }
 0x248   :  { %v1765_v56 = vadd.f32 %v1644_v8, %v1279_v54  ;;  %4703 = vmatmul.msk.bf16.gmra.mxu1 %vm466_vm1, %v1887_v32  ;;  %v6258_v1 = vadd.f32 %v2501_v6, %v2194_v23  ;;  %v1847_v32 = vld [vmem:[#allocation2 + $0x258] sm:$0xff]  ;;  %v1848_v6 = vld [vmem:[#allocation2 + $0x260] sm:$0xff] }
 0x249   :  { %v1889_v54 = vpack.c.bf16 %v1848_v6, %v1847_v32 }
 0x24a   :  { %4769 = vmatmul.msk.bf16.gmra.mxu3 %vm466_vm1, %v1888_v38 }
 0x24b   :  { %v2509_v52 = vpop.f32.mrf.mxu0 }
 0x24c   :  { %4737 = vmatmul.msk.bf16.gmra.mxu2 %vm466_vm1, %v1459_v48 }
 0x24d   :  { %v2074_v13 = vpop.f32.mrf.mxu3  ;;  %v1280_v42 = vpop.f32.mrf.mxu1 }
 0x24e   :  { %v2195_v51 = vadd.f32 %v2074_v13, %v1765_v56  ;;  %v1281_v58 = vadd.f32 %v1280_v42, %v6067_v14  ;;  %4803 = vmatmul.msk.bf16.gmra.mxu0 %vm466_vm1, %v2319_v33  ;;  %v2280_v14 = vld [vmem:[#allocation2 + $0x279] sm:$0xff] }
 0x24f   :  { %v1649_v29 = vpop.f32.mrf.mxu2  ;;  %v2320_v48 = vpack.c.bf16 %v2280_v14, %v2279_v43  ;;  %v2281_v14 = vld [vmem:[#allocation2 + $0x289] sm:$0xff] }
 0x250   :  { %v1766_v8 = vadd.f32 %v1646_v0, %v1281_v58  ;;  %v6264_v55 = vadd.f32 %v2504_v22, %v2195_v51  ;;  %v1460_v0 = vpack.c.bf16 %v1420_v2, %v1419_v5  ;;  %v1422_v5 = vld [vmem:[#allocation2 + $0x27a] sm:$0xff] }
 0x253   :  { %v2511_v25 = vpop.f32.mrf.mxu0 }
 0x255   :  { %v2076_v7 = vpop.f32.mrf.mxu3  ;;  %v1283_v16 = vpop.f32.mrf.mxu1 }
 0x256   :  { %v2196_v37 = vadd.f32 %v2076_v7, %v1766_v8  ;;  %v1284_v23 = vadd.f32 %v1283_v16, %v6077_v41  ;;  %v1421_v16 = vld [vmem:[#allocation2 + $0x272] sm:$0xff] }
 0x257   :  { %v1651_v19 = vpop.f32.mrf.mxu2 }
 0x258   :  { %v1767_v56 = vadd.f32 %v1649_v29, %v1284_v23  ;;  %4704 = vmatmul.msk.bf16.gmra.mxu1 %vm466_vm1, %v1888_v38  ;;  %v6268_v22 = vadd.f32 %v2506_v36, %v2196_v37  ;;  %v1849_v38 = vld [vmem:[#allocation2 + $0x270] sm:$0xff]  ;;  %v1850_v36 = vld [vmem:[#allocation2 + $0x278] sm:$0xff] }
 0x259   :  { %v1890_v23 = vpack.c.bf16 %v1850_v36, %v1849_v38 }
 0x25a   :  { %4770 = vmatmul.msk.bf16.gmra.mxu3 %vm466_vm1, %v1889_v54 }
 0x25b   :  { %v2514_v33 = vpop.f32.mrf.mxu0 }
 0x25c   :  { %4738 = vmatmul.msk.bf16.gmra.mxu2 %vm466_vm1, %v1460_v0 }
 0x25d   :  { %v2079_v13 = vpop.f32.mrf.mxu3  ;;  %v1285_v42 = vpop.f32.mrf.mxu1 }
 0x25e   :  { %v2197_v51 = vadd.f32 %v2079_v13, %v1767_v56  ;;  %v1286_v41 = vadd.f32 %v1285_v42, %v6088_v28  ;;  %4804 = vmatmul.msk.bf16.gmra.mxu0 %vm466_vm1, %v2320_v48  ;;  %v2282_v28 = vld [vmem:[#allocation2 + $0x291] sm:$0xff] }
 0x25f   :  { %v1654_v58 = vpop.f32.mrf.mxu2  ;;  %v2321_v0 = vpack.c.bf16 %v2282_v28, %v2281_v14  ;;  %v2283_v28 = vld [vmem:[#allocation2 + $0x2a1] sm:$0xff] }
 0x260   :  { %v1768_v29 = vadd.f32 %v1651_v19, %v1286_v41  ;;  %v6274_v8 = vadd.f32 %v2509_v52, %v2197_v51  ;;  %v1461_v19 = vpack.c.bf16 %v1422_v5, %v1421_v16  ;;  %v1424_v16 = vld [vmem:[#allocation2 + $0x292] sm:$0xff] }
 0x263   :  { %v2516_v32 = vpop.f32.mrf.mxu0 }
 0x265   :  { %v2081_v6 = vpop.f32.mrf.mxu3  ;;  %v1288_v7 = vpop.f32.mrf.mxu1 }
 0x266   :  { %v2198_v2 = vadd.f32 %v2081_v6, %v1768_v29  ;;  %v1289_v37 = vadd.f32 %v1288_v7, %v6097_v50  ;;  %v1423_v7 = vld [vmem:[#allocation2 + $0x28a] sm:$0xff] }
 0x267   :  { %v1656_v43 = vpop.f32.mrf.mxu2 }
 0x268   :  { %v1769_v56 = vadd.f32 %v1654_v58, %v1289_v37  ;;  %4705 = vmatmul.msk.bf16.gmra.mxu1 %vm466_vm1, %v1889_v54  ;;  %v6278_v52 = vadd.f32 %v2511_v25, %v2198_v2  ;;  %v1851_v54 = vld [vmem:[#allocation2 + $0x288] sm:$0xff]  ;;  %v1852_v25 = vld [vmem:[#allocation2 + $0x290] sm:$0xff] }
 0x269   :  { %v1891_v37 = vpack.c.bf16 %v1852_v25, %v1851_v54 }
 0x26a   :  { %4771 = vmatmul.msk.bf16.gmra.mxu3 %vm466_vm1, %v1890_v23 }
 0x26b   :  { %v2519_v48 = vpop.f32.mrf.mxu0 }
 0x26c   :  { %4739 = vmatmul.msk.bf16.gmra.mxu2 %vm466_vm1, %v1461_v19 }
 0x26d   :  { %v2084_v13 = vpop.f32.mrf.mxu3  ;;  %v1290_v42 = vpop.f32.mrf.mxu1 }
 0x26e   :  { %v2199_v51 = vadd.f32 %v2084_v13, %v1769_v56  ;;  %v1291_v50 = vadd.f32 %v1290_v42, %v6106_v4  ;;  %4805 = vmatmul.msk.bf16.gmra.mxu0 %vm466_vm1, %v2321_v0  ;;  %v2284_v4 = vld [vmem:[#allocation2 + $0x2a9] sm:$0xff] }
 0x26f   :  { %v1659_v41 = vpop.f32.mrf.mxu2  ;;  %v2322_v19 = vpack.c.bf16 %v2284_v4, %v2283_v28  ;;  %v2285_v4 = vld [vmem:[#allocation2 + $0x2b9] sm:$0xff] }
 0x270   :  { %v1770_v58 = vadd.f32 %v1656_v43, %v1291_v50  ;;  %v6284_v29 = vadd.f32 %v2514_v33, %v2199_v51  ;;  %v1462_v43 = vpack.c.bf16 %v1424_v16, %v1423_v7  ;;  %v1426_v7 = vld [vmem:[#allocation2 + $0x2aa] sm:$0xff] }
 0x273   :  { %v2521_v38 = vpop.f32.mrf.mxu0 }
 0x275   :  { %v2086_v36 = vpop.f32.mrf.mxu3  ;;  %v1293_v6 = vpop.f32.mrf.mxu1 }
 0x276   :  { %v2200_v5 = vadd.f32 %v2086_v36, %v1770_v58  ;;  %v1294_v2 = vadd.f32 %v1293_v6, %v5944_v18  ;;  %v1425_v6 = vld [vmem:[#allocation2 + $0x2a2] sm:$0xff] }
 0x277   :  { %v1661_v14 = vpop.f32.mrf.mxu2 }
 0x278   :  { %v1771_v56 = vadd.f32 %v1659_v41, %v1294_v2  ;;  %4706 = vmatmul.msk.bf16.gmra.mxu1 %vm466_vm1, %v1890_v23  ;;  %v6288_v33 = vadd.f32 %v2516_v32, %v2200_v5  ;;  %v1853_v23 = vld [vmem:[#allocation2 + $0x2a0] sm:$0xff]  ;;  %v1854_v32 = vld [vmem:[#allocation2 + $0x2a8] sm:$0xff] }
 0x279   :  { %v1892_v2 = vpack.c.bf16 %v1854_v32, %v1853_v23 }
 0x27a   :  { %4772 = vmatmul.msk.bf16.gmra.mxu3 %vm466_vm1, %v1891_v37 }
 0x27b   :  { %v2524_v0 = vpop.f32.mrf.mxu0 }
 0x27c   :  { %4740 = vmatmul.msk.bf16.gmra.mxu2 %vm466_vm1, %v1462_v43 }
 0x27d   :  { %v2089_v13 = vpop.f32.mrf.mxu3  ;;  %v1295_v42 = vpop.f32.mrf.mxu1 }
 0x27e   :  { %v2201_v51 = vadd.f32 %v2089_v13, %v1771_v56  ;;  %v1296_v18 = vadd.f32 %v1295_v42, %v5953_v27  ;;  %4806 = vmatmul.msk.bf16.gmra.mxu0 %vm466_vm1, %v2322_v19  ;;  %v2286_v27 = vld [vmem:[#allocation2 + $0x2c1] sm:$0xff] }
 0x27f   :  { %v1664_v50 = vpop.f32.mrf.mxu2  ;;  %v2323_v43 = vpack.c.bf16 %v2286_v27, %v2285_v4  ;;  %v2287_v27 = vld [vmem:[#allocation2 + $0x2d1] sm:$0xff] }
 0x280   :  { %v1772_v41 = vadd.f32 %v1661_v14, %v1296_v18  ;;  %v6294_v58 = vadd.f32 %v2519_v48, %v2201_v51  ;;  %v1463_v14 = vpack.c.bf16 %v1426_v7, %v1425_v6  ;;  %v1428_v6 = vld [vmem:[#allocation2 + $0x2c2] sm:$0xff] }
 0x283   :  { %v2526_v54 = vpop.f32.mrf.mxu0 }
 0x285   :  { %v2091_v25 = vpop.f32.mrf.mxu3  ;;  %v1298_v36 = vpop.f32.mrf.mxu1 }
 0x286   :  { %v2202_v16 = vadd.f32 %v2091_v25, %v1772_v41  ;;  %v1299_v5 = vadd.f32 %v1298_v36, %v5966_v34  ;;  %v1427_v36 = vld [vmem:[#allocation2 + $0x2ba] sm:$0xff] }
 0x287   :  { %v1666_v28 = vpop.f32.mrf.mxu2 }
 0x288   :  { %v1773_v56 = vadd.f32 %v1664_v50, %v1299_v5  ;;  %4707 = vmatmul.msk.bf16.gmra.mxu1 %vm466_vm1, %v1891_v37  ;;  %v6298_v48 = vadd.f32 %v2521_v38, %v2202_v16  ;;  %v1855_v37 = vld [vmem:[#allocation2 + $0x2b8] sm:$0xff]  ;;  %v1856_v38 = vld [vmem:[#allocation2 + $0x2c0] sm:$0xff] }
 0x289   :  { %v1893_v5 = vpack.c.bf16 %v1856_v38, %v1855_v37 }
 0x28a   :  { %4773 = vmatmul.msk.bf16.gmra.mxu3 %vm466_vm1, %v1892_v2 }
 0x28b   :  { %v2529_v19 = vpop.f32.mrf.mxu0 }
 0x28c   :  { %4741 = vmatmul.msk.bf16.gmra.mxu2 %vm466_vm1, %v1463_v14 }
 0x28d   :  { %v2094_v13 = vpop.f32.mrf.mxu3  ;;  %v1300_v42 = vpop.f32.mrf.mxu1 }
 0x28e   :  { %v2203_v51 = vadd.f32 %v2094_v13, %v1773_v56  ;;  %v1301_v34 = vadd.f32 %v1300_v42, %v5974_v44  ;;  %4807 = vmatmul.msk.bf16.gmra.mxu0 %vm466_vm1, %v2323_v43  ;;  %v2288_v44 = vld [vmem:[#allocation2 + $0x2d9] sm:$0xff] }
 0x28f   :  { %v1669_v18 = vpop.f32.mrf.mxu2  ;;  %v2324_v14 = vpack.c.bf16 %v2288_v44, %v2287_v27 }
 0x290   :  { %v1774_v50 = vadd.f32 %v1666_v28, %v1301_v34  ;;  %v6304_v41 = vadd.f32 %v2524_v0, %v2203_v51  ;;  %v1464_v28 = vpack.c.bf16 %v1428_v6, %v1427_v36  ;;  %v1430_v36 = vld [vmem:[#allocation2 + $0x2da] sm:$0xff] }
 0x293   :  { %v2531_v23 = vpop.f32.mrf.mxu0 }
 0x295   :  { %v2096_v32 = vpop.f32.mrf.mxu3  ;;  %v1303_v25 = vpop.f32.mrf.mxu1 }
 0x296   :  { %v2204_v7 = vadd.f32 %v2096_v32, %v1774_v50  ;;  %v1304_v16 = vadd.f32 %v1303_v25, %v5987_v49  ;;  %v1429_v25 = vld [vmem:[#allocation2 + $0x2d2] sm:$0xff] }
 0x297   :  { %v1671_v4 = vpop.f32.mrf.mxu2 }
 0x298   :  { %v1775_v56 = vadd.f32 %v1669_v18, %v1304_v16  ;;  %4708 = vmatmul.msk.bf16.gmra.mxu1 %vm466_vm1, %v1892_v2  ;;  %v6308_v0 = vadd.f32 %v2526_v54, %v2204_v7  ;;  %v1857_v2 = vld [vmem:[#allocation2 + $0x2d0] sm:$0xff]  ;;  %v1858_v54 = vld [vmem:[#allocation2 + $0x2d8] sm:$0xff]  ;;  %v7127_v7 = vld [vmem:[#allocation8_spill] sm:$0xff] }
 0x299   :  { %v1894_v27 = vpack.c.bf16 %v1858_v54, %v1857_v2 }
 0x29a   :  { %4774 = vmatmul.msk.bf16.gmra.mxu3 %vm466_vm1, %v1893_v5 }
 0x29b   :  { %v2534_v43 = vpop.f32.mrf.mxu0 }
 0x29c   :  { %4742 = vmatmul.msk.bf16.gmra.mxu2 %vm466_vm1, %v1464_v28 }
 0x29d   :  { %v2099_v13 = vpop.f32.mrf.mxu3  ;;  %v1305_v42 = vpop.f32.mrf.mxu1 }
 0x29e   :  { %v2205_v51 = vadd.f32 %v2099_v13, %v1775_v56  ;;  %v1306_v49 = vadd.f32 %v1305_v42, %v5995_v59  ;;  %4808 = vmatmul.msk.bf16.gmra.mxu0 %vm466_vm1, %v2324_v14  ;;  %v2289_v56 = vld [vmem:[#allocation2 + $0x2e9] sm:$0xff]  ;;  %v2290_v59 = vld [vmem:[#allocation2 + $0x2f1] sm:$0xff] }
 0x29f   :  { %v1674_v34 = vpop.f32.mrf.mxu2  ;;  %v2325_v14 = vpack.c.bf16 %v2290_v59, %v2289_v56  ;;  %v7131_v56 = vld [vmem:[#allocation12_spill] sm:$0xff] }
 0x2a0   :  { %v1776_v18 = vadd.f32 %v1671_v4, %v1306_v49  ;;  %v6314_v50 = vadd.f32 %v2529_v19, %v2205_v51  ;;  %v1465_v4 = vpack.c.bf16 %v1430_v36, %v1429_v25 }
 0x2a3   :  { %v2536_v37 = vpop.f32.mrf.mxu0 }
 0x2a5   :  { %v2101_v38 = vpop.f32.mrf.mxu3  ;;  %v1308_v32 = vpop.f32.mrf.mxu1 }
 0x2a6   :  { %v2206_v6 = vadd.f32 %v2101_v38, %v1776_v18  ;;  %v1309_v16 = vadd.f32 %v1308_v32, %v7127_v7  ;;  %v7129_v18 = vld [vmem:[#allocation10_spill] sm:$0xff] }
 0x2a7   :  { %v1676_v44 = vpop.f32.mrf.mxu2  ;;  %v1432_v7 = vld [vmem:[#allocation2 + $0x2f2] sm:$0xff] }
 0x2a8   :  { %v1777_v28 = vadd.f32 %v1674_v34, %v1309_v16  ;;  %4709 = vmatmul.msk.bf16.gmra.mxu1 %vm466_vm1, %v1893_v5  ;;  %v6318_v19 = vadd.f32 %v2531_v23, %v2206_v6  ;;  %v1859_v5 = vld [vmem:[#allocation2 + $0x2e8] sm:$0xff]  ;;  %v1860_v23 = vld [vmem:[#allocation2 + $0x2f0] sm:$0xff] }
 0x2a9   :  { %v1431_v6 = vld [vmem:[#allocation2 + $0x2ea] sm:$0xff] }
 0x2aa   :  { %7128 = vst [vmem:[#allocation8_spill] sm:$0xff] %v6318_v19  ;;  %4775 = vmatmul.msk.bf16.gmra.mxu3 %vm466_vm1, %v1894_v27  ;;  %v3957_v19 = vld [vmem:[#allocation2 + $0x52] sm:$0xff] }
 0x2ab   :  { %v2539_v13 = vpop.f32.mrf.mxu0 }
 0x2ac   :  { %4743 = vmatmul.msk.bf16.gmra.mxu2 %vm466_vm1, %v1465_v4  ;;  %v1895_v4 = vpack.c.bf16 %v1860_v23, %v1859_v5 }
 0x2ad   :  { %v2104_v42 = vpop.f32.mrf.mxu3  ;;  %v1310_v51 = vpop.f32.mrf.mxu1 }
 0x2ae   :  { %v2207_v49 = vadd.f32 %v2104_v42, %v1777_v28  ;;  %v1311_v2 = vadd.f32 %v1310_v51, %v7129_v18  ;;  %4809 = vmatmul.msk.bf16.gmra.mxu0 %vm466_vm1, %v2325_v14  ;;  %v2291_v42 = vld [vmem:[#allocation2 + $0x301] sm:$0xff]  ;;  %v2292_v51 = vld [vmem:[#allocation2 + $0x309] sm:$0xff] }
 0x2af   :  { %v1679_v54 = vpop.f32.mrf.mxu2  ;;  %v2326_v14 = vpack.c.bf16 %v2292_v51, %v2291_v42 }
 0x2b0   :  { %v1778_v34 = vadd.f32 %v1676_v44, %v1311_v2  ;;  %v6324_v38 = vadd.f32 %v2534_v43, %v2207_v49  ;;  %v1466_v44 = vpack.c.bf16 %v1432_v7, %v1431_v6  ;;  %v80_v2 = vld [vmem:[%s7031_s1 + $0x1f0] sm:$0xff] }
 0x2b2   :  { %7130 = vst [vmem:[#allocation10_spill] sm:$0xff] %v6324_v38 }
 0x2b3   :  { %v2541_v32 = vpop.f32.mrf.mxu0 }
 0x2b5   :  { %v2106_v25 = vpop.f32.mrf.mxu3  ;;  %v1313_v36 = vpop.f32.mrf.mxu1 }
 0x2b6   :  { %v2208_v16 = vadd.f32 %v2106_v25, %v1778_v34  ;;  %v1314_v59 = vadd.f32 %v1313_v36, %v7131_v56  ;;  %v81_v34 = vld [vmem:[%s7031_s1 + $0x1f8] sm:$0xff] }
 0x2b7   :  { %v1681_v28 = vpop.f32.mrf.mxu2  ;;  %v4648_v5 = vxor.u32 2147483648, %v81_v34  ;;  %v1861_v34 = vld [vmem:[#allocation2 + $0x300] sm:$0xff] }
 0x2b8   :  { %v1779_v18 = vadd.f32 %v1679_v54, %v1314_v59  ;;  %4710 = vmatmul.msk.bf16.gmra.mxu1 %vm466_vm1, %v1894_v27  ;;  %v6328_v43 = vadd.f32 %v2536_v37, %v2208_v16  ;;  %v4647_v54 = vxor.u32 2147483648, %v80_v2  ;;  %v336_v37 = vld [vmem:[%s7032_s0 + $0x1f0] sm:$0xff]  ;;  %v337_v27 = vld [vmem:[%s7032_s0 + $0x1f8] sm:$0xff] }
 0x2b9   :  { %v400_v36 = vmul.f32 1.25, %v336_v37  ;;  %v401_v6 = vmul.f32 1.25, %v337_v27  ;;  %v7133_v16 = vld [vmem:[#allocation14_spill] sm:$0xff]  ;;  %vm273_vm9 = vcmp.lt.s32.totalorder %v4648_v5, 1288490188  ;;  %v1862_v37 = vld [vmem:[#allocation2 + $0x308] sm:$0xff] }
 0x2ba   :  { %7132 = vst [vmem:[#allocation12_spill] sm:$0xff] %v6328_v43  ;;  %4776 = vmatmul.msk.bf16.gmra.mxu3 %vm466_vm1, %v1895_v4  ;;  %vm270_vm8 = vcmp.lt.s32.totalorder %v4647_v54, 1288490188  ;;  %v7135_v54 = vld [vmem:[#allocation16_spill] sm:$0xff]  ;;  %v1896_v43 = vpack.c.bf16 %v1862_v37, %v1861_v34 }
 0x2bb   :  { %v2544_v49 = vpop.f32.mrf.mxu0  ;;  %v464_v42 = vsel %vm270_vm8, %v400_v36, 0.0  ;;  %v465_v51 = vsel %vm273_vm9, %v401_v6, 0.0  ;;  %v2293_v6 = vld [vmem:[#allocation2 + $0x319] sm:$0xff] }
 0x2bc   :  { %4744 = vmatmul.msk.bf16.gmra.mxu2 %vm466_vm1, %v1466_v44  ;;  %639 = vst.msk [vmem:[#allocation2 + $0x331] sm:$0xff] %vm466_vm1, %v464_v42 }
 0x2bd   :  { %v2109_v23 = vpop.f32.mrf.mxu3  ;;  %v1315_v25 = vpop.f32.mrf.mxu1  ;;  %640 = vst.msk [vmem:[#allocation2 + $0x339] sm:$0xff] %vm466_vm1, %v465_v51 }
 0x2be   :  { %v2209_v7 = vadd.f32 %v2109_v23, %v1779_v18  ;;  %v1316_v56 = vadd.f32 %v1315_v25, %v7133_v16  ;;  %4810 = vmatmul.msk.bf16.gmra.mxu0 %vm466_vm1, %v2326_v14  ;;  %v1433_v25 = vld [vmem:[#allocation2 + $0x302] sm:$0xff]  ;;  %v1434_v16 = vld [vmem:[#allocation2 + $0x30a] sm:$0xff] }
 0x2bf   :  { %v1684_v59 = vpop.f32.mrf.mxu2 }
 0x2c0   :  { %v1780_v44 = vadd.f32 %v1681_v28, %v1316_v56  ;;  %v6347_v2 = vadd.f32 %v2539_v13, %v2209_v7  ;;  %v2294_v28 = vld [vmem:[#allocation2 + $0x321] sm:$0xff]  ;;  %v1467_v13 = vpack.c.bf16 %v1434_v16, %v1433_v25 }
 0x2c1   :  { %v2327_v42 = vpack.c.bf16 %v2294_v28, %v2293_v6  ;;  %v1436_v6 = vld [vmem:[#allocation2 + $0x322] sm:$0xff] }
 0x2c2   :  { %7134 = vst [vmem:[#allocation14_spill] sm:$0xff] %v6347_v2 }
 0x2c3   :  { %v2546_v27 = vpop.f32.mrf.mxu0 }
 0x2c5   :  { %v2111_v18 = vpop.f32.mrf.mxu3  ;;  %v1318_v23 = vpop.f32.mrf.mxu1 }
 0x2c6   :  { %v2210_v14 = vadd.f32 %v2111_v18, %v1780_v44  ;;  %v1319_v5 = vadd.f32 %v1318_v23, %v7135_v54  ;;  %v7137_v23 = vld [vmem:[#allocation18_spill] sm:$0xff] }
 0x2c7   :  { %v1686_v36 = vpop.f32.mrf.mxu2 }
 0x2c8   :  { %v1781_v56 = vadd.f32 %v1684_v59, %v1319_v5  ;;  %4711 = vmatmul.msk.bf16.gmra.mxu1 %vm466_vm1, %v1895_v4  ;;  %v6352_v7 = vadd.f32 %v2541_v32, %v2210_v14  ;;  %v1863_v4 = vld [vmem:[#allocation2 + $0x318] sm:$0xff]  ;;  %v1864_v32 = vld [vmem:[#allocation2 + $0x320] sm:$0xff] }
 0x2c9   :  { %v1435_v5 = vld [vmem:[#allocation2 + $0x31a] sm:$0xff]  ;;  %v1897_v38 = vpack.c.bf16 %v1864_v32, %v1863_v4 }
 0x2ca   :  { %7136 = vst [vmem:[#allocation16_spill] sm:$0xff] %v6352_v7  ;;  %4777 = vmatmul.msk.bf16.gmra.mxu3 %vm466_vm1, %v1896_v43 }
 0x2cb   :  { %v2549_v51 = vpop.f32.mrf.mxu0 }
 0x2cc   :  { %4745 = vmatmul.msk.bf16.gmra.mxu2 %vm466_vm1, %v1467_v13  ;;  %v7139_v13 = vld [vmem:[#allocation20_spill] sm:$0xff] }
 0x2cd   :  { %v2114_v2 = vpop.f32.mrf.mxu3  ;;  %v1320_v44 = vpop.f32.mrf.mxu1 }
 0x2ce   :  { %v2211_v18 = vadd.f32 %v2114_v2, %v1781_v56  ;;  %v1321_v34 = vadd.f32 %v1320_v44, %v7137_v23  ;;  %4811 = vmatmul.msk.bf16.gmra.mxu0 %vm466_vm1, %v2327_v42  ;;  %v2295_v56 = vld [vmem:[#allocation2 + $0x331] sm:$0xff]  ;;  %v2296_v44 = vld [vmem:[#allocation2 + $0x339] sm:$0xff] }
 0x2cf   :  { %v1689_v37 = vpop.f32.mrf.mxu2  ;;  %v2328_v42 = vpack.c.bf16 %v2296_v44, %v2295_v56  ;;  %v3095_v56 = vld [vmem:[#allocation2 + $0x38] sm:$0xff] }
 0x2d0   :  { %v1782_v59 = vadd.f32 %v1686_v36, %v1321_v34  ;;  %v6358_v54 = vadd.f32 %v2544_v49, %v2211_v18  ;;  %v1468_v36 = vpack.c.bf16 %v1436_v6, %v1435_v5 }
 0x2d2   :  { %7138 = vst [vmem:[#allocation18_spill] sm:$0xff] %v6358_v54 }
 0x2d3   :  { %v2551_v25 = vpop.f32.mrf.mxu0 }
 0x2d5   :  { %v2116_v16 = vpop.f32.mrf.mxu3  ;;  %v1323_v14 = vpop.f32.mrf.mxu1 }
 0x2d6   :  { %v2212_v28 = vadd.f32 %v2116_v16, %v1782_v59  ;;  %v1324_v7 = vadd.f32 %v1323_v14, %v7139_v13  ;;  %v7141_v14 = vld [vmem:[#allocation22_spill] sm:$0xff]  ;;  %v3094_v13 = vld [vmem:[#allocation2 + $0x30] sm:$0xff] }
 0x2d7   :  { %v1691_v2 = vpop.f32.mrf.mxu2 }
 0x2d8   :  { %v1783_v23 = vadd.f32 %v1689_v37, %v1324_v7  ;;  %4712 = vmatmul.msk.bf16.gmra.mxu1 %vm466_vm1, %v1896_v43  ;;  %v6362_v49 = vadd.f32 %v2546_v27, %v2212_v28  ;;  %v1865_v43 = vld [vmem:[#allocation2 + $0x330] sm:$0xff]  ;;  %v1866_v27 = vld [vmem:[#allocation2 + $0x338] sm:$0xff] }
 0x2d9   :  { %v1898_v54 = vpack.c.bf16 %v1866_v27, %v1865_v43 }
 0x2da   :  { %7140 = vst [vmem:[#allocation20_spill] sm:$0xff] %v6362_v49  ;;  %4778 = vmatmul.msk.bf16.gmra.mxu3 %vm466_vm1, %v1897_v38 }
 0x2db   :  { %v2554_v18 = vpop.f32.mrf.mxu0 }
 0x2dc   :  { %4746 = vmatmul.msk.bf16.gmra.mxu2 %vm466_vm1, %v1468_v36  ;;  %v7143_v36 = vld [vmem:[#allocation24_spill] sm:$0xff] }
 0x2dd   :  { %v2119_v34 = vpop.f32.mrf.mxu3  ;;  %v1325_v59 = vpop.f32.mrf.mxu1 }
 0x2de   :  { %v2213_v16 = vadd.f32 %v2119_v34, %v1783_v23  ;;  %v1326_v4 = vadd.f32 %v1325_v59, %v7141_v14  ;;  %4812 = vmatmul.msk.bf16.gmra.mxu0 %vm466_vm1, %v2328_v42  ;;  %v3954_v34 = vld [vmem:[#allocation2 + $0x32] sm:$0xff]  ;;  %v3955_v59 = vld [vmem:[#allocation2 + $0x3a] sm:$0xff] }
 0x2df   :  { %v1694_v32 = vpop.f32.mrf.mxu2  ;;  %v4018_v42 = vpack.c.bf16 %v3955_v59, %v3954_v34  ;;  %v3096_v59 = vld [vmem:[#allocation2 + $0x48] sm:$0xff] }
 0x2e0   :  { %v1784_v7 = vadd.f32 %v1691_v2, %v1326_v4  ;;  %v6368_v37 = vadd.f32 %v2549_v51, %v2213_v16  ;;  %v3158_v2 = vpack.c.bf16 %v3095_v56, %v3094_v13  ;;  %v3524_v13 = vld [vmem:[#allocation2 + $0x31] sm:$0xff]  ;;  %v3525_v56 = vld [vmem:[#allocation2 + $0x39] sm:$0xff] }
 0x2e2   :  { %7142 = vst [vmem:[#allocation22_spill] sm:$0xff] %v6368_v37  ;;  %v3956_v37 = vld [vmem:[#allocation2 + $0x4a] sm:$0xff] }
 0x2e3   :  { %v2556_v5 = vpop.f32.mrf.mxu0 }
 0x2e5   :  { %v2121_v6 = vpop.f32.mrf.mxu3  ;;  %v1328_v28 = vpop.f32.mrf.mxu1 }
 0x2e6   :  { %v2214_v44 = vadd.f32 %v2121_v6, %v1784_v7  ;;  %v1329_v49 = vadd.f32 %v1328_v28, %v7143_v36  ;;  %v7145_v28 = vld [vmem:[#allocation26_spill] sm:$0xff] }
 0x2e7   :  { %v1696_v23 = vpop.f32.mrf.mxu2 }
 0x2e8   :  { %v1785_v14 = vadd.f32 %v1694_v32, %v1329_v49  ;;  %4713 = vmatmul.msk.bf16.gmra.mxu1 %vm466_vm1, %v1897_v38  ;;  %v6372_v51 = vadd.f32 %v2551_v25, %v2214_v44  ;;  %v2663_v38 = vld [vmem:[#allocation2 + $0x1a] sm:$0xff]  ;;  %v2664_v25 = vld [vmem:[#allocation2 + $0x22] sm:$0xff] }
 0x2e9   :  { %v2727_v44 = vpack.c.bf16 %v2664_v25, %v2663_v38 }
 0x2ea   :  { %7144 = vst [vmem:[#allocation24_spill] sm:$0xff] %v6372_v51  ;;  %4779 = vmatmul.msk.bf16.gmra.mxu3 %vm466_vm1, %v1898_v54 }
 0x2eb   :  { %v2559_v16 = vpop.f32.mrf.mxu0 }
 0x2ec   :  { %4847 = vmatmul.msk.bf16.vlgmr.msra.gmra.mxu2 %vm466_vm1, %v3158_v2  ;;  %v3097_v2 = vld [vmem:[#allocation2 + $0x50] sm:$0xff] }
 0x2ed   :  { %v2124_v4 = vpop.f32.mrf.mxu3  ;;  %v1330_v7 = vpop.f32.mrf.mxu1 }
 0x2ee   :  { %v2215_v6 = vadd.f32 %v2124_v4, %v1785_v14  ;;  %v1331_v43 = vadd.f32 %v1330_v7, %v7145_v28  ;;  %4913 = vmatmul.msk.bf16.vlgmr.msra.gmra.mxu0 %vm466_vm1, %v4018_v42  ;;  %v7146_v14 = vld [vmem:[#allocation3_spill] sm:$0xff]  ;;  %v3588_v7 = vpack.c.bf16 %v3525_v56, %v3524_v13 }
 0x2ef   :  { %v1699_v27 = vpop.f32.mrf.mxu2 }
 0x2f0   :  { %v1786_v49 = vadd.f32 %v1696_v23, %v1331_v43  ;;  %v6378_v32 = vadd.f32 %v2554_v18, %v2215_v6  ;;  %v3159_v18 = vpack.c.bf16 %v3097_v2, %v3096_v59  ;;  %v4019_v43 = vpack.c.bf16 %v3957_v19, %v3956_v37  ;;  %v3098_v19 = vld [vmem:[#allocation2 + $0x60] sm:$0xff]  ;;  %v3099_v37 = vld [vmem:[#allocation2 + $0x68] sm:$0xff] }
 0x2f3   :  { %v2561_v54 = vpop.f32.mrf.mxu0 }
 0x2f5   :  { %v2126_v36 = vpop.f32.mrf.mxu3  ;;  %v1333_v34 = vpop.f32.mrf.mxu1 }
 0x2f6   :  { %v2216_v51 = vadd.f32 %v2126_v36, %v1786_v49  ;;  %v1334_v4 = vadd.f32 %v1333_v34, %v7146_v14  ;;  %v7148_v34 = vld [vmem:[#allocation4_spill] sm:$0xff] }
 0x2f7   :  { %v1701_v28 = vpop.f32.mrf.mxu2 }
 0x2f8   :  { %v1787_v23 = vadd.f32 %v1699_v27, %v1334_v4  ;;  %4814 = vmatmul.msk.bf16.vlgmr.msra.gmra.mxu1 %vm466_vm1, %v2727_v44  ;;  %v6382_v6 = vadd.f32 %v2556_v5, %v2216_v51  ;;  %v3526_v44 = vld [vmem:[#allocation2 + $0x49] sm:$0xff]  ;;  %v3527_v5 = vld [vmem:[#allocation2 + $0x51] sm:$0xff] }
 0x2fa   :  { %7147 = vst [vmem:[#allocation26_spill] sm:$0xff] %v6382_v6  ;;  %4880 = vmatmul.msk.bf16.vlgmr.msra.gmra.mxu3 %vm466_vm1, %v3588_v7  ;;  %v7150_v7 = vld [vmem:[#allocation5_spill] sm:$0xff]  ;;  %v3589_v6 = vpack.c.bf16 %v3527_v5, %v3526_v44 }
 0x2fb   :  { %v2564_v38 = vpop.f32.mrf.mxu0 }
 0x2fc   :  { %4848 = vmatmul.msk.bf16.gmra.mxu2 %vm466_vm1, %v3159_v18 }
 0x2fd   :  { %v2129_v25 = vpop.f32.mrf.mxu3  ;;  %v1335_v49 = vpop.f32.mrf.mxu1 }
 0x2fe   :  { %v2217_v36 = vadd.f32 %v2129_v25, %v1787_v23  ;;  %v1336_v13 = vadd.f32 %v1335_v49, %v7148_v34  ;;  %4914 = vmatmul.msk.bf16.gmra.mxu0 %vm466_vm1, %v4019_v43  ;;  %v3958_v25 = vld [vmem:[#allocation2 + $0x62] sm:$0xff]  ;;  %v3959_v49 = vld [vmem:[#allocation2 + $0x6a] sm:$0xff] }
 0x2ff   :  { %v1704_v56 = vpop.f32.mrf.mxu2 }
 0x300   :  { %v1788_v27 = vadd.f32 %v1701_v28, %v1336_v13  ;;  %v6388_v14 = vadd.f32 %v2559_v16, %v2217_v36  ;;  %v3160_v28 = vpack.c.bf16 %v3099_v37, %v3098_v19  ;;  %v4020_v36 = vpack.c.bf16 %v3959_v49, %v3958_v25  ;;  %v7154_v49 = vld [vmem:[#allocation7_spill] sm:$0xff] }
 0x302   :  { %7149 = vst [vmem:[#allocation3_spill] sm:$0xff] %v6388_v14 }
 0x303   :  { %v2566_v51 = vpop.f32.mrf.mxu0 }
 0x305   :  { %v2131_v59 = vpop.f32.mrf.mxu3  ;;  %v1338_v2 = vpop.f32.mrf.mxu1 }
 0x306   :  { %v2218_v4 = vadd.f32 %v2131_v59, %v1788_v27  ;;  %v1339_v18 = vadd.f32 %v1338_v2, %v7150_v7  ;;  %v7152_v2 = vld [vmem:[#allocation6_spill] sm:$0xff] }
 0x307   :  { %v1706_v23 = vpop.f32.mrf.mxu2 }
 0x308   :  { %v1789_v34 = vadd.f32 %v1704_v56, %v1339_v18  ;;  %4815 = vmatmul.msk.bf16.gmra.mxu1 %vm466_vm1, %v4018_v42  ;;  %v6392_v16 = vadd.f32 %v2561_v54, %v2218_v4  ;;  %v3528_v42 = vld [vmem:[#allocation2 + $0x61] sm:$0xff]  ;;  %v3529_v54 = vld [vmem:[#allocation2 + $0x69] sm:$0xff]  ;;  %v3100_v4 = vld [vmem:[#allocation2 + $0x78] sm:$0xff] }
 0x309   :  { %v3101_v18 = vld [vmem:[#allocation2 + $0x80] sm:$0xff] }
 0x30a   :  { %7151 = vst [vmem:[#allocation4_spill] sm:$0xff] %v6392_v16  ;;  %4881 = vmatmul.msk.bf16.gmra.mxu3 %vm466_vm1, %v3589_v6  ;;  %v3590_v16 = vpack.c.bf16 %v3529_v54, %v3528_v42 }
 0x30b   :  { %v2569_v13 = vpop.f32.mrf.mxu0 }
 0x30c   :  { %4849 = vmatmul.msk.bf16.gmra.mxu2 %vm466_vm1, %v3160_v28 }
 0x30d   :  { %v2134_v14 = vpop.f32.mrf.mxu3  ;;  %v1340_v27 = vpop.f32.mrf.mxu1 }
 0x30e   :  { %v2219_v59 = vadd.f32 %v2134_v14, %v1789_v34  ;;  %v1341_v44 = vadd.f32 %v1340_v27, %v7152_v2  ;;  %4915 = vmatmul.msk.bf16.gmra.mxu0 %vm466_vm1, %v4020_v36  ;;  %v3960_v34 = vld [vmem:[#allocation2 + $0x7a] sm:$0xff]  ;;  %v3961_v27 = vld [vmem:[#allocation2 + $0x82] sm:$0xff] }
 0x30f   :  { %v1709_v5 = vpop.f32.mrf.mxu2 }
 0x310   :  { %v1790_v56 = vadd.f32 %v1706_v23, %v1341_v44  ;;  %v6398_v7 = vadd.f32 %v2564_v38, %v2219_v59  ;;  %v3161_v23 = vpack.c.bf16 %v3101_v18, %v3100_v4  ;;  %v4021_v59 = vpack.c.bf16 %v3961_v27, %v3960_v34  ;;  %v7158_v27 = vld [vmem:[#allocation11_spill] sm:$0xff] }
 0x312   :  { %7153 = vst [vmem:[#allocation5_spill] sm:$0xff] %v6398_v7 }
 0x313   :  { %v2571_v19 = vpop.f32.mrf.mxu0 }
 0x315   :  { %v2136_v37 = vpop.f32.mrf.mxu3  ;;  %v1343_v6 = vpop.f32.mrf.mxu1 }
 0x316   :  { %v2220_v25 = vadd.f32 %v2136_v37, %v1790_v56  ;;  %v1344_v28 = vadd.f32 %v1343_v6, %v7154_v49  ;;  %v7156_v6 = vld [vmem:[#allocation9_spill] sm:$0xff] }
 0x317   :  { %v1711_v14 = vpop.f32.mrf.mxu2 }
 0x318   :  { %v1791_v2 = vadd.f32 %v1709_v5, %v1344_v28  ;;  %4816 = vmatmul.msk.bf16.gmra.mxu1 %vm466_vm1, %v4019_v43  ;;  %v6402_v38 = vadd.f32 %v2566_v51, %v2220_v25  ;;  %v3530_v43 = vld [vmem:[#allocation2 + $0x79] sm:$0xff]  ;;  %v3531_v51 = vld [vmem:[#allocation2 + $0x81] sm:$0xff]  ;;  %v3102_v25 = vld [vmem:[#allocation2 + $0x90] sm:$0xff] }
 0x319   :  { %v3103_v28 = vld [vmem:[#allocation2 + $0x98] sm:$0xff] }
 0x31a   :  { %7155 = vst [vmem:[#allocation6_spill] sm:$0xff] %v6402_v38  ;;  %4882 = vmatmul.msk.bf16.gmra.mxu3 %vm466_vm1, %v3590_v16  ;;  %v3591_v38 = vpack.c.bf16 %v3531_v51, %v3530_v43 }
 0x31b   :  { %v2574_v44 = vpop.f32.mrf.mxu0 }
 0x31c   :  { %4850 = vmatmul.msk.bf16.gmra.mxu2 %vm466_vm1, %v3161_v23 }
 0x31d   :  { %v2139_v7 = vpop.f32.mrf.mxu3  ;;  %v1345_v56 = vpop.f32.mrf.mxu1 }
 0x31e   :  { %v2221_v37 = vadd.f32 %v2139_v7, %v1791_v2  ;;  %v1346_v42 = vadd.f32 %v1345_v56, %v7156_v6  ;;  %4916 = vmatmul.msk.bf16.gmra.mxu0 %vm466_vm1, %v4021_v59  ;;  %v3962_v2 = vld [vmem:[#allocation2 + $0x92] sm:$0xff]  ;;  %v3963_v56 = vld [vmem:[#allocation2 + $0x9a] sm:$0xff] }
 0x31f   :  { %v1714_v54 = vpop.f32.mrf.mxu2 }
 0x320   :  { %v1792_v5 = vadd.f32 %v1711_v14, %v1346_v42  ;;  %v6408_v49 = vadd.f32 %v2569_v13, %v2221_v37  ;;  %v3162_v14 = vpack.c.bf16 %v3103_v28, %v3102_v25  ;;  %v4022_v37 = vpack.c.bf16 %v3963_v56, %v3962_v2  ;;  %v7162_v56 = vld [vmem:[#allocation15_spill] sm:$0xff] }
 0x322   :  { %7157 = vst [vmem:[#allocation7_spill] sm:$0xff] %v6408_v49 }
 0x323   :  { %v2576_v4 = vpop.f32.mrf.mxu0 }
 0x325   :  { %v2141_v18 = vpop.f32.mrf.mxu3  ;;  %v1348_v16 = vpop.f32.mrf.mxu1 }
 0x326   :  { %v2222_v34 = vadd.f32 %v2141_v18, %v1792_v5  ;;  %v1349_v23 = vadd.f32 %v1348_v16, %v7158_v27  ;;  %v7160_v16 = vld [vmem:[#allocation13_spill] sm:$0xff] }
 0x327   :  { %v1716_v7 = vpop.f32.mrf.mxu2 }
 0x328   :  { %v1793_v6 = vadd.f32 %v1714_v54, %v1349_v23  ;;  %4817 = vmatmul.msk.bf16.gmra.mxu1 %vm466_vm1, %v4020_v36  ;;  %v6412_v13 = vadd.f32 %v2571_v19, %v2222_v34  ;;  %v3532_v36 = vld [vmem:[#allocation2 + $0x91] sm:$0xff]  ;;  %v3533_v19 = vld [vmem:[#allocation2 + $0x99] sm:$0xff]  ;;  %v3104_v34 = vld [vmem:[#allocation2 + $0xa8] sm:$0xff] }
 0x329   :  { %v3105_v23 = vld [vmem:[#allocation2 + $0xb0] sm:$0xff] }
 0x32a   :  { %7159 = vst [vmem:[#allocation9_spill] sm:$0xff] %v6412_v13  ;;  %4883 = vmatmul.msk.bf16.gmra.mxu3 %vm466_vm1, %v3591_v38  ;;  %v3592_v13 = vpack.c.bf16 %v3533_v19, %v3532_v36 }
 0x32b   :  { %v2579_v42 = vpop.f32.mrf.mxu0 }
 0x32c   :  { %4851 = vmatmul.msk.bf16.gmra.mxu2 %vm466_vm1, %v3162_v14 }
 0x32d   :  { %v2144_v49 = vpop.f32.mrf.mxu3  ;;  %v1350_v5 = vpop.f32.mrf.mxu1 }
 0x32e   :  { %v2223_v18 = vadd.f32 %v2144_v49, %v1793_v6  ;;  %v1351_v43 = vadd.f32 %v1350_v5, %v7160_v16  ;;  %4917 = vmatmul.msk.bf16.gmra.mxu0 %vm466_vm1, %v4022_v37  ;;  %v3964_v6 = vld [vmem:[#allocation2 + $0xaa] sm:$0xff]  ;;  %v3965_v5 = vld [vmem:[#allocation2 + $0xb2] sm:$0xff] }
 0x32f   :  { %v1719_v51 = vpop.f32.mrf.mxu2 }
 0x330   :  { %v1794_v54 = vadd.f32 %v1716_v7, %v1351_v43  ;;  %v6418_v27 = vadd.f32 %v2574_v44, %v2223_v18  ;;  %v3163_v7 = vpack.c.bf16 %v3105_v23, %v3104_v34  ;;  %v4023_v18 = vpack.c.bf16 %v3965_v5, %v3964_v6  ;;  %v7166_v5 = vld [vmem:[#allocation19_spill] sm:$0xff] }
 0x332   :  { %7161 = vst [vmem:[#allocation11_spill] sm:$0xff] %v6418_v27 }
 0x333   :  { %v2581_v25 = vpop.f32.mrf.mxu0 }
 0x335   :  { %v2146_v28 = vpop.f32.mrf.mxu3  ;;  %v1353_v38 = vpop.f32.mrf.mxu1 }
 0x336   :  { %v2224_v2 = vadd.f32 %v2146_v28, %v1794_v54  ;;  %v1354_v14 = vadd.f32 %v1353_v38, %v7162_v56  ;;  %v7164_v38 = vld [vmem:[#allocation17_spill] sm:$0xff] }
 0x337   :  { %v1721_v49 = vpop.f32.mrf.mxu2 }
 0x338   :  { %v1795_v16 = vadd.f32 %v1719_v51, %v1354_v14  ;;  %4818 = vmatmul.msk.bf16.gmra.mxu1 %vm466_vm1, %v4021_v59  ;;  %v6422_v44 = vadd.f32 %v2576_v4, %v2224_v2  ;;  %v3534_v59 = vld [vmem:[#allocation2 + $0xa9] sm:$0xff]  ;;  %v3535_v4 = vld [vmem:[#allocation2 + $0xb1] sm:$0xff]  ;;  %v3106_v2 = vld [vmem:[#allocation2 + $0xc0] sm:$0xff] }
 0x339   :  { %v3107_v14 = vld [vmem:[#allocation2 + $0xc8] sm:$0xff] }
 0x33a   :  { %7163 = vst [vmem:[#allocation13_spill] sm:$0xff] %v6422_v44  ;;  %4884 = vmatmul.msk.bf16.gmra.mxu3 %vm466_vm1, %v3592_v13  ;;  %v3593_v44 = vpack.c.bf16 %v3535_v4, %v3534_v59 }
 0x33b   :  { %v2584_v43 = vpop.f32.mrf.mxu0 }
 0x33c   :  { %4852 = vmatmul.msk.bf16.gmra.mxu2 %vm466_vm1, %v3163_v7 }
 0x33d   :  { %v2149_v27 = vpop.f32.mrf.mxu3  ;;  %v1355_v54 = vpop.f32.mrf.mxu1 }
 0x33e   :  { %v2225_v28 = vadd.f32 %v2149_v27, %v1795_v16  ;;  %v1356_v36 = vadd.f32 %v1355_v54, %v7164_v38  ;;  %4918 = vmatmul.msk.bf16.gmra.mxu0 %vm466_vm1, %v4023_v18  ;;  %v3966_v16 = vld [vmem:[#allocation2 + $0xc2] sm:$0xff]  ;;  %v3967_v54 = vld [vmem:[#allocation2 + $0xca] sm:$0xff] }
 0x33f   :  { %v1724_v19 = vpop.f32.mrf.mxu2 }
 0x340   :  { %v1796_v51 = vadd.f32 %v1721_v49, %v1356_v36  ;;  %v6428_v56 = vadd.f32 %v2579_v42, %v2225_v28  ;;  %v3164_v49 = vpack.c.bf16 %v3107_v14, %v3106_v2  ;;  %v4024_v28 = vpack.c.bf16 %v3967_v54, %v3966_v16  ;;  %v7170_v54 = vld [vmem:[#allocation23_spill] sm:$0xff] }
 0x342   :  { %7165 = vst [vmem:[#allocation15_spill] sm:$0xff] %v6428_v56 }
 0x343   :  { %v2586_v34 = vpop.f32.mrf.mxu0 }
 0x345   :  { %v2151_v23 = vpop.f32.mrf.mxu3  ;;  %v1358_v13 = vpop.f32.mrf.mxu1 }
 0x346   :  { %v2226_v6 = vadd.f32 %v2151_v23, %v1796_v51  ;;  %v1359_v7 = vadd.f32 %v1358_v13, %v7166_v5  ;;  %v7168_v13 = vld [vmem:[#allocation21_spill] sm:$0xff] }
 0x347   :  { %v1726_v27 = vpop.f32.mrf.mxu2 }
 0x348   :  { %v1797_v38 = vadd.f32 %v1724_v19, %v1359_v7  ;;  %4819 = vmatmul.msk.bf16.gmra.mxu1 %vm466_vm1, %v4022_v37  ;;  %v6432_v42 = vadd.f32 %v2581_v25, %v2226_v6  ;;  %v3536_v37 = vld [vmem:[#allocation2 + $0xc1] sm:$0xff]  ;;  %v3537_v25 = vld [vmem:[#allocation2 + $0xc9] sm:$0xff]  ;;  %v3108_v6 = vld [vmem:[#allocation2 + $0xd8] sm:$0xff] }
 0x349   :  { %v3109_v7 = vld [vmem:[#allocation2 + $0xe0] sm:$0xff] }
 0x34a   :  { %7167 = vst [vmem:[#allocation17_spill] sm:$0xff] %v6432_v42  ;;  %4885 = vmatmul.msk.bf16.gmra.mxu3 %vm466_vm1, %v3593_v44  ;;  %v3594_v42 = vpack.c.bf16 %v3537_v25, %v3536_v37 }
 0x34b   :  { %v2589_v36 = vpop.f32.mrf.mxu0 }
 0x34c   :  { %4853 = vmatmul.msk.bf16.gmra.mxu2 %vm466_vm1, %v3164_v49 }
 0x34d   :  { %v2154_v56 = vpop.f32.mrf.mxu3  ;;  %v1360_v51 = vpop.f32.mrf.mxu1 }
 0x34e   :  { %v2227_v23 = vadd.f32 %v2154_v56, %v1797_v38  ;;  %v1361_v59 = vadd.f32 %v1360_v51, %v7168_v13  ;;  %4919 = vmatmul.msk.bf16.gmra.mxu0 %vm466_vm1, %v4024_v28  ;;  %v3968_v38 = vld [vmem:[#allocation2 + $0xda] sm:$0xff]  ;;  %v3969_v51 = vld [vmem:[#allocation2 + $0xe2] sm:$0xff] }
 0x34f   :  { %v1729_v4 = vpop.f32.mrf.mxu2 }
 0x350   :  { %v1798_v19 = vadd.f32 %v1726_v27, %v1361_v59  ;;  %v6438_v5 = vadd.f32 %v2584_v43, %v2227_v23  ;;  %v3165_v27 = vpack.c.bf16 %v3109_v7, %v3108_v6  ;;  %v4025_v23 = vpack.c.bf16 %v3969_v51, %v3968_v38  ;;  %v7174_v51 = vld [vmem:[#allocation27_spill] sm:$0xff] }
 0x352   :  { %7169 = vst [vmem:[#allocation19_spill] sm:$0xff] %v6438_v5 }
 0x353   :  { %v2591_v2 = vpop.f32.mrf.mxu0 }
 0x355   :  { %v2156_v14 = vpop.f32.mrf.mxu3  ;;  %v1363_v44 = vpop.f32.mrf.mxu1 }
 0x356   :  { %v2228_v16 = vadd.f32 %v2156_v14, %v1798_v19  ;;  %v1364_v49 = vadd.f32 %v1363_v44, %v7170_v54  ;;  %v7172_v44 = vld [vmem:[#allocation25_spill] sm:$0xff] }
 0x357   :  { %v1731_v56 = vpop.f32.mrf.mxu2 }
 0x358   :  { %v1799_v13 = vadd.f32 %v1729_v4, %v1364_v49  ;;  %4820 = vmatmul.msk.bf16.gmra.mxu1 %vm466_vm1, %v4023_v18  ;;  %v6442_v43 = vadd.f32 %v2586_v34, %v2228_v16  ;;  %v3538_v18 = vld [vmem:[#allocation2 + $0xd9] sm:$0xff]  ;;  %v3539_v34 = vld [vmem:[#allocation2 + $0xe1] sm:$0xff]  ;;  %v3110_v16 = vld [vmem:[#allocation2 + $0xf0] sm:$0xff] }
 0x359   :  { %v3111_v49 = vld [vmem:[#allocation2 + $0xf8] sm:$0xff] }
 0x35a   :  { %7171 = vst [vmem:[#allocation21_spill] sm:$0xff] %v6442_v43  ;;  %4886 = vmatmul.msk.bf16.gmra.mxu3 %vm466_vm1, %v3594_v42  ;;  %v3595_v43 = vpack.c.bf16 %v3539_v34, %v3538_v18 }
 0x35b   :  { %v2594_v59 = vpop.f32.mrf.mxu0 }
 0x35c   :  { %4854 = vmatmul.msk.bf16.gmra.mxu2 %vm466_vm1, %v3165_v27 }
 0x35d   :  { %v2159_v5 = vpop.f32.mrf.mxu3  ;;  %v1365_v19 = vpop.f32.mrf.mxu1 }
 0x35e   :  { %v2229_v14 = vadd.f32 %v2159_v5, %v1799_v13  ;;  %v1366_v37 = vadd.f32 %v1365_v19, %v7172_v44  ;;  %4920 = vmatmul.msk.bf16.gmra.mxu0 %vm466_vm1, %v4025_v23  ;;  %v3970_v13 = vld [vmem:[#allocation2 + $0xf2] sm:$0xff]  ;;  %v3971_v19 = vld [vmem:[#allocation2 + $0xfa] sm:$0xff] }
 0x35f   :  { %v1734_v25 = vpop.f32.mrf.mxu2 }
 0x360   :  { %v1800_v4 = vadd.f32 %v1731_v56, %v1366_v37  ;;  %v6448_v54 = vadd.f32 %v2589_v36, %v2229_v14  ;;  %v3166_v56 = vpack.c.bf16 %v3111_v49, %v3110_v16  ;;  %v4026_v14 = vpack.c.bf16 %v3971_v19, %v3970_v13 }
 0x362   :  { %7173 = vst [vmem:[#allocation23_spill] sm:$0xff] %v6448_v54 }
 0x363   :  { %v2596_v6 = vpop.f32.mrf.mxu0 }
 0x365   :  { %v2161_v7 = vpop.f32.mrf.mxu3  ;;  %v1368_v42 = vpop.f32.mrf.mxu1 }
 0x366   :  { %v2230_v38 = vadd.f32 %v2161_v7, %v1800_v4  ;;  %v1369_v27 = vadd.f32 %v1368_v42, %v7174_v51  ;;  %v7176_v42 = vld [vmem:[#allocation28_spill] sm:$0xff] }
 0x367   :  { %v1736_v5 = vpop.f32.mrf.mxu2 }
 0x368   :  { %v1801_v44 = vadd.f32 %v1734_v25, %v1369_v27  ;;  %4821 = vmatmul.msk.bf16.gmra.mxu1 %vm466_vm1, %v4024_v28  ;;  %v6452_v36 = vadd.f32 %v2591_v2, %v2230_v38  ;;  %v3540_v28 = vld [vmem:[#allocation2 + $0xf1] sm:$0xff]  ;;  %v3541_v2 = vld [vmem:[#allocation2 + $0xf9] sm:$0xff]  ;;  %v3112_v38 = vld [vmem:[#allocation2 + $0x108] sm:$0xff] }
 0x369   :  { %v3113_v27 = vld [vmem:[#allocation2 + $0x110] sm:$0xff]  ;;  %v3596_v19 = vpack.c.bf16 %v3541_v2, %v3540_v28 }
 0x36a   :  { %7175 = vst [vmem:[#allocation25_spill] sm:$0xff] %v6452_v36  ;;  %4887 = vmatmul.msk.bf16.gmra.mxu3 %vm466_vm1, %v3595_v43  ;;  %v3972_v36 = vld [vmem:[#allocation2 + $0x10a] sm:$0xff] }
 0x36b   :  { %v4160_v37 = vpop.f32.mrf.mxu0 }
 0x36c   :  { %4855 = vmatmul.msk.bf16.gmra.mxu2 %vm466_vm1, %v3166_v56 }
 0x36d   :  { %v2164_v54 = vpop.f32.mrf.mxu3  ;;  %v1370_v4 = vpop.f32.mrf.mxu1 }
 0x36e   :  { %v2231_v7 = vadd.f32 %v2164_v54, %v1801_v44  ;;  %v1371_v18 = vadd.f32 %v1370_v4, %v7176_v42  ;;  %4921 = vmatmul.msk.bf16.gmra.mxu0 %vm466_vm1, %v4026_v14  ;;  %v3973_v54 = vld [vmem:[#allocation2 + $0x112] sm:$0xff]  ;;  %v3167_v4 = vpack.c.bf16 %v3113_v27, %v3112_v38 }
 0x36f   :  { %v3300_v34 = vpop.f32.mrf.mxu2 }
 0x370   :  { %v1802_v25 = vadd.f32 %v1736_v5, %v1371_v18  ;;  %v6458_v51 = vadd.f32 %v2594_v59, %v2231_v7  ;;  %v6465_v59 = vpack.c.bf16 %v3973_v54, %v3972_v36  ;;  %v3114_v54 = vld [vmem:[#allocation2 + $0x120] sm:$0xff] }
 0x373   :  { %v4162_v16 = vpop.f32.mrf.mxu0 }
 0x375   :  { %v2166_v49 = vpop.f32.mrf.mxu3  ;;  %v2869_v43 = vpop.f32.mrf.mxu1 }
 0x376   :  { %v2232_v13 = vadd.f32 %v2166_v49, %v1802_v25  ;;  %v3029_v44 = vadd.f32 %v2869_v43, %v6117_v30  ;;  %v6471_v30 = vld [vmem:[%s7033_s3] ss:$0 sm:$0xff]  ;;  %v3543_v49 = vld [vmem:[#allocation2 + $0x111] sm:$0xff] }
 0x377   :  { %v3302_v56 = vpop.f32.mrf.mxu2 }
 0x378   :  { %4822 = vmatmul.msk.bf16.gmra.mxu1 %vm466_vm1, %v4025_v23  ;;  %v6462_v5 = vadd.f32 %v2596_v6, %v2232_v13  ;;  %v3460_v42 = vadd.f32 %v3300_v34, %v3029_v44  ;;  %v3542_v34 = vld [vmem:[#allocation2 + $0x109] sm:$0xff] }
 0x379   :  { %v3115_v44 = vld [vmem:[#allocation2 + $0x128] sm:$0xff] }
 0x37a   :  { %7177 = vst [vmem:[#allocation27_spill] sm:$0xff] %v6462_v5  ;;  %4888 = vmatmul.msk.bf16.gmra.mxu3 %vm466_vm1, %v3596_v19 }
 0x37b   :  { %v4165_v7 = vpop.f32.mrf.mxu0 }
 0x37c   :  { %4856 = vmatmul.msk.bf16.gmra.mxu2 %vm466_vm1, %v3167_v4  ;;  %v3597_v4 = vpack.c.bf16 %v3543_v49, %v3542_v34 }
 0x37d   :  { %v3730_v18 = vpop.f32.mrf.mxu3  ;;  %v2871_v25 = vpop.f32.mrf.mxu1 }
 0x37e   :  { %v3890_v28 = vadd.f32 %v3730_v18, %v3460_v42  ;;  %4922 = vmatmul.msk.bf16.gmra.mxu0 %vm466_vm1, %v6465_v59  ;;  %v3030_v36 = vadd.f32 %v2871_v25, %v6121_v46  ;;  %v3974_v42 = vld [vmem:[#allocation2 + $0x122] sm:$0xff]  ;;  %v3975_v18 = vld [vmem:[#allocation2 + $0x12a] sm:$0xff] }
 0x37f   :  { %v3305_v23 = vpop.f32.mrf.mxu2 }
 0x380   :  { %v4320_v6 = vadd.f32 %v4160_v37, %v3890_v28  ;;  %v3461_v27 = vadd.f32 %v3302_v56, %v3030_v36  ;;  %v3168_v56 = vpack.c.bf16 %v3115_v44, %v3114_v54  ;;  %v6485_v36 = vpack.c.bf16 %v3975_v18, %v3974_v42  ;;  %v3116_v18 = vld [vmem:[#allocation2 + $0x138] sm:$0xff] }
 0x382   :  { %v4388_v2 = vadd.f32 %v6471_v30, %v4320_v6 }
 0x383   :  { %v4167_v43 = vpop.f32.mrf.mxu0 }
 0x384   :  { %v4452_v38 = vmax.f32 %v4388_v2, 0.0 }
 0x385   :  { %v3732_v13 = vpop.f32.mrf.mxu3  ;;  %v2874_v19 = vpop.f32.mrf.mxu1 }
 0x386   :  { %4517 = vst.msk [vmem:[%s7034_s4] sm:$0xff] %vm4516_vm10, %v4452_v38  ;;  %v3891_v37 = vadd.f32 %v3732_v13, %v3461_v27  ;;  %v3031_v28 = vadd.f32 %v2874_v19, %v6127_v10  ;;  %v3545_v19 = vld [vmem:[#allocation2 + $0x129] sm:$0xff] }
 0x387   :  { %v3307_v46 = vpop.f32.mrf.mxu2 }
 0x388   :  { %v4321_v25 = vadd.f32 %v4162_v16, %v3891_v37  ;;  %4823 = vmatmul.msk.bf16.gmra.mxu1 %vm466_vm1, %v4026_v14  ;;  %v3462_v38 = vadd.f32 %v3305_v23, %v3031_v28  ;;  %v3544_v23 = vld [vmem:[#allocation2 + $0x121] sm:$0xff] }
 0x38a   :  { %v4389_v6 = vadd.f32 %v6471_v30, %v4321_v25  ;;  %4889 = vmatmul.msk.bf16.gmra.mxu3 %vm466_vm1, %v3597_v4  ;;  %v3117_v25 = vld [vmem:[#allocation2 + $0x140] sm:$0xff] }
 0x38b   :  { %v4170_v2 = vpop.f32.mrf.mxu0 }
 0x38c   :  { %v4453_v5 = vmax.f32 %v4389_v6, 0.0  ;;  %4857 = vmatmul.msk.bf16.gmra.mxu2 %vm466_vm1, %v3168_v56  ;;  %v3977_v56 = vld [vmem:[#allocation2 + $0x142] sm:$0xff] }
 0x38d   :  { %v3735_v34 = vpop.f32.mrf.mxu3  ;;  %v2876_v49 = vpop.f32.mrf.mxu1 }
 0x38e   :  { %4518 = vst.msk [vmem:[%s7034_s4 + $0x8] sm:$0xff] %vm4516_vm10, %v4453_v5  ;;  %v3892_v10 = vadd.f32 %v3735_v34, %v3462_v38  ;;  %4923 = vmatmul.msk.bf16.gmra.mxu0 %vm466_vm1, %v6485_v36  ;;  %v3032_v27 = vadd.f32 %v2876_v49, %v6131_v45  ;;  %v3976_v45 = vld [vmem:[#allocation2 + $0x13a] sm:$0xff] }
 0x38f   :  { %v3310_v14 = vpop.f32.mrf.mxu2  ;;  %v6505_v49 = vpack.c.bf16 %v3977_v56, %v3976_v45  ;;  %v3119_v45 = vld [vmem:[#allocation2 + $0x158] sm:$0xff] }
 0x390   :  { %v4322_v16 = vadd.f32 %v4165_v7, %v3892_v10  ;;  %v3463_v37 = vadd.f32 %v3307_v46, %v3032_v27  ;;  %v3598_v7 = vpack.c.bf16 %v3545_v19, %v3544_v23  ;;  %v3169_v46 = vpack.c.bf16 %v3117_v25, %v3116_v18 }
 0x392   :  { %v4390_v13 = vadd.f32 %v6471_v30, %v4322_v16 }
 0x393   :  { %v4172_v54 = vpop.f32.mrf.mxu0 }
 0x394   :  { %v4454_v44 = vmax.f32 %v4390_v13, 0.0 }
 0x395   :  { %v3737_v4 = vpop.f32.mrf.mxu3  ;;  %v2879_v42 = vpop.f32.mrf.mxu1 }
 0x396   :  { %4519 = vst.msk [vmem:[%s7034_s4 + $0x10] sm:$0xff] %vm4516_vm10, %v4454_v44  ;;  %v3893_v5 = vadd.f32 %v3737_v4, %v3463_v37  ;;  %v3033_v38 = vadd.f32 %v2879_v42, %v6137_v61  ;;  %v3547_v37 = vld [vmem:[#allocation2 + $0x141] sm:$0xff] }
 0x397   :  { %v3312_v28 = vpop.f32.mrf.mxu2 }
 0x398   :  { %v4323_v6 = vadd.f32 %v4167_v43, %v3893_v5  ;;  %4824 = vmatmul.msk.bf16.gmra.mxu1 %vm466_vm1, %v6465_v59  ;;  %v3464_v27 = vadd.f32 %v3310_v14, %v3033_v38  ;;  %v3546_v14 = vld [vmem:[#allocation2 + $0x139] sm:$0xff] }
 0x399   :  { %v3979_v38 = vld [vmem:[#allocation2 + $0x15a] sm:$0xff] }
 0x39a   :  { %v4391_v34 = vadd.f32 %v6471_v30, %v4323_v6  ;;  %4890 = vmatmul.msk.bf16.gmra.mxu3 %vm466_vm1, %v3598_v7  ;;  %v3118_v7 = vld [vmem:[#allocation2 + $0x150] sm:$0xff] }
 0x39b   :  { %v4175_v10 = vpop.f32.mrf.mxu0 }
 0x39c   :  { %v4455_v16 = vmax.f32 %v4391_v34, 0.0  ;;  %4858 = vmatmul.msk.bf16.gmra.mxu2 %vm466_vm1, %v3169_v46 }
 0x39d   :  { %v3740_v13 = vpop.f32.mrf.mxu3  ;;  %v2881_v23 = vpop.f32.mrf.mxu1 }
 0x39e   :  { %4520 = vst.msk [vmem:[%s7034_s4 + $0x18] sm:$0xff] %vm4516_vm10, %v4455_v16  ;;  %v3894_v61 = vadd.f32 %v3740_v13, %v3464_v27  ;;  %4924 = vmatmul.msk.bf16.gmra.mxu0 %vm466_vm1, %v6505_v49  ;;  %v3034_v19 = vadd.f32 %v2881_v23, %v6141_v20  ;;  %v3978_v20 = vld [vmem:[#allocation2 + $0x152] sm:$0xff] }
 0x39f   :  { %v3315_v59 = vpop.f32.mrf.mxu2  ;;  %v6525_v27 = vpack.c.bf16 %v3979_v38, %v3978_v20  ;;  %v3981_v38 = vld [vmem:[#allocation2 + $0x172] sm:$0xff] }
 0x3a0   :  { %v4324_v43 = vadd.f32 %v4170_v2, %v3894_v61  ;;  %v3465_v18 = vadd.f32 %v3312_v28, %v3034_v19  ;;  %v3599_v2 = vpack.c.bf16 %v3547_v37, %v3546_v14  ;;  %v3170_v28 = vpack.c.bf16 %v3119_v45, %v3118_v7  ;;  %v3549_v37 = vld [vmem:[#allocation2 + $0x159] sm:$0xff]  ;;  %v3120_v45 = vld [vmem:[#allocation2 + $0x168] sm:$0xff] }
 0x3a2   :  { %v4392_v44 = vadd.f32 %v6471_v30, %v4324_v43 }
 0x3a3   :  { %v4177_v4 = vpop.f32.mrf.mxu0 }
 0x3a4   :  { %v4456_v42 = vmax.f32 %v4392_v44, 0.0 }
 0x3a5   :  { %v3742_v25 = vpop.f32.mrf.mxu3  ;;  %v2884_v5 = vpop.f32.mrf.mxu1 }
 0x3a6   :  { %4521 = vst.msk [vmem:[%s7034_s4 + $0x20] sm:$0xff] %vm4516_vm10, %v4456_v42  ;;  %v3895_v56 = vadd.f32 %v3742_v25, %v3465_v18  ;;  %v3035_v34 = vadd.f32 %v2884_v5, %v6148_v17 }
 0x3a7   :  { %v3317_v6 = vpop.f32.mrf.mxu2 }
 0x3a8   :  { %v4325_v46 = vadd.f32 %v4172_v54, %v3895_v56  ;;  %4825 = vmatmul.msk.bf16.gmra.mxu1 %vm466_vm1, %v6485_v36  ;;  %v3466_v61 = vadd.f32 %v3315_v59, %v3035_v34  ;;  %v3548_v59 = vld [vmem:[#allocation2 + $0x151] sm:$0xff] }
 0x3a9   :  { %v3121_v56 = vld [vmem:[#allocation2 + $0x170] sm:$0xff] }
 0x3aa   :  { %v4393_v16 = vadd.f32 %v6471_v30, %v4325_v46  ;;  %4891 = vmatmul.msk.bf16.gmra.mxu3 %vm466_vm1, %v3599_v2 }
 0x3ab   :  { %v4180_v13 = vpop.f32.mrf.mxu0 }
 0x3ac   :  { %v4457_v23 = vmax.f32 %v4393_v16, 0.0  ;;  %4859 = vmatmul.msk.bf16.gmra.mxu2 %vm466_vm1, %v3170_v28 }
 0x3ad   :  { %v3745_v43 = vpop.f32.mrf.mxu3  ;;  %v2886_v19 = vpop.f32.mrf.mxu1 }
 0x3ae   :  { %4522 = vst.msk [vmem:[%s7034_s4 + $0x28] sm:$0xff] %vm4516_vm10, %v4457_v23  ;;  %v3896_v17 = vadd.f32 %v3745_v43, %v3466_v61  ;;  %4925 = vmatmul.msk.bf16.gmra.mxu0 %vm466_vm1, %v6525_v27  ;;  %v3036_v44 = vadd.f32 %v2886_v19, %v6152_v53  ;;  %v3980_v53 = vld [vmem:[#allocation2 + $0x16a] sm:$0xff] }
 0x3af   :  { %v3320_v36 = vpop.f32.mrf.mxu2  ;;  %v6545_v16 = vpack.c.bf16 %v3981_v38, %v3980_v53 }
 0x3b0   :  { %v4326_v54 = vadd.f32 %v4175_v10, %v3896_v17  ;;  %v3467_v25 = vadd.f32 %v3317_v6, %v3036_v44  ;;  %v3600_v10 = vpack.c.bf16 %v3549_v37, %v3548_v59  ;;  %v3171_v6 = vpack.c.bf16 %v3121_v56, %v3120_v45  ;;  %v3123_v45 = vld [vmem:[#allocation2 + $0x188] sm:$0xff] }
 0x3b2   :  { %v4394_v14 = vadd.f32 %v6471_v30, %v4326_v54 }
 0x3b3   :  { %v4182_v42 = vpop.f32.mrf.mxu0 }
 0x3b4   :  { %v4458_v18 = vmax.f32 %v4394_v14, 0.0  ;;  %v3551_v14 = vld [vmem:[#allocation2 + $0x171] sm:$0xff] }
 0x3b5   :  { %v3747_v5 = vpop.f32.mrf.mxu3  ;;  %v2889_v7 = vpop.f32.mrf.mxu1 }
 0x3b6   :  { %4523 = vst.msk [vmem:[%s7034_s4 + $0x30] sm:$0xff] %vm4516_vm10, %v4458_v18  ;;  %v3897_v2 = vadd.f32 %v3747_v5, %v3467_v25  ;;  %v3037_v34 = vadd.f32 %v2889_v7, %v6172_v21  ;;  %v3122_v7 = vld [vmem:[#allocation2 + $0x180] sm:$0xff] }
 0x3b7   :  { %v3322_v20 = vpop.f32.mrf.mxu2 }
 0x3b8   :  { %v4327_v46 = vadd.f32 %v4177_v4, %v3897_v2  ;;  %4826 = vmatmul.msk.bf16.gmra.mxu1 %vm466_vm1, %v6505_v49  ;;  %v3468_v43 = vadd.f32 %v3320_v36, %v3037_v34  ;;  %v3550_v36 = vld [vmem:[#allocation2 + $0x169] sm:$0xff] }
 0x3ba   :  { %v4395_v28 = vadd.f32 %v6471_v30, %v4327_v46  ;;  %4892 = vmatmul.msk.bf16.gmra.mxu3 %vm466_vm1, %v3600_v10  ;;  %v3983_v10 = vld [vmem:[#allocation2 + $0x18a] sm:$0xff] }
 0x3bb   :  { %v4185_v23 = vpop.f32.mrf.mxu0 }
 0x3bc   :  { %v4459_v61 = vmax.f32 %v4395_v28, 0.0  ;;  %4860 = vmatmul.msk.bf16.gmra.mxu2 %vm466_vm1, %v3171_v6 }
 0x3bd   :  { %v3750_v19 = vpop.f32.mrf.mxu3  ;;  %v2891_v17 = vpop.f32.mrf.mxu1 }
 0x3be   :  { %4524 = vst.msk [vmem:[%s7034_s4 + $0x38] sm:$0xff] %vm4516_vm10, %v4459_v61  ;;  %v3898_v21 = vadd.f32 %v3750_v19, %v3468_v43  ;;  %4926 = vmatmul.msk.bf16.gmra.mxu0 %vm466_vm1, %v6545_v16  ;;  %v3038_v54 = vadd.f32 %v2891_v17, %v6177_v3  ;;  %v3982_v3 = vld [vmem:[#allocation2 + $0x182] sm:$0xff] }
 0x3bf   :  { %v3325_v49 = vpop.f32.mrf.mxu2  ;;  %v6565_v34 = vpack.c.bf16 %v3983_v10, %v3982_v3 }
 0x3c0   :  { %v4328_v4 = vadd.f32 %v4180_v13, %v3898_v21  ;;  %v3469_v18 = vadd.f32 %v3322_v20, %v3038_v54  ;;  %v3601_v13 = vpack.c.bf16 %v3551_v14, %v3550_v36  ;;  %v3172_v20 = vpack.c.bf16 %v3123_v45, %v3122_v7  ;;  %v3985_v45 = vld [vmem:[#allocation2 + $0x1a2] sm:$0xff] }
 0x3c2   :  { %v4396_v44 = vadd.f32 %v6471_v30, %v4328_v4  ;;  %v3553_v4 = vld [vmem:[#allocation2 + $0x189] sm:$0xff] }
 0x3c3   :  { %v4187_v59 = vpop.f32.mrf.mxu0 }
 0x3c4   :  { %v4460_v37 = vmax.f32 %v4396_v44, 0.0 }
 0x3c5   :  { %v3752_v25 = vpop.f32.mrf.mxu3  ;;  %v2894_v5 = vpop.f32.mrf.mxu1 }
 0x3c6   :  { %4525 = vst.msk [vmem:[%s7034_s4 + $0x40] sm:$0xff] %vm4516_vm10, %v4460_v37  ;;  %v3899_v56 = vadd.f32 %v3752_v25, %v3469_v18  ;;  %v3039_v38 = vadd.f32 %v2894_v5, %v6184_v57  ;;  %v3124_v18 = vld [vmem:[#allocation2 + $0x198] sm:$0xff]  ;;  %v3125_v25 = vld [vmem:[#allocation2 + $0x1a0] sm:$0xff] }
 0x3c7   :  { %v3327_v2 = vpop.f32.mrf.mxu2 }
 0x3c8   :  { %v4329_v53 = vadd.f32 %v4182_v42, %v3899_v56  ;;  %4827 = vmatmul.msk.bf16.gmra.mxu1 %vm466_vm1, %v6525_v27  ;;  %v3470_v61 = vadd.f32 %v3325_v49, %v3039_v38  ;;  %v3552_v49 = vld [vmem:[#allocation2 + $0x181] sm:$0xff] }
 0x3ca   :  { %v4397_v46 = vadd.f32 %v6471_v30, %v4329_v53  ;;  %4893 = vmatmul.msk.bf16.gmra.mxu3 %vm466_vm1, %v3601_v13 }
 0x3cb   :  { %v4190_v6 = vpop.f32.mrf.mxu0 }
 0x3cc   :  { %v4461_v28 = vmax.f32 %v4397_v46, 0.0  ;;  %4861 = vmatmul.msk.bf16.gmra.mxu2 %vm466_vm1, %v3172_v20 }
 0x3cd   :  { %v3755_v43 = vpop.f32.mrf.mxu3  ;;  %v2896_v19 = vpop.f32.mrf.mxu1 }
 0x3ce   :  { %4526 = vst.msk [vmem:[%s7034_s4 + $0x48] sm:$0xff] %vm4516_vm10, %v4461_v28  ;;  %v3900_v57 = vadd.f32 %v3755_v43, %v3470_v61  ;;  %4927 = vmatmul.msk.bf16.gmra.mxu0 %vm466_vm1, %v6565_v34  ;;  %v3040_v17 = vadd.f32 %v2896_v19, %v6188_v12  ;;  %v3984_v12 = vld [vmem:[#allocation2 + $0x19a] sm:$0xff] }
 0x3cf   :  { %v3330_v27 = vpop.f32.mrf.mxu2  ;;  %v4033_v10 = vpack.c.bf16 %v3985_v45, %v3984_v12  ;;  %v3554_v19 = vld [vmem:[#allocation2 + $0x199] sm:$0xff] }
 0x3d0   :  { %v4330_v42 = vadd.f32 %v4185_v23, %v3900_v57  ;;  %v3471_v36 = vadd.f32 %v3327_v2, %v3040_v17  ;;  %v3602_v23 = vpack.c.bf16 %v3553_v4, %v3552_v49  ;;  %v3173_v2 = vpack.c.bf16 %v3125_v25, %v3124_v18  ;;  %v3555_v57 = vld [vmem:[#allocation2 + $0x1a1] sm:$0xff] }
 0x3d1   :  { %v3126_v4 = vld [vmem:[#allocation2 + $0x1e0] sm:$0xff] }
 0x3d2   :  { %v4398_v21 = vadd.f32 %v6471_v30, %v4330_v42 }
 0x3d3   :  { %v4192_v54 = vpop.f32.mrf.mxu0 }
 0x3d4   :  { %v4462_v44 = vmax.f32 %v4398_v21, 0.0 }
 0x3d5   :  { %v3757_v14 = vpop.f32.mrf.mxu3  ;;  %v2899_v37 = vpop.f32.mrf.mxu1 }
 0x3d6   :  { %4527 = vst.msk [vmem:[%s7034_s4 + $0x50] sm:$0xff] %vm4516_vm10, %v4462_v44  ;;  %v3901_v5 = vadd.f32 %v3757_v14, %v3471_v36  ;;  %v3041_v13 = vadd.f32 %v2899_v37, %v6194_v60  ;;  %v3127_v44 = vld [vmem:[#allocation2 + $0x1e8] sm:$0xff] }
 0x3d7   :  { %v3332_v7 = vpop.f32.mrf.mxu2  ;;  %v3987_v37 = vld [vmem:[#allocation2 + $0x1ea] sm:$0xff] }
 0x3d8   :  { %v4331_v56 = vadd.f32 %v4187_v59, %v3901_v5  ;;  %4828 = vmatmul.msk.bf16.gmra.mxu1 %vm466_vm1, %v6545_v16  ;;  %v3472_v20 = vadd.f32 %v3330_v27, %v3041_v13  ;;  %v3174_v5 = vpack.c.bf16 %v3127_v44, %v3126_v4 }
 0x3da   :  { %v4399_v3 = vadd.f32 %v6471_v30, %v4331_v56  ;;  %4894 = vmatmul.msk.bf16.gmra.mxu3 %vm466_vm1, %v3602_v23 }
 0x3db   :  { %v4195_v53 = vpop.f32.mrf.mxu0 }
 0x3dc   :  { %v4463_v38 = vmax.f32 %v4399_v3, 0.0  ;;  %4862 = vmatmul.msk.bf16.gmra.mxu2 %vm466_vm1, %v3173_v2 }
 0x3dd   :  { %v3760_v46 = vpop.f32.mrf.mxu3  ;;  %v2901_v28 = vpop.f32.mrf.mxu1 }
 0x3de   :  { %4528 = vst.msk [vmem:[%s7034_s4 + $0x58] sm:$0xff] %vm4516_vm10, %v4463_v38  ;;  %v3902_v60 = vadd.f32 %v3760_v46, %v3472_v20  ;;  %4928 = vmatmul.msk.bf16.gmra.mxu0 %vm466_vm1, %v4033_v10  ;;  %v3042_v61 = vadd.f32 %v2901_v28, %v6198_v24  ;;  %v3986_v24 = vld [vmem:[#allocation2 + $0x1e2] sm:$0xff]  ;;  %v2695_v10 = vld [vmem:[#allocation2 + $0x1ca] sm:$0xff]  ;;  %v2696_v38 = vld [vmem:[#allocation2 + $0x1d2] sm:$0xff] }
 0x3df   :  { %v3335_v16 = vpop.f32.mrf.mxu2  ;;  %v3556_v46 = vld [vmem:[#allocation2 + $0x1e1] sm:$0xff]  ;;  %v3557_v28 = vld [vmem:[#allocation2 + $0x1e9] sm:$0xff] }
 0x3e0   :  { %v4332_v59 = vadd.f32 %v4190_v6, %v3902_v60  ;;  %v3473_v17 = vadd.f32 %v3332_v7, %v3042_v61  ;;  %v3603_v6 = vpack.c.bf16 %v3555_v57, %v3554_v19  ;;  %v6602_v7 = vpack.c.bf16 %v3987_v37, %v3986_v24  ;;  %v3128_v57 = vld [vmem:[#allocation2 + $0x1f8] sm:$0xff] }
 0x3e1   :  { %v2743_v61 = vpack.c.bf16 %v2696_v38, %v2695_v10  ;;  %v3130_v38 = vld [vmem:[#allocation2 + $0x210] sm:$0xff] }
 0x3e2   :  { %v4400_v43 = vadd.f32 %v6471_v30, %v4332_v59 }
 0x3e3   :  { %v4197_v27 = vpop.f32.mrf.mxu0 }
 0x3e4   :  { %v4464_v42 = vmax.f32 %v4400_v43, 0.0 }
 0x3e5   :  { %v3762_v21 = vpop.f32.mrf.mxu3  ;;  %v2904_v49 = vpop.f32.mrf.mxu1 }
 0x3e6   :  { %4529 = vst.msk [vmem:[%s7034_s4 + $0x60] sm:$0xff] %vm4516_vm10, %v4464_v42  ;;  %v3903_v36 = vadd.f32 %v3762_v21, %v3473_v17  ;;  %v3043_v25 = vadd.f32 %v2904_v49, %v6204_v62  ;;  %v3129_v42 = vld [vmem:[#allocation2 + $0x200] sm:$0xff] }
 0x3e7   :  { %v3337_v14 = vpop.f32.mrf.mxu2  ;;  %v3988_v21 = vld [vmem:[#allocation2 + $0x1fa] sm:$0xff]  ;;  %v3989_v49 = vld [vmem:[#allocation2 + $0x202] sm:$0xff] }
 0x3e8   :  { %v4333_v18 = vadd.f32 %v4192_v54, %v3903_v36  ;;  %4829 = vmatmul.msk.bf16.gmra.mxu1 %vm466_vm1, %v6565_v34  ;;  %v3474_v56 = vadd.f32 %v3335_v16, %v3043_v25  ;;  %v3175_v36 = vpack.c.bf16 %v3129_v42, %v3128_v57 }
 0x3ea   :  { %v4401_v23 = vadd.f32 %v6471_v30, %v4333_v18  ;;  %4895 = vmatmul.msk.bf16.gmra.mxu3 %vm466_vm1, %v3603_v6 }
 0x3eb   :  { %v4200_v12 = vpop.f32.mrf.mxu0 }
 0x3ec   :  { %v4465_v45 = vmax.f32 %v4401_v23, 0.0  ;;  %4863 = vmatmul.msk.bf16.gmra.mxu2 %vm466_vm1, %v3174_v5 }
 0x3ed   :  { %v3765_v13 = vpop.f32.mrf.mxu3  ;;  %v2906_v2 = vpop.f32.mrf.mxu1 }
 0x3ee   :  { %4530 = vst.msk [vmem:[%s7034_s4 + $0x68] sm:$0xff] %vm4516_vm10, %v4465_v45  ;;  %v3904_v62 = vadd.f32 %v3765_v13, %v3474_v56  ;;  %4929 = vmatmul.msk.bf16.gmra.mxu0 %vm466_vm1, %v6602_v7  ;;  %v3044_v3 = vadd.f32 %v2906_v2, %v6208_v11  ;;  %v3558_v13 = vld [vmem:[#allocation2 + $0x1f9] sm:$0xff]  ;;  %v3559_v2 = vld [vmem:[#allocation2 + $0x201] sm:$0xff] }
 0x3ef   :  { %v3340_v34 = vpop.f32.mrf.mxu2 }
 0x3f0   :  { %v4334_v54 = vadd.f32 %v4195_v53, %v3904_v62  ;;  %v3475_v59 = vadd.f32 %v3337_v14, %v3044_v3  ;;  %v3604_v53 = vpack.c.bf16 %v3557_v28, %v3556_v46  ;;  %v6621_v14 = vpack.c.bf16 %v3989_v49, %v3988_v21 }
 0x3f2   :  { %v4402_v20 = vadd.f32 %v6471_v30, %v4334_v54 }
 0x3f3   :  { %v4202_v60 = vpop.f32.mrf.mxu0 }
 0x3f4   :  { %v4466_v16 = vmax.f32 %v4402_v20, 0.0  ;;  %v3131_v20 = vld [vmem:[#allocation2 + $0x218] sm:$0xff] }
 0x3f5   :  { %v3767_v43 = vpop.f32.mrf.mxu3  ;;  %v2909_v19 = vpop.f32.mrf.mxu1 }
 0x3f6   :  { %4531 = vst.msk [vmem:[%s7034_s4 + $0x70] sm:$0xff] %vm4516_vm10, %v4466_v16  ;;  %v3905_v11 = vadd.f32 %v3767_v43, %v3475_v59  ;;  %v3045_v44 = vadd.f32 %v2909_v19, %v6214_v9  ;;  %v3991_v16 = vld [vmem:[#allocation2 + $0x21a] sm:$0xff]  ;;  %v3176_v43 = vpack.c.bf16 %v3131_v20, %v3130_v38 }
 0x3f7   :  { %v3342_v17 = vpop.f32.mrf.mxu2 }
 0x3f8   :  { %v4335_v4 = vadd.f32 %v4197_v27, %v3905_v11  ;;  %4830 = vmatmul.msk.bf16.gmra.mxu1 %vm466_vm1, %v2743_v61  ;;  %v3476_v18 = vadd.f32 %v3340_v34, %v3045_v44  ;;  %v3560_v44 = vld [vmem:[#allocation2 + $0x211] sm:$0xff] }
 0x3fa   :  { %v4403_v6 = vadd.f32 %v6471_v30, %v4335_v4  ;;  %4896 = vmatmul.msk.bf16.gmra.mxu3 %vm466_vm1, %v3604_v53 }
 0x3fb   :  { %v4205_v24 = vpop.f32.mrf.mxu0 }
 0x3fc   :  { %v4467_v37 = vmax.f32 %v4403_v6, 0.0  ;;  %4864 = vmatmul.msk.bf16.gmra.mxu2 %vm466_vm1, %v3175_v36  ;;  %v3561_v36 = vld [vmem:[#allocation2 + $0x219] sm:$0xff] }
 0x3fd   :  { %v3770_v25 = vpop.f32.mrf.mxu3  ;;  %v2911_v5 = vpop.f32.mrf.mxu1 }
 0x3fe   :  { %4532 = vst.msk [vmem:[%s7034_s4 + $0x78] sm:$0xff] %vm4516_vm10, %v4467_v37  ;;  %v3906_v9 = vadd.f32 %v3770_v25, %v3476_v18  ;;  %4930 = vmatmul.msk.bf16.gmra.mxu0 %vm466_vm1, %v6621_v14  ;;  %v3046_v45 = vadd.f32 %v2911_v5, %v6218_v39  ;;  %v3990_v39 = vld [vmem:[#allocation2 + $0x212] sm:$0xff] }
 0x3ff   :  { %v3345_v27 = vpop.f32.mrf.mxu2  ;;  %v6641_v57 = vpack.c.bf16 %v3991_v16, %v3990_v39  ;;  %v3562_v16 = vld [vmem:[#allocation2 + $0x229] sm:$0xff] }
 0x400   :  { %v4336_v23 = vadd.f32 %v4200_v12, %v3906_v9  ;;  %v3477_v54 = vadd.f32 %v3342_v17, %v3046_v45  ;;  %v3605_v12 = vpack.c.bf16 %v3559_v2, %v3558_v13  ;;  %v3132_v9 = vld [vmem:[#allocation2 + $0x228] sm:$0xff] }
 0x402   :  { %v4404_v56 = vadd.f32 %v6471_v30, %v4336_v23 }
 0x403   :  { %v4207_v62 = vpop.f32.mrf.mxu0 }
 0x404   :  { %v4468_v34 = vmax.f32 %v4404_v56, 0.0  ;;  %v3993_v56 = vld [vmem:[#allocation2 + $0x232] sm:$0xff] }
 0x405   :  { %v3772_v3 = vpop.f32.mrf.mxu3  ;;  %v2914_v10 = vpop.f32.mrf.mxu1 }
 0x406   :  { %4533 = vst.msk [vmem:[%s7034_s4 + $0x80] sm:$0xff] %vm4516_vm10, %v4468_v34  ;;  %v3907_v46 = vadd.f32 %v3772_v3, %v3477_v54  ;;  %v3047_v61 = vadd.f32 %v2914_v10, %v6224_v47 }
 0x407   :  { %v3347_v28 = vpop.f32.mrf.mxu2 }
 0x408   :  { %v4337_v59 = vadd.f32 %v4202_v60, %v3907_v46  ;;  %4831 = vmatmul.msk.bf16.gmra.mxu1 %vm466_vm1, %v6602_v7  ;;  %v3478_v53 = vadd.f32 %v3345_v27, %v3047_v61  ;;  %v3133_v27 = vld [vmem:[#allocation2 + $0x230] sm:$0xff] }
 0x409   :  { %v3177_v34 = vpack.c.bf16 %v3133_v27, %v3132_v9 }
 0x40a   :  { %v4405_v19 = vadd.f32 %v6471_v30, %v4337_v59  ;;  %4897 = vmatmul.msk.bf16.gmra.mxu3 %vm466_vm1, %v3605_v12  ;;  %v3563_v59 = vld [vmem:[#allocation2 + $0x231] sm:$0xff] }
 0x40b   :  { %v4210_v42 = vpop.f32.mrf.mxu0 }
 0x40c   :  { %v4469_v11 = vmax.f32 %v4405_v19, 0.0  ;;  %4865 = vmatmul.msk.bf16.gmra.mxu2 %vm466_vm1, %v3176_v43 }
 0x40d   :  { %v3775_v17 = vpop.f32.mrf.mxu3  ;;  %v2916_v21 = vpop.f32.mrf.mxu1 }
 0x40e   :  { %4534 = vst.msk [vmem:[%s7034_s4 + $0x88] sm:$0xff] %vm4516_vm10, %v4469_v11  ;;  %v3908_v47 = vadd.f32 %v3775_v17, %v3478_v53  ;;  %4931 = vmatmul.msk.bf16.gmra.mxu0 %vm466_vm1, %v6641_v57  ;;  %v3048_v49 = vadd.f32 %v2916_v21, %v6228_v35  ;;  %v3992_v35 = vld [vmem:[#allocation2 + $0x22a] sm:$0xff]  ;;  %v3134_v17 = vld [vmem:[#allocation2 + $0x240] sm:$0xff] }
 0x40f   :  { %v3350_v7 = vpop.f32.mrf.mxu2  ;;  %v6661_v3 = vpack.c.bf16 %v3993_v56, %v3992_v35  ;;  %v3135_v21 = vld [vmem:[#allocation2 + $0x248] sm:$0xff] }
 0x410   :  { %v4338_v60 = vadd.f32 %v4205_v24, %v3908_v47  ;;  %v3479_v18 = vadd.f32 %v3347_v28, %v3048_v49  ;;  %v3606_v24 = vpack.c.bf16 %v3561_v36, %v3560_v44  ;;  %v3178_v44 = vpack.c.bf16 %v3135_v21, %v3134_v17  ;;  %v3565_v35 = vld [vmem:[#allocation2 + $0x249] sm:$0xff] }
 0x412   :  { %v4406_v4 = vadd.f32 %v6471_v30, %v4338_v60  ;;  %v3995_v60 = vld [vmem:[#allocation2 + $0x24a] sm:$0xff] }
 0x413   :  { %v4212_v6 = vpop.f32.mrf.mxu0 }
 0x414   :  { %v4470_v37 = vmax.f32 %v4406_v4, 0.0 }
 0x415   :  { %v3777_v25 = vpop.f32.mrf.mxu3  ;;  %v2919_v5 = vpop.f32.mrf.mxu1 }
 0x416   :  { %4535 = vst.msk [vmem:[%s7034_s4 + $0x90] sm:$0xff] %vm4516_vm10, %v4470_v37  ;;  %v3909_v23 = vadd.f32 %v3777_v25, %v3479_v18  ;;  %v3049_v2 = vadd.f32 %v2919_v5, %v6234_v63 }
 0x417   :  { %v3352_v45 = vpop.f32.mrf.mxu2 }
 0x418   :  { %v4339_v13 = vadd.f32 %v4207_v62, %v3909_v23  ;;  %4832 = vmatmul.msk.bf16.gmra.mxu1 %vm466_vm1, %v6621_v14  ;;  %v3480_v20 = vadd.f32 %v3350_v7, %v3049_v2 }
 0x41a   :  { %v4407_v54 = vadd.f32 %v6471_v30, %v4339_v13  ;;  %4898 = vmatmul.msk.bf16.gmra.mxu3 %vm466_vm1, %v3606_v24 }
 0x41b   :  { %v4215_v10 = vpop.f32.mrf.mxu0 }
 0x41c   :  { %v4471_v38 = vmax.f32 %v4407_v54, 0.0  ;;  %4866 = vmatmul.msk.bf16.gmra.mxu2 %vm466_vm1, %v3177_v34 }
 0x41d   :  { %v3780_v46 = vpop.f32.mrf.mxu3  ;;  %v2921_v12 = vpop.f32.mrf.mxu1 }
 0x41e   :  { %4536 = vst.msk [vmem:[%s7034_s4 + $0x98] sm:$0xff] %vm4516_vm10, %v4471_v38  ;;  %v3910_v63 = vadd.f32 %v3780_v46, %v3480_v20  ;;  %4932 = vmatmul.msk.bf16.gmra.mxu0 %vm466_vm1, %v6661_v3  ;;  %v3050_v28 = vadd.f32 %v2921_v12, %v6238_v15  ;;  %v3994_v15 = vld [vmem:[#allocation2 + $0x242] sm:$0xff]  ;;  %v3136_v38 = vld [vmem:[#allocation2 + $0x258] sm:$0xff] }
 0x41f   :  { %v3355_v14 = vpop.f32.mrf.mxu2  ;;  %v6681_v37 = vpack.c.bf16 %v3995_v60, %v3994_v15  ;;  %v3137_v20 = vld [vmem:[#allocation2 + $0x260] sm:$0xff] }
 0x420   :  { %v4340_v62 = vadd.f32 %v4210_v42, %v3910_v63  ;;  %v3481_v19 = vadd.f32 %v3352_v45, %v3050_v28  ;;  %v3607_v42 = vpack.c.bf16 %v3563_v59, %v3562_v16  ;;  %v3564_v45 = vld [vmem:[#allocation2 + $0x241] sm:$0xff]  ;;  %v3179_v28 = vpack.c.bf16 %v3137_v20, %v3136_v38  ;;  %v3568_v38 = vld [vmem:[#allocation2 + $0x271] sm:$0xff]  ;;  %v3569_v20 = vld [vmem:[#allocation2 + $0x279] sm:$0xff] }
 0x421   :  { %v3997_v63 = vld [vmem:[#allocation2 + $0x262] sm:$0xff] }
 0x422   :  { %v4408_v39 = vadd.f32 %v6471_v30, %v4340_v62 }
 0x423   :  { %v4217_v61 = vpop.f32.mrf.mxu0 }
 0x424   :  { %v4472_v43 = vmax.f32 %v4408_v39, 0.0 }
 0x425   :  { %v3782_v11 = vpop.f32.mrf.mxu3  ;;  %v2924_v53 = vpop.f32.mrf.mxu1 }
 0x426   :  { %4537 = vst.msk [vmem:[%s7034_s4 + $0xa0] sm:$0xff] %vm4516_vm10, %v4472_v43  ;;  %v3911_v47 = vadd.f32 %v3782_v11, %v3481_v19  ;;  %v3051_v4 = vadd.f32 %v2924_v53, %v6244_v26 }
 0x427   :  { %v3357_v7 = vpop.f32.mrf.mxu2 }
 0x428   :  { %v4341_v49 = vadd.f32 %v4212_v6, %v3911_v47  ;;  %4833 = vmatmul.msk.bf16.gmra.mxu1 %vm466_vm1, %v6641_v57  ;;  %v3482_v5 = vadd.f32 %v3355_v14, %v3051_v4  ;;  %v3566_v47 = vld [vmem:[#allocation2 + $0x259] sm:$0xff] }
 0x42a   :  { %v4409_v36 = vadd.f32 %v6471_v30, %v4341_v49  ;;  %4899 = vmatmul.msk.bf16.gmra.mxu3 %vm466_vm1, %v3607_v42  ;;  %v3567_v42 = vld [vmem:[#allocation2 + $0x261] sm:$0xff] }
 0x42b   :  { %v4220_v18 = vpop.f32.mrf.mxu0 }
 0x42c   :  { %v4473_v25 = vmax.f32 %v4409_v36, 0.0  ;;  %4867 = vmatmul.msk.bf16.gmra.mxu2 %vm466_vm1, %v3178_v44  ;;  %v3138_v44 = vld [vmem:[#allocation2 + $0x270] sm:$0xff]  ;;  %v3139_v36 = vld [vmem:[#allocation2 + $0x278] sm:$0xff] }
 0x42d   :  { %v3785_v9 = vpop.f32.mrf.mxu3  ;;  %v2926_v27 = vpop.f32.mrf.mxu1 }
 0x42e   :  { %4538 = vst.msk [vmem:[%s7034_s4 + $0xa8] sm:$0xff] %vm4516_vm10, %v4473_v25  ;;  %v3912_v26 = vadd.f32 %v3785_v9, %v3482_v5  ;;  %4933 = vmatmul.msk.bf16.gmra.mxu0 %vm466_vm1, %v6681_v37  ;;  %v3052_v23 = vadd.f32 %v2926_v27, %v6248_v31  ;;  %v3996_v31 = vld [vmem:[#allocation2 + $0x25a] sm:$0xff] }
 0x42f   :  { %v3360_v57 = vpop.f32.mrf.mxu2  ;;  %v6701_v16 = vpack.c.bf16 %v3997_v63, %v3996_v31  ;;  %v3999_v9 = vld [vmem:[#allocation2 + $0x27a] sm:$0xff] }
 0x430   :  { %v4342_v6 = vadd.f32 %v4215_v10, %v3912_v26  ;;  %v3483_v2 = vadd.f32 %v3357_v7, %v3052_v23  ;;  %v3608_v10 = vpack.c.bf16 %v3565_v35, %v3564_v45 }
 0x432   :  { %v4410_v24 = vadd.f32 %v6471_v30, %v4342_v6 }
 0x433   :  { %v4222_v56 = vpop.f32.mrf.mxu0 }
 0x434   :  { %v4474_v13 = vmax.f32 %v4410_v24, 0.0 }
 0x435   :  { %v3787_v34 = vpop.f32.mrf.mxu3  ;;  %v2929_v54 = vpop.f32.mrf.mxu1 }
 0x436   :  { %4539 = vst.msk [vmem:[%s7034_s4 + $0xb0] sm:$0xff] %vm4516_vm10, %v4474_v13  ;;  %v3913_v46 = vadd.f32 %v3787_v34, %v3483_v2  ;;  %v3053_v62 = vadd.f32 %v2929_v54, %v6254_v40 }
 0x437   :  { %v3362_v12 = vpop.f32.mrf.mxu2 }
 0x438   :  { %v4343_v14 = vadd.f32 %v4217_v61, %v3913_v46  ;;  %4834 = vmatmul.msk.bf16.gmra.mxu1 %vm466_vm1, %v6661_v3  ;;  %v3484_v19 = vadd.f32 %v3360_v57, %v3053_v62  ;;  %v3180_v57 = vpack.c.bf16 %v3139_v36, %v3138_v44  ;;  %v3141_v62 = vld [vmem:[#allocation2 + $0x290] sm:$0xff] }
 0x43a   :  { %v4411_v39 = vadd.f32 %v6471_v30, %v4343_v14  ;;  %4900 = vmatmul.msk.bf16.gmra.mxu3 %vm466_vm1, %v3608_v10  ;;  %v3140_v14 = vld [vmem:[#allocation2 + $0x288] sm:$0xff] }
 0x43b   :  { %v4225_v59 = vpop.f32.mrf.mxu0 }
 0x43c   :  { %v4475_v43 = vmax.f32 %v4411_v39, 0.0  ;;  %4868 = vmatmul.msk.bf16.gmra.mxu2 %vm466_vm1, %v3179_v28  ;;  %v3610_v39 = vpack.c.bf16 %v3569_v20, %v3568_v38 }
 0x43d   :  { %v3790_v11 = vpop.f32.mrf.mxu3  ;;  %v2931_v53 = vpop.f32.mrf.mxu1 }
 0x43e   :  { %4540 = vst.msk [vmem:[%s7034_s4 + $0xb8] sm:$0xff] %vm4516_vm10, %v4475_v43  ;;  %v3914_v40 = vadd.f32 %v3790_v11, %v3484_v19  ;;  %4934 = vmatmul.msk.bf16.gmra.mxu0 %vm466_vm1, %v6701_v16  ;;  %v3054_v17 = vadd.f32 %v2931_v53, %v6258_v1  ;;  %v3998_v1 = vld [vmem:[#allocation2 + $0x272] sm:$0xff]  ;;  %v3181_v53 = vpack.c.bf16 %v3141_v62, %v3140_v14 }
 0x43f   :  { %v3365_v3 = vpop.f32.mrf.mxu2  ;;  %v6721_v23 = vpack.c.bf16 %v3999_v9, %v3998_v1  ;;  %v4001_v43 = vld [vmem:[#allocation2 + $0x292] sm:$0xff]  ;;  %v3142_v1 = vld [vmem:[#allocation2 + $0x2a0] sm:$0xff]  ;;  %v3143_v9 = vld [vmem:[#allocation2 + $0x2a8] sm:$0xff] }
 0x440   :  { %v4344_v61 = vadd.f32 %v4220_v18, %v3914_v40  ;;  %v3485_v60 = vadd.f32 %v3362_v12, %v3054_v17  ;;  %v3609_v18 = vpack.c.bf16 %v3567_v42, %v3566_v47 }
 0x442   :  { %v4412_v21 = vadd.f32 %v6471_v30, %v4344_v61 }
 0x443   :  { %v4227_v7 = vpop.f32.mrf.mxu0 }
 0x444   :  { %v4476_v15 = vmax.f32 %v4412_v21, 0.0 }
 0x445   :  { %v3792_v49 = vpop.f32.mrf.mxu3  ;;  %v2934_v4 = vpop.f32.mrf.mxu1 }
 0x446   :  { %4541 = vst.msk [vmem:[%s7034_s4 + $0xc0] sm:$0xff] %vm4516_vm10, %v4476_v15  ;;  %v3915_v25 = vadd.f32 %v3792_v49, %v3485_v60  ;;  %v3055_v26 = vadd.f32 %v2934_v4, %v6264_v55  ;;  %v3570_v49 = vld [vmem:[#allocation2 + $0x289] sm:$0xff]  ;;  %v3571_v4 = vld [vmem:[#allocation2 + $0x291] sm:$0xff] }
 0x447   :  { %v3367_v5 = vpop.f32.mrf.mxu2 }
 0x448   :  { %v4345_v27 = vadd.f32 %v4222_v56, %v3915_v25  ;;  %4835 = vmatmul.msk.bf16.gmra.mxu1 %vm466_vm1, %v6681_v37  ;;  %v3486_v35 = vadd.f32 %v3365_v3, %v3055_v26  ;;  %v3611_v26 = vpack.c.bf16 %v3571_v4, %v3570_v49  ;;  %v3574_v4 = vld [vmem:[#allocation2 + $0x2b9] sm:$0xff] }
 0x44a   :  { %v4413_v6 = vadd.f32 %v6471_v30, %v4345_v27  ;;  %4901 = vmatmul.msk.bf16.gmra.mxu3 %vm466_vm1, %v3609_v18 }
 0x44b   :  { %v4230_v24 = vpop.f32.mrf.mxu0 }
 0x44c   :  { %v4477_v45 = vmax.f32 %v4413_v6, 0.0  ;;  %4869 = vmatmul.msk.bf16.gmra.mxu2 %vm466_vm1, %v3180_v57  ;;  %v4003_v6 = vld [vmem:[#allocation2 + $0x2aa] sm:$0xff] }
 0x44d   :  { %v3795_v13 = vpop.f32.mrf.mxu3  ;;  %v2936_v2 = vpop.f32.mrf.mxu1 }
 0x44e   :  { %4542 = vst.msk [vmem:[%s7034_s4 + $0xc8] sm:$0xff] %vm4516_vm10, %v4477_v45  ;;  %v3916_v55 = vadd.f32 %v3795_v13, %v3486_v35  ;;  %4935 = vmatmul.msk.bf16.gmra.mxu0 %vm466_vm1, %v6721_v23  ;;  %v3056_v34 = vadd.f32 %v2936_v2, %v6268_v22  ;;  %v4000_v22 = vld [vmem:[#allocation2 + $0x28a] sm:$0xff]  ;;  %v3182_v45 = vpack.c.bf16 %v3143_v9, %v3142_v1  ;;  %v6762_v35 = vld [vmem:[%s7033_s3] ss:$0 sm:$0xff] }
 0x44f   :  { %v3370_v37 = vpop.f32.mrf.mxu2  ;;  %v6741_v3 = vpack.c.bf16 %v4001_v43, %v4000_v22  ;;  %v3146_v9 = vld [vmem:[#allocation2 + $0x2d0] sm:$0xff] }
 0x450   :  { %v4346_v56 = vadd.f32 %v4225_v59, %v3916_v55  ;;  %v3487_v12 = vadd.f32 %v3367_v5, %v3056_v34 }
 0x452   :  { %v4414_v54 = vadd.f32 %v6471_v30, %v4346_v56 }
 0x453   :  { %v4232_v46 = vpop.f32.mrf.mxu0 }
 0x454   :  { %v4478_v10 = vmax.f32 %v4414_v54, 0.0 }
 0x455   :  { %v3797_v31 = vpop.f32.mrf.mxu3  ;;  %v2939_v63 = vpop.f32.mrf.mxu1 }
 0x456   :  { %4543 = vst.msk [vmem:[%s7034_s4 + $0xd0] sm:$0xff] %vm4516_vm10, %v4478_v10  ;;  %v3917_v28 = vadd.f32 %v3797_v31, %v3487_v12  ;;  %v3057_v11 = vadd.f32 %v2939_v63, %v6274_v8  ;;  %v3572_v10 = vld [vmem:[#allocation2 + $0x2a1] sm:$0xff]  ;;  %v3573_v12 = vld [vmem:[#allocation2 + $0x2a9] sm:$0xff] }
 0x457   :  { %v3372_v59 = vpop.f32.mrf.mxu2  ;;  %v3612_v43 = vpack.c.bf16 %v3573_v12, %v3572_v10  ;;  %v3577_v10 = vld [vmem:[#allocation2 + $0x2d9] sm:$0xff] }
 0x458   :  { %v4347_v19 = vadd.f32 %v4227_v7, %v3917_v28  ;;  %4836 = vmatmul.msk.bf16.gmra.mxu1 %vm466_vm1, %v6701_v16  ;;  %v3488_v21 = vadd.f32 %v3370_v37, %v3057_v11  ;;  %v4005_v11 = vld [vmem:[#allocation2 + $0x2c2] sm:$0xff] }
 0x45a   :  { %v4415_v40 = vadd.f32 %v6471_v30, %v4347_v19  ;;  %4902 = vmatmul.msk.bf16.gmra.mxu3 %vm466_vm1, %v3610_v39  ;;  %v3144_v39 = vld [vmem:[#allocation2 + $0x2b8] sm:$0xff] }
 0x45b   :  { %v4235_v61 = vpop.f32.mrf.mxu0 }
 0x45c   :  { %v4479_v17 = vmax.f32 %v4415_v40, 0.0  ;;  %4870 = vmatmul.msk.bf16.gmra.mxu2 %vm466_vm1, %v3181_v53 }
 0x45d   :  { %v3800_v47 = vpop.f32.mrf.mxu3  ;;  %v2941_v42 = vpop.f32.mrf.mxu1 }
 0x45e   :  { %4544 = vst.msk [vmem:[%s7034_s4 + $0xd8] sm:$0xff] %vm4516_vm10, %v4479_v17  ;;  %v3918_v8 = vadd.f32 %v3800_v47, %v3488_v21  ;;  %4936 = vmatmul.msk.bf16.gmra.mxu0 %vm466_vm1, %v6741_v3  ;;  %v3058_v15 = vadd.f32 %v2941_v42, %v6278_v52  ;;  %v4002_v52 = vld [vmem:[#allocation2 + $0x2a2] sm:$0xff] }
 0x45f   :  { %v3375_v16 = vpop.f32.mrf.mxu2  ;;  %v6766_v2 = vpack.c.bf16 %v4003_v6, %v4002_v52  ;;  %v4007_v6 = vld [vmem:[#allocation2 + $0x2da] sm:$0xff] }
 0x460   :  { %v4348_v7 = vadd.f32 %v4230_v24, %v3918_v8  ;;  %v3489_v25 = vadd.f32 %v3372_v59, %v3058_v15  ;;  %v3145_v59 = vld [vmem:[#allocation2 + $0x2c0] sm:$0xff] }
 0x462   :  { %v4416_v60 = vadd.f32 %v6471_v30, %v4348_v7 }
 0x463   :  { %v4237_v44 = vpop.f32.mrf.mxu0 }
 0x464   :  { %v4480_v36 = vmax.f32 %v4416_v60, 0.0 }
 0x465   :  { %v3802_v18 = vpop.f32.mrf.mxu3  ;;  %v2944_v5 = vpop.f32.mrf.mxu1 }
 0x466   :  { %4545 = vst.msk [vmem:[%s7034_s4 + $0xe0] sm:$0xff] %vm4516_vm10, %v4480_v36  ;;  %v3919_v27 = vadd.f32 %v3802_v18, %v3489_v25  ;;  %v3059_v24 = vadd.f32 %v2944_v5, %v6284_v29 }
 0x467   :  { %v3377_v57 = vpop.f32.mrf.mxu2 }
 0x468   :  { %v4349_v30 = vadd.f32 %v4232_v46, %v3919_v27  ;;  %4837 = vmatmul.msk.bf16.gmra.mxu1 %vm466_vm1, %v6721_v23  ;;  %v3490_v56 = vadd.f32 %v3375_v16, %v3059_v24  ;;  %v3147_v27 = vld [vmem:[#allocation2 + $0x2d8] sm:$0xff] }
 0x46a   :  { %v4417_v13 = vadd.f32 %v6762_v35, %v4349_v30  ;;  %4903 = vmatmul.msk.bf16.gmra.mxu3 %vm466_vm1, %v3611_v26 }
 0x46b   :  { %v4240_v55 = vpop.f32.mrf.mxu0 }
 0x46c   :  { %v4481_v37 = vmax.f32 %v4417_v13, 0.0  ;;  %4871 = vmatmul.msk.bf16.gmra.mxu2 %vm466_vm1, %v3182_v45  ;;  %v3184_v45 = vpack.c.bf16 %v3147_v27, %v3146_v9 }
 0x46d   :  { %v3805_v29 = vpop.f32.mrf.mxu3  ;;  %v2946_v34 = vpop.f32.mrf.mxu1 }
 0x46e   :  { %4546 = vst.msk [vmem:[%s7034_s4 + $0xe8] sm:$0xff] %vm4516_vm10, %v4481_v37  ;;  %v3920_v23 = vadd.f32 %v3805_v29, %v3490_v56  ;;  %4937 = vmatmul.msk.bf16.gmra.mxu0 %vm466_vm1, %v6766_v2  ;;  %v3060_v20 = vadd.f32 %v2946_v34, %v6288_v33  ;;  %v4004_v33 = vld [vmem:[#allocation2 + $0x2ba] sm:$0xff] }
 0x46f   :  { %v3380_v54 = vpop.f32.mrf.mxu2  ;;  %v6786_v21 = vpack.c.bf16 %v4005_v11, %v4004_v33 }
 0x470   :  { %v4350_v38 = vadd.f32 %v4235_v61, %v3920_v23  ;;  %v3491_v14 = vadd.f32 %v3377_v57, %v3060_v20  ;;  %v3183_v61 = vpack.c.bf16 %v3145_v59, %v3144_v39  ;;  %v3149_v39 = vld [vmem:[#allocation2 + $0x2f0] sm:$0xff] }
 0x472   :  { %v4418_v46 = vadd.f32 %v6762_v35, %v4350_v38 }
 0x473   :  { %v4242_v31 = vpop.f32.mrf.mxu0 }
 0x474   :  { %v4482_v63 = vmax.f32 %v4418_v46, 0.0  ;;  %v3576_v46 = vld [vmem:[#allocation2 + $0x2d1] sm:$0xff] }
 0x475   :  { %v3807_v62 = vpop.f32.mrf.mxu3  ;;  %v2949_v28 = vpop.f32.mrf.mxu1 }
 0x476   :  { %4547 = vst.msk [vmem:[%s7034_s4 + $0xf0] sm:$0xff] %vm4516_vm10, %v4482_v63  ;;  %v3921_v22 = vadd.f32 %v3807_v62, %v3491_v14  ;;  %v3061_v40 = vadd.f32 %v2949_v28, %v6294_v58  ;;  %v3148_v28 = vld [vmem:[#allocation2 + $0x2e8] sm:$0xff] }
 0x477   :  { %v3382_v19 = vpop.f32.mrf.mxu2 }
 0x478   :  { %v4351_v53 = vadd.f32 %v4237_v44, %v3921_v22  ;;  %4838 = vmatmul.msk.bf16.gmra.mxu1 %vm466_vm1, %v6741_v3  ;;  %v3492_v8 = vadd.f32 %v3380_v54, %v3061_v40  ;;  %v3575_v44 = vld [vmem:[#allocation2 + $0x2c1] sm:$0xff]  ;;  %v3614_v22 = vpack.c.bf16 %v3577_v10, %v3576_v46  ;;  %v3581_v10 = vld [vmem:[#allocation2 + $0x309] sm:$0xff] }
 0x479   :  { %v3613_v57 = vpack.c.bf16 %v3575_v44, %v3574_v4  ;;  %v3580_v46 = vld [vmem:[#allocation2 + $0x301] sm:$0xff] }
 0x47a   :  { %v4419_v17 = vadd.f32 %v6762_v35, %v4351_v53  ;;  %4904 = vmatmul.msk.bf16.gmra.mxu3 %vm466_vm1, %v3612_v43  ;;  %v3185_v53 = vpack.c.bf16 %v3149_v39, %v3148_v28  ;;  %v3152_v28 = vld [vmem:[#allocation2 + $0x318] sm:$0xff]  ;;  %v3153_v39 = vld [vmem:[#allocation2 + $0x320] sm:$0xff] }
 0x47b   :  { %v4245_v47 = vpop.f32.mrf.mxu0 }
 0x47c   :  { %v4483_v42 = vmax.f32 %v4419_v17, 0.0  ;;  %4872 = vmatmul.msk.bf16.gmra.mxu2 %vm466_vm1, %v3183_v61 }
 0x47d   :  { %v3810_v16 = vpop.f32.mrf.mxu3  ;;  %v2951_v7 = vpop.f32.mrf.mxu1 }
 0x47e   :  { %4548 = vst.msk [vmem:[%s7034_s4 + $0xf8] sm:$0xff] %vm4516_vm10, %v4483_v42  ;;  %v3922_v58 = vadd.f32 %v3810_v16, %v3492_v8  ;;  %4938 = vmatmul.msk.bf16.gmra.mxu0 %vm466_vm1, %v6786_v21  ;;  %v3062_v60 = vadd.f32 %v2951_v7, %v6298_v48  ;;  %v4006_v48 = vld [vmem:[#allocation2 + $0x2d2] sm:$0xff] }
 0x47f   :  { %v3385_v3 = vpop.f32.mrf.mxu2 }
 0x480   :  { %v4352_v15 = vadd.f32 %v4240_v55, %v3922_v58  ;;  %v3493_v18 = vadd.f32 %v3382_v19, %v3062_v60  ;;  %v6806_v55 = vpack.c.bf16 %v4007_v6, %v4006_v48  ;;  %v4009_v19 = vld [vmem:[#allocation2 + $0x2f2] sm:$0xff]  ;;  %v7178_v58 = vld [vmem:[#allocation8_spill] sm:$0xff] }
 0x481   :  { %v3578_v60 = vld [vmem:[#allocation2 + $0x2e9] sm:$0xff]  ;;  %v7179_v6 = vld [vmem:[#allocation10_spill] sm:$0xff] }
 0x482   :  { %v4420_v49 = vadd.f32 %v6762_v35, %v4352_v15 }
 0x483   :  { %v4247_v36 = vpop.f32.mrf.mxu0 }
 0x484   :  { %v4484_v25 = vmax.f32 %v4420_v49, 0.0  ;;  %v3579_v49 = vld [vmem:[#allocation2 + $0x2f1] sm:$0xff] }
 0x485   :  { %v3812_v5 = vpop.f32.mrf.mxu3  ;;  %v2954_v1 = vpop.f32.mrf.mxu1  ;;  %v3615_v27 = vpack.c.bf16 %v3579_v49, %v3578_v60  ;;  %v3582_v49 = vld [vmem:[#allocation2 + $0x319] sm:$0xff] }
 0x486   :  { %4549 = vst.msk [vmem:[%s7034_s4 + $0x100] sm:$0xff] %vm4516_vm10, %v4484_v25  ;;  %v3923_v26 = vadd.f32 %v3812_v5, %v3493_v18  ;;  %v3063_v24 = vadd.f32 %v2954_v1, %v6304_v41  ;;  %v3150_v5 = vld [vmem:[#allocation2 + $0x300] sm:$0xff]  ;;  %v3151_v1 = vld [vmem:[#allocation2 + $0x308] sm:$0xff] }
 0x487   :  { %v3387_v52 = vpop.f32.mrf.mxu2 }
 0x488   :  { %v4353_v30 = vadd.f32 %v4242_v31, %v3923_v26  ;;  %4839 = vmatmul.msk.bf16.gmra.mxu1 %vm466_vm1, %v6766_v2  ;;  %v3494_v29 = vadd.f32 %v3385_v3, %v3063_v24  ;;  %v3186_v24 = vpack.c.bf16 %v3151_v1, %v3150_v5  ;;  %v3154_v1 = vld [vmem:[#allocation2 + $0x330] sm:$0xff] }
 0x48a   :  { %v4421_v13 = vadd.f32 %v6762_v35, %v4353_v30  ;;  %4905 = vmatmul.msk.bf16.gmra.mxu3 %vm466_vm1, %v3613_v57  ;;  %v4010_v57 = vld [vmem:[#allocation2 + $0x302] sm:$0xff] }
 0x48b   :  { %v4250_v37 = vpop.f32.mrf.mxu0 }
 0x48c   :  { %v4485_v56 = vmax.f32 %v4421_v13, 0.0  ;;  %4873 = vmatmul.msk.bf16.gmra.mxu2 %vm466_vm1, %v3184_v45 }
 0x48d   :  { %v3815_v34 = vpop.f32.mrf.mxu3  ;;  %v2956_v23 = vpop.f32.mrf.mxu1 }
 0x48e   :  { %4550 = vst.msk [vmem:[%s7034_s4 + $0x108] sm:$0xff] %vm4516_vm10, %v4485_v56  ;;  %v3924_v41 = vadd.f32 %v3815_v34, %v3494_v29  ;;  %4939 = vmatmul.msk.bf16.gmra.mxu0 %vm466_vm1, %v6806_v55  ;;  %v3064_v38 = vadd.f32 %v2956_v23, %v6308_v0  ;;  %v4008_v0 = vld [vmem:[#allocation2 + $0x2ea] sm:$0xff] }
 0x48f   :  { %v3390_v2 = vpop.f32.mrf.mxu2  ;;  %v6826_v61 = vpack.c.bf16 %v4009_v19, %v4008_v0  ;;  %v4012_v0 = vld [vmem:[#allocation2 + $0x31a] sm:$0xff]  ;;  %v4013_v19 = vld [vmem:[#allocation2 + $0x322] sm:$0xff] }
 0x490   :  { %v4354_v54 = vadd.f32 %v4245_v47, %v3924_v41  ;;  %v3495_v63 = vadd.f32 %v3387_v52, %v3064_v38  ;;  %v4011_v52 = vld [vmem:[#allocation2 + $0x30a] sm:$0xff] }
 0x491   :  { %v6846_v13 = vpack.c.bf16 %v4011_v52, %v4010_v57  ;;  %v4014_v52 = vld [vmem:[#allocation2 + $0x332] sm:$0xff] }
 0x492   :  { %v4422_v20 = vadd.f32 %v6762_v35, %v4354_v54  ;;  %v7180_v54 = vld [vmem:[#allocation12_spill] sm:$0xff] }
 0x493   :  { %v4252_v12 = vpop.f32.mrf.mxu0 }
 0x494   :  { %v4486_v31 = vmax.f32 %v4422_v20, 0.0 }
 0x495   :  { %v3817_v14 = vpop.f32.mrf.mxu3  ;;  %v2959_v62 = vpop.f32.mrf.mxu1 }
 0x496   :  { %4551 = vst.msk [vmem:[%s7034_s4 + $0x110] sm:$0xff] %vm4516_vm10, %v4486_v31  ;;  %v3925_v59 = vadd.f32 %v3817_v14, %v3495_v63  ;;  %v3065_v11 = vadd.f32 %v2959_v62, %v6314_v50 }
 0x497   :  { %v3392_v43 = vpop.f32.mrf.mxu2 }
 0x498   :  { %v4355_v33 = vadd.f32 %v4247_v36, %v3925_v59  ;;  %4840 = vmatmul.msk.bf16.gmra.mxu1 %vm466_vm1, %v6786_v21  ;;  %v3496_v42 = vadd.f32 %v3390_v2, %v3065_v11  ;;  %v7181_v11 = vld [vmem:[#allocation14_spill] sm:$0xff] }
 0x49a   :  { %v4423_v40 = vadd.f32 %v6762_v35, %v4355_v33  ;;  %4906 = vmatmul.msk.bf16.gmra.mxu3 %vm466_vm1, %v3614_v22  ;;  %v3616_v22 = vpack.c.bf16 %v3581_v10, %v3580_v46  ;;  %v3584_v10 = vld [vmem:[#allocation2 + $0x331] sm:$0xff] }
 0x49b   :  { %v4255_v17 = vpop.f32.mrf.mxu0 }
 0x49c   :  { %v4487_v47 = vmax.f32 %v4423_v40, 0.0  ;;  %4874 = vmatmul.msk.bf16.gmra.mxu2 %vm466_vm1, %v3185_v53  ;;  %v3187_v40 = vpack.c.bf16 %v3153_v39, %v3152_v28  ;;  %v3156_v39 = vld [vmem:[#allocation2 + $0x348] sm:$0xff] }
 0x49d   :  { %v3820_v8 = vpop.f32.mrf.mxu3  ;;  %v2961_v16 = vpop.f32.mrf.mxu1 }
 0x49e   :  { %4552 = vst.msk [vmem:[%s7034_s4 + $0x118] sm:$0xff] %vm4516_vm10, %v4487_v47  ;;  %v3926_v50 = vadd.f32 %v3820_v8, %v3496_v42  ;;  %4940 = vmatmul.msk.bf16.gmra.mxu0 %vm466_vm1, %v6826_v61  ;;  %v3066_v3 = vadd.f32 %v2961_v16, %v7178_v58  ;;  %v6866_v47 = vpack.c.bf16 %v4013_v19, %v4012_v0  ;;  %v4016_v19 = vld [vmem:[#allocation2 + $0x34a] sm:$0xff] }
 0x49f   :  { %v3395_v21 = vpop.f32.mrf.mxu2 }
 0x4a0   :  { %v4356_v7 = vadd.f32 %v4250_v37, %v3926_v50  ;;  %v3497_v36 = vadd.f32 %v3392_v43, %v3066_v3  ;;  %v7182_v3 = vld [vmem:[#allocation16_spill] sm:$0xff] }
 0x4a2   :  { %v4424_v15 = vadd.f32 %v6762_v35, %v4356_v7 }
 0x4a3   :  { %v4257_v4 = vpop.f32.mrf.mxu0 }
 0x4a4   :  { %v4488_v44 = vmax.f32 %v4424_v15, 0.0 }
 0x4a5   :  { %v3822_v25 = vpop.f32.mrf.mxu3  ;;  %v2964_v18 = vpop.f32.mrf.mxu1 }
 0x4a6   :  { %4553 = vst.msk [vmem:[%s7034_s4 + $0x120] sm:$0xff] %vm4516_vm10, %v4488_v44  ;;  %v3927_v9 = vadd.f32 %v3822_v25, %v3497_v36  ;;  %v3067_v30 = vadd.f32 %v2964_v18, %v7179_v6 }
 0x4a7   :  { %v3397_v26 = vpop.f32.mrf.mxu2 }
 0x4a8   :  { %v4357_v48 = vadd.f32 %v4252_v12, %v3927_v9  ;;  %4841 = vmatmul.msk.bf16.gmra.mxu1 %vm466_vm1, %v6806_v55  ;;  %v3498_v29 = vadd.f32 %v3395_v21, %v3067_v30  ;;  %v3155_v9 = vld [vmem:[#allocation2 + $0x338] sm:$0xff] }
 0x4a9   :  { %v7183_v30 = vld [vmem:[#allocation18_spill] sm:$0xff] }
 0x4aa   :  { %v4425_v45 = vadd.f32 %v6762_v35, %v4357_v48  ;;  %4907 = vmatmul.msk.bf16.gmra.mxu3 %vm466_vm1, %v3615_v27  ;;  %v4015_v48 = vld [vmem:[#allocation2 + $0x33a] sm:$0xff] }
 0x4ab   :  { %v4260_v37 = vpop.f32.mrf.mxu0 }
 0x4ac   :  { %v4489_v56 = vmax.f32 %v4425_v45, 0.0  ;;  %4875 = vmatmul.msk.bf16.gmra.mxu2 %vm466_vm1, %v3186_v24  ;;  %v3188_v45 = vpack.c.bf16 %v3155_v9, %v3154_v1 }
 0x4ad   :  { %v3825_v34 = vpop.f32.mrf.mxu3  ;;  %v2966_v23 = vpop.f32.mrf.mxu1 }
 0x4ae   :  { %4554 = vst.msk [vmem:[%s7034_s4 + $0x128] sm:$0xff] %vm4516_vm10, %v4489_v56  ;;  %v3928_v55 = vadd.f32 %v3825_v34, %v3498_v29  ;;  %4941 = vmatmul.msk.bf16.gmra.mxu0 %vm466_vm1, %v6846_v13  ;;  %v3068_v38 = vadd.f32 %v2966_v23, %v7180_v54  ;;  %v4048_v56 = vpack.c.bf16 %v4015_v48, %v4014_v52 }
 0x4af   :  { %v3400_v41 = vpop.f32.mrf.mxu2 }
 0x4b0   :  { %v4358_v2 = vadd.f32 %v4255_v17, %v3928_v55  ;;  %v3499_v63 = vadd.f32 %v3397_v26, %v3068_v38  ;;  %v7184_v38 = vld [vmem:[#allocation20_spill] sm:$0xff] }
 0x4b2   :  { %v4426_v20 = vadd.f32 %v6762_v35, %v4358_v2 }
 0x4b3   :  { %v4262_v12 = vpop.f32.mrf.mxu0 }
 0x4b4   :  { %v4490_v31 = vmax.f32 %v4426_v20, 0.0 }
 0x4b5   :  { %v3827_v14 = vpop.f32.mrf.mxu3  ;;  %v2969_v62 = vpop.f32.mrf.mxu1 }
 0x4b6   :  { %4555 = vst.msk [vmem:[%s7034_s4 + $0x130] sm:$0xff] %vm4516_vm10, %v4490_v31  ;;  %v3929_v59 = vadd.f32 %v3827_v14, %v3499_v63  ;;  %v3069_v53 = vadd.f32 %v2969_v62, %v7181_v11 }
 0x4b7   :  { %v3402_v43 = vpop.f32.mrf.mxu2 }
 0x4b8   :  { %v4359_v33 = vadd.f32 %v4257_v4, %v3929_v59  ;;  %4842 = vmatmul.msk.bf16.gmra.mxu1 %vm466_vm1, %v6826_v61  ;;  %v3500_v16 = vadd.f32 %v3400_v41, %v3069_v53  ;;  %v3583_v4 = vld [vmem:[#allocation2 + $0x321] sm:$0xff]  ;;  %v3157_v59 = vld [vmem:[#allocation2 + $0x350] sm:$0xff]  ;;  %v7185_v53 = vld [vmem:[#allocation22_spill] sm:$0xff] }
 0x4b9   :  { %v3617_v26 = vpack.c.bf16 %v3583_v4, %v3582_v49  ;;  %v3586_v4 = vld [vmem:[#allocation2 + $0x349] sm:$0xff] }
 0x4ba   :  { %v4427_v17 = vadd.f32 %v6762_v35, %v4359_v33  ;;  %4908 = vmatmul.msk.bf16.gmra.mxu3 %vm466_vm1, %v3616_v22  ;;  %v4017_v33 = vld [vmem:[#allocation2 + $0x352] sm:$0xff] }
 0x4bb   :  { %v4265_v42 = vpop.f32.mrf.mxu0 }
 0x4bc   :  { %v4491_v8 = vmax.f32 %v4427_v17, 0.0  ;;  %4876 = vmatmul.msk.bf16.gmra.mxu2 %vm466_vm1, %v3187_v40  ;;  %v3189_v17 = vpack.c.bf16 %v3157_v59, %v3156_v39 }
 0x4bd   :  { %v3830_v50 = vpop.f32.mrf.mxu3  ;;  %v2971_v21 = vpop.f32.mrf.mxu1 }
 0x4be   :  { %4556 = vst.msk [vmem:[%s7034_s4 + $0x138] sm:$0xff] %vm4516_vm10, %v4491_v8  ;;  %v3930_v61 = vadd.f32 %v3830_v50, %v3500_v16  ;;  %4942 = vmatmul.msk.bf16.gmra.mxu0 %vm466_vm1, %v6866_v47  ;;  %v3070_v15 = vadd.f32 %v2971_v21, %v7182_v3  ;;  %v4049_v8 = vpack.c.bf16 %v4017_v33, %v4016_v19  ;;  %v7189_v19 = vld [vmem:[#allocation4_spill] sm:$0xff] }
 0x4bf   :  { %v3405_v7 = vpop.f32.mrf.mxu2 }
 0x4c0   :  { %v4360_v58 = vadd.f32 %v4260_v37, %v3930_v61  ;;  %v3501_v25 = vadd.f32 %v3402_v43, %v3070_v15  ;;  %v7186_v15 = vld [vmem:[#allocation24_spill] sm:$0xff] }
 0x4c2   :  { %v4428_v60 = vadd.f32 %v6762_v35, %v4360_v58 }
 0x4c3   :  { %v4267_v44 = vpop.f32.mrf.mxu0 }
 0x4c4   :  { %v4492_v36 = vmax.f32 %v4428_v60, 0.0 }
 0x4c5   :  { %v3832_v18 = vpop.f32.mrf.mxu3  ;;  %v2974_v5 = vpop.f32.mrf.mxu1 }
 0x4c6   :  { %4557 = vst.msk [vmem:[%s7034_s4 + $0x140] sm:$0xff] %vm4516_vm10, %v4492_v36  ;;  %v3931_v27 = vadd.f32 %v3832_v18, %v3501_v25  ;;  %v3071_v24 = vadd.f32 %v2974_v5, %v7183_v30 }
 0x4c7   :  { %v3407_v57 = vpop.f32.mrf.mxu2 }
 0x4c8   :  { %v4361_v6 = vadd.f32 %v4262_v12, %v3931_v27  ;;  %4843 = vmatmul.msk.bf16.gmra.mxu1 %vm466_vm1, %v6846_v13  ;;  %v3502_v23 = vadd.f32 %v3405_v7, %v3071_v24  ;;  %v3585_v12 = vld [vmem:[#allocation2 + $0x339] sm:$0xff] }
 0x4c9   :  { %v3618_v43 = vpack.c.bf16 %v3585_v12, %v3584_v10  ;;  %v7188_v12 = vld [vmem:[#allocation3_spill] sm:$0xff] }
 0x4ca   :  { %v4429_v37 = vadd.f32 %v6762_v35, %v4361_v6  ;;  %4909 = vmatmul.msk.bf16.gmra.mxu3 %vm466_vm1, %v3617_v26 }
 0x4cb   :  { %v4270_v29 = vpop.f32.mrf.mxu0 }
 0x4cc   :  { %v4493_v34 = vmax.f32 %v4429_v37, 0.0  ;;  %4877 = vmatmul.msk.bf16.gmra.mxu2 %vm466_vm1, %v3188_v45 }
 0x4cd   :  { %v3835_v55 = vpop.f32.mrf.mxu3  ;;  %v2976_v41 = vpop.f32.mrf.mxu1 }
 0x4ce   :  { %4558 = vst.msk [vmem:[%s7034_s4 + $0x148] sm:$0xff] %vm4516_vm10, %v4493_v34  ;;  %v3932_v2 = vadd.f32 %v3835_v55, %v3502_v23  ;;  %4943 = vmatmul.msk.bf16.gmra.mxu0 %vm466_vm1, %v4048_v56  ;;  %v3072_v20 = vadd.f32 %v2976_v41, %v7184_v38 }
 0x4cf   :  { %v3410_v13 = vpop.f32.mrf.mxu2 }
 0x4d0   :  { %v4362_v54 = vadd.f32 %v4265_v42, %v3932_v2  ;;  %v3503_v14 = vadd.f32 %v3407_v57, %v3072_v20 }
 0x4d2   :  { %v4430_v46 = vadd.f32 %v6762_v35, %v4362_v54 }
 0x4d3   :  { %v4272_v31 = vpop.f32.mrf.mxu0 }
 0x4d4   :  { %v4494_v63 = vmax.f32 %v4430_v46, 0.0 }
 0x4d5   :  { %v3837_v62 = vpop.f32.mrf.mxu3  ;;  %v2979_v28 = vpop.f32.mrf.mxu1 }
 0x4d6   :  { %4559 = vst.msk [vmem:[%s7034_s4 + $0x150] sm:$0xff] %vm4516_vm10, %v4494_v63  ;;  %v3933_v22 = vadd.f32 %v3837_v62, %v3503_v14  ;;  %v3073_v40 = vadd.f32 %v2979_v28, %v7185_v53 }
 0x4d7   :  { %v3412_v0 = vpop.f32.mrf.mxu2 }
 0x4d8   :  { %v4363_v11 = vadd.f32 %v4267_v44, %v3933_v22  ;;  %4844 = vmatmul.msk.bf16.gmra.mxu1 %vm466_vm1, %v6866_v47  ;;  %v3504_v21 = vadd.f32 %v3410_v13, %v3073_v40  ;;  %v3587_v44 = vld [vmem:[#allocation2 + $0x351] sm:$0xff] }
 0x4d9   :  { %v3619_v27 = vpack.c.bf16 %v3587_v44, %v3586_v4 }
 0x4da   :  { %v4431_v42 = vadd.f32 %v6762_v35, %v4363_v11  ;;  %4910 = vmatmul.msk.bf16.gmra.mxu3 %vm466_vm1, %v3618_v43 }
 0x4db   :  { %v4275_v16 = vpop.f32.mrf.mxu0 }
 0x4dc   :  { %v4495_v50 = vmax.f32 %v4431_v42, 0.0  ;;  %4878 = vmatmul.msk.bf16.gmra.mxu2 %vm466_vm1, %v3189_v17 }
 0x4dd   :  { %v3840_v61 = vpop.f32.mrf.mxu3  ;;  %v2981_v7 = vpop.f32.mrf.mxu1 }
 0x4de   :  { %4560 = vst.msk [vmem:[%s7034_s4 + $0x158] sm:$0xff] %vm4516_vm10, %v4495_v50  ;;  %v3934_v58 = vadd.f32 %v3840_v61, %v3504_v21  ;;  %4944 = vmatmul.msk.bf16.gmra.mxu0 %vm466_vm1, %v4049_v8  ;;  %v3074_v60 = vadd.f32 %v2981_v7, %v7186_v15  ;;  %v7190_v61 = vld [vmem:[#allocation5_spill] sm:$0xff] }
 0x4df   :  { %v3415_v47 = vpop.f32.mrf.mxu2 }
 0x4e0   :  { %v4364_v3 = vadd.f32 %v4270_v29, %v3934_v58  ;;  %v3505_v18 = vadd.f32 %v3412_v0, %v3074_v60 }
 0x4e2   :  { %v4432_v49 = vadd.f32 %v6762_v35, %v4364_v3 }
 0x4e3   :  { %v4277_v36 = vpop.f32.mrf.mxu0 }
 0x4e4   :  { %v4496_v25 = vmax.f32 %v4432_v49, 0.0 }
 0x4e5   :  { %v3842_v5 = vpop.f32.mrf.mxu3  ;;  %v2984_v1 = vpop.f32.mrf.mxu1 }
 0x4e6   :  { %4561 = vst.msk [vmem:[%s7034_s4 + $0x160] sm:$0xff] %vm4516_vm10, %v4496_v25  ;;  %v3935_v9 = vadd.f32 %v3842_v5, %v3505_v18  ;;  %v3075_v52 = vadd.f32 %v2984_v1, %v6378_v32  ;;  %v7187_v32 = vld [vmem:[#allocation26_spill] sm:$0xff] }
 0x4e7   :  { %v3417_v26 = vpop.f32.mrf.mxu2  ;;  %v7191_v25 = vld [vmem:[#allocation6_spill] sm:$0xff] }
 0x4e8   :  { %v4365_v57 = vadd.f32 %v4272_v31, %v3935_v9  ;;  %4845 = vmatmul.msk.bf16.gmra.mxu1 %vm466_vm1, %v4048_v56  ;;  %v3506_v24 = vadd.f32 %v3415_v47, %v3075_v52 }
 0x4ea   :  { %v4433_v48 = vadd.f32 %v6762_v35, %v4365_v57  ;;  %4911 = vmatmul.msk.bf16.gmra.mxu3 %vm466_vm1, %v3619_v27 }
 0x4eb   :  { %v4280_v6 = vpop.f32.mrf.mxu0 }
 0x4ec   :  { %v4497_v30 = vmax.f32 %v4433_v48, 0.0 }
 0x4ed   :  { %v3845_v45 = vpop.f32.mrf.mxu3  ;;  %v2986_v37 = vpop.f32.mrf.mxu1 }
 0x4ee   :  { %4562 = vst.msk [vmem:[%s7034_s4 + $0x168] sm:$0xff] %vm4516_vm10, %v4497_v30  ;;  %v3936_v29 = vadd.f32 %v3845_v45, %v3506_v24  ;;  %v3076_v55 = vadd.f32 %v2986_v37, %v7187_v32  ;;  %v7192_v30 = vld [vmem:[#allocation7_spill] sm:$0xff] }
 0x4ef   :  { %v3420_v34 = vpop.f32.mrf.mxu2 }
 0x4f0   :  { %v4366_v23 = vadd.f32 %v4275_v16, %v3936_v29  ;;  %v3507_v13 = vadd.f32 %v3417_v26, %v3076_v55 }
 0x4f2   :  { %v4434_v56 = vadd.f32 %v6762_v35, %v4366_v23 }
 0x4f3   :  { %v4282_v41 = vpop.f32.mrf.mxu0 }
 0x4f4   :  { %v4498_v2 = vmax.f32 %v4434_v56, 0.0 }
 0x4f5   :  { %v3847_v54 = vpop.f32.mrf.mxu3  ;;  %v2989_v38 = vpop.f32.mrf.mxu1 }
 0x4f6   :  { %4563 = vst.msk [vmem:[%s7034_s4 + $0x170] sm:$0xff] %vm4516_vm10, %v4498_v2  ;;  %v3937_v20 = vadd.f32 %v3847_v54, %v3507_v13  ;;  %v3077_v31 = vadd.f32 %v2989_v38, %v7188_v12  ;;  %v7193_v2 = vld [vmem:[#allocation9_spill] sm:$0xff] }
 0x4f7   :  { %v3422_v46 = vpop.f32.mrf.mxu2 }
 0x4f8   :  { %v4367_v10 = vadd.f32 %v4277_v36, %v3937_v20  ;;  %v3508_v28 = vadd.f32 %v3420_v34, %v3077_v31 }
 0x4fa   :  { %v4435_v63 = vadd.f32 %v6762_v35, %v4367_v10 }
 0x4fb   :  { %v4285_v14 = vpop.f32.mrf.mxu0 }
 0x4fc   :  { %v4499_v62 = vmax.f32 %v4435_v63, 0.0 }
 0x4fd   :  { %v3850_v39 = vpop.f32.mrf.mxu3  ;;  %v2991_v59 = vpop.f32.mrf.mxu1 }
 0x4fe   :  { %4564 = vst.msk [vmem:[%s7034_s4 + $0x178] sm:$0xff] %vm4516_vm10, %v4499_v62  ;;  %v3938_v22 = vadd.f32 %v3850_v39, %v3508_v28  ;;  %v3078_v33 = vadd.f32 %v2991_v59, %v7189_v19  ;;  %v7194_v62 = vld [vmem:[#allocation11_spill] sm:$0xff] }
 0x4ff   :  { %v3425_v43 = vpop.f32.mrf.mxu2 }
 0x500   :  { %v4368_v0 = vadd.f32 %v4280_v6, %v3938_v22  ;;  %v3509_v17 = vadd.f32 %v3422_v46, %v3078_v33 }
 0x502   :  { %v4436_v11 = vadd.f32 %v6762_v35, %v4368_v0 }
 0x503   :  { %v4287_v53 = vpop.f32.mrf.mxu0 }
 0x504   :  { %v4500_v40 = vmax.f32 %v4436_v11, 0.0 }
 0x505   :  { %v3852_v42 = vpop.f32.mrf.mxu3  ;;  %v2994_v8 = vpop.f32.mrf.mxu1 }
 0x506   :  { %4565 = vst.msk [vmem:[%s7034_s4 + $0x180] sm:$0xff] %vm4516_vm10, %v4500_v40  ;;  %v3939_v16 = vadd.f32 %v3852_v42, %v3509_v17  ;;  %v3079_v7 = vadd.f32 %v2994_v8, %v7190_v61 }
 0x507   :  { %v3427_v50 = vpop.f32.mrf.mxu2 }
 0x508   :  { %v4369_v21 = vadd.f32 %v4282_v41, %v3939_v16  ;;  %v3510_v15 = vadd.f32 %v3425_v43, %v3079_v7 }
 0x50a   :  { %v4437_v58 = vadd.f32 %v6762_v35, %v4369_v21 }
 0x50b   :  { %v4290_v47 = vpop.f32.mrf.mxu0 }
 0x50c   :  { %v4501_v3 = vmax.f32 %v4437_v58, 0.0 }
 0x50d   :  { %v3855_v60 = vpop.f32.mrf.mxu3  ;;  %v2996_v49 = vpop.f32.mrf.mxu1 }
 0x50e   :  { %4566 = vst.msk [vmem:[%s7034_s4 + $0x188] sm:$0xff] %vm4516_vm10, %v4501_v3  ;;  %v3940_v4 = vadd.f32 %v3855_v60, %v3510_v15  ;;  %v3080_v18 = vadd.f32 %v2996_v49, %v7191_v25 }
 0x50f   :  { %v3430_v44 = vpop.f32.mrf.mxu2 }
 0x510   :  { %v4370_v36 = vadd.f32 %v4285_v14, %v3940_v4  ;;  %v3511_v27 = vadd.f32 %v3427_v50, %v3080_v18 }
 0x512   :  { %v4438_v5 = vadd.f32 %v6762_v35, %v4370_v36 }
 0x513   :  { %v4292_v1 = vpop.f32.mrf.mxu0 }
 0x514   :  { %v4502_v9 = vmax.f32 %v4438_v5, 0.0 }
 0x515   :  { %v3857_v26 = vpop.f32.mrf.mxu3  ;;  %v2999_v57 = vpop.f32.mrf.mxu1 }
 0x516   :  { %4567 = vst.msk [vmem:[%s7034_s4 + $0x190] sm:$0xff] %vm4516_vm10, %v4502_v9  ;;  %v3941_v52 = vadd.f32 %v3857_v26, %v3511_v27  ;;  %v3081_v24 = vadd.f32 %v2999_v57, %v7192_v30 }
 0x517   :  { %v3432_v48 = vpop.f32.mrf.mxu2 }
 0x518   :  { %v4371_v6 = vadd.f32 %v4287_v53, %v3941_v52  ;;  %v3512_v29 = vadd.f32 %v3430_v44, %v3081_v24  ;;  %v7195_v53 = vld [vmem:[#allocation13_spill] sm:$0xff] }
 0x51a   :  { %v4439_v45 = vadd.f32 %v6762_v35, %v4371_v6 }
 0x51b   :  { %v4295_v34 = vpop.f32.mrf.mxu0 }
 0x51c   :  { %v4503_v37 = vmax.f32 %v4439_v45, 0.0  ;;  %v7198_v45 = vld [vmem:[#allocation19_spill] sm:$0xff] }
 0x51d   :  { %v3860_v23 = vpop.f32.mrf.mxu3  ;;  %v3001_v32 = vpop.f32.mrf.mxu1 }
 0x51e   :  { %4568 = vst.msk [vmem:[%s7034_s4 + $0x198] sm:$0xff] %vm4516_vm10, %v4503_v37  ;;  %v3942_v55 = vadd.f32 %v3860_v23, %v3512_v29  ;;  %v3082_v13 = vadd.f32 %v3001_v32, %v7193_v2 }
 0x51f   :  { %v3435_v56 = vpop.f32.mrf.mxu2 }
 0x520   :  { %v4372_v41 = vadd.f32 %v4290_v47, %v3942_v55  ;;  %v3513_v20 = vadd.f32 %v3432_v48, %v3082_v13  ;;  %v7196_v47 = vld [vmem:[#allocation15_spill] sm:$0xff] }
 0x522   :  { %v4440_v54 = vadd.f32 %v6762_v35, %v4372_v41 }
 0x523   :  { %v4297_v31 = vpop.f32.mrf.mxu0 }
 0x524   :  { %v4504_v38 = vmax.f32 %v4440_v54, 0.0  ;;  %v7199_v54 = vld [vmem:[#allocation21_spill] sm:$0xff] }
 0x525   :  { %v3862_v46 = vpop.f32.mrf.mxu3  ;;  %v3004_v10 = vpop.f32.mrf.mxu1 }
 0x526   :  { %4569 = vst.msk [vmem:[%s7034_s4 + $0x1a0] sm:$0xff] %vm4516_vm10, %v4504_v38  ;;  %v3943_v12 = vadd.f32 %v3862_v46, %v3513_v20  ;;  %v3083_v28 = vadd.f32 %v3004_v10, %v7194_v62 }
 0x527   :  { %v3437_v63 = vpop.f32.mrf.mxu2 }
 0x528   :  { %v4373_v14 = vadd.f32 %v4292_v1, %v3943_v12  ;;  %v3514_v22 = vadd.f32 %v3435_v56, %v3083_v28  ;;  %v7197_v1 = vld [vmem:[#allocation17_spill] sm:$0xff]  ;;  %v7200_v28 = vld [vmem:[#allocation23_spill] sm:$0xff] }
 0x52a   :  { %v4441_v39 = vadd.f32 %v6762_v35, %v4373_v14 }
 0x52b   :  { %v4300_v17 = vpop.f32.mrf.mxu0 }
 0x52c   :  { %v4505_v59 = vmax.f32 %v4441_v39, 0.0 }
 0x52d   :  { %v3865_v43 = vpop.f32.mrf.mxu3  ;;  %v3006_v0 = vpop.f32.mrf.mxu1 }
 0x52e   :  { %4570 = vst.msk [vmem:[%s7034_s4 + $0x1a8] sm:$0xff] %vm4516_vm10, %v4505_v59  ;;  %v3944_v19 = vadd.f32 %v3865_v43, %v3514_v22  ;;  %v3084_v40 = vadd.f32 %v3006_v0, %v7195_v53 }
 0x52f   :  { %v3440_v33 = vpop.f32.mrf.mxu2 }
 0x530   :  { %v4374_v11 = vadd.f32 %v4295_v34, %v3944_v19  ;;  %v3515_v16 = vadd.f32 %v3437_v63, %v3084_v40 }
 0x532   :  { %v4442_v42 = vadd.f32 %v6762_v35, %v4374_v11 }
 0x533   :  { %v4302_v60 = vpop.f32.mrf.mxu0 }
 0x534   :  { %v4506_v8 = vmax.f32 %v4442_v42, 0.0 }
 0x535   :  { %v3867_v50 = vpop.f32.mrf.mxu3  ;;  %v3009_v21 = vpop.f32.mrf.mxu1 }
 0x536   :  { %4571 = vst.msk [vmem:[%s7034_s4 + $0x1b0] sm:$0xff] %vm4516_vm10, %v4506_v8  ;;  %v3945_v61 = vadd.f32 %v3867_v50, %v3515_v16  ;;  %v3085_v3 = vadd.f32 %v3009_v21, %v7196_v47 }
 0x537   :  { %v3442_v7 = vpop.f32.mrf.mxu2 }
 0x538   :  { %v4375_v58 = vadd.f32 %v4297_v31, %v3945_v61  ;;  %v3516_v4 = vadd.f32 %v3440_v33, %v3085_v3 }
 0x53a   :  { %v4443_v15 = vadd.f32 %v6762_v35, %v4375_v58 }
 0x53b   :  { %v4305_v52 = vpop.f32.mrf.mxu0 }
 0x53c   :  { %v4507_v49 = vmax.f32 %v4443_v15, 0.0 }
 0x53d   :  { %v3870_v44 = vpop.f32.mrf.mxu3  ;;  %v3011_v36 = vpop.f32.mrf.mxu1 }
 0x53e   :  { %4572 = vst.msk [vmem:[%s7034_s4 + $0x1b8] sm:$0xff] %vm4516_vm10, %v4507_v49  ;;  %v3946_v25 = vadd.f32 %v3870_v44, %v3516_v4  ;;  %v3086_v9 = vadd.f32 %v3011_v36, %v7197_v1  ;;  %v7202_v1 = vld [vmem:[#allocation27_spill] sm:$0xff] }
 0x53f   :  { %v3445_v18 = vpop.f32.mrf.mxu2 }
 0x540   :  { %v4376_v5 = vadd.f32 %v4300_v17, %v3946_v25  ;;  %v3517_v57 = vadd.f32 %v3442_v7, %v3086_v9  ;;  %v7201_v17 = vld [vmem:[#allocation25_spill] sm:$0xff] }
 0x542   :  { %v4444_v27 = vadd.f32 %v6762_v35, %v4376_v5 }
 0x543   :  { %v4307_v2 = vpop.f32.mrf.mxu0 }
 0x544   :  { %v4508_v26 = vmax.f32 %v4444_v27, 0.0 }
 0x545   :  { %v3872_v48 = vpop.f32.mrf.mxu3  ;;  %v3014_v6 = vpop.f32.mrf.mxu1 }
 0x546   :  { %4573 = vst.msk [vmem:[%s7034_s4 + $0x1c0] sm:$0xff] %vm4516_vm10, %v4508_v26  ;;  %v3947_v30 = vadd.f32 %v3872_v48, %v3517_v57  ;;  %v3087_v37 = vadd.f32 %v3014_v6, %v7198_v45 }
 0x547   :  { %v3447_v29 = vpop.f32.mrf.mxu2 }
 0x548   :  { %v4377_v24 = vadd.f32 %v4302_v60, %v3947_v30  ;;  %v3518_v32 = vadd.f32 %v3445_v18, %v3087_v37 }
 0x54a   :  { %v4445_v34 = vadd.f32 %v6762_v35, %v4377_v24 }
 0x54b   :  { %v4310_v59 = vpop.f32.mrf.mxu0 }
 0x54c   :  { %v4509_v23 = vmax.f32 %v4445_v34, 0.0 }
 0x54d   :  { %v3875_v55 = vpop.f32.mrf.mxu3  ;;  %v3016_v56 = vpop.f32.mrf.mxu1 }
 0x54e   :  { %4574 = vst.msk [vmem:[%s7034_s4 + $0x1c8] sm:$0xff] %vm4516_vm10, %v4509_v23  ;;  %v3948_v41 = vadd.f32 %v3875_v55, %v3518_v32  ;;  %v3088_v38 = vadd.f32 %v3016_v56, %v7199_v54 }
 0x54f   :  { %v3450_v46 = vpop.f32.mrf.mxu2 }
 0x550   :  { %v4378_v13 = vadd.f32 %v4305_v52, %v3948_v41  ;;  %v3519_v12 = vadd.f32 %v3447_v29, %v3088_v38 }
 0x552   :  { %v4446_v20 = vadd.f32 %v6762_v35, %v4378_v13 }
 0x553   :  { %v4312_v16 = vpop.f32.mrf.mxu0 }
 0x554   :  { %v4510_v10 = vmax.f32 %v4446_v20, 0.0 }
 0x555   :  { %v3877_v31 = vpop.f32.mrf.mxu3  ;;  %v3019_v63 = vpop.f32.mrf.mxu1 }
 0x556   :  { %4575 = vst.msk [vmem:[%s7034_s4 + $0x1d0] sm:$0xff] %vm4516_vm10, %v4510_v10  ;;  %v3949_v14 = vadd.f32 %v3877_v31, %v3519_v12  ;;  %v3089_v39 = vadd.f32 %v3019_v63, %v7200_v28 }
 0x557   :  { %v3452_v19 = vpop.f32.mrf.mxu2 }
 0x558   :  { %v4379_v62 = vadd.f32 %v4307_v2, %v3949_v14  ;;  %v3520_v0 = vadd.f32 %v3450_v46, %v3089_v39 }
 0x55a   :  { %v4447_v22 = vadd.f32 %v6762_v35, %v4379_v62 }
 0x55b   :  { %v4315_v4 = vpop.f32.mrf.mxu0 }
 0x55c   :  { %v4511_v43 = vmax.f32 %v4447_v22, 0.0 }
 0x55d   :  { %v3880_v33 = vpop.f32.mrf.mxu3  ;;  %v3021_v11 = vpop.f32.mrf.mxu1 }
 0x55e   :  { %4576 = vst.msk [vmem:[%s7034_s4 + $0x1d8] sm:$0xff] %vm4516_vm10, %v4511_v43  ;;  %v3950_v53 = vadd.f32 %v3880_v33, %v3520_v0  ;;  %v3090_v42 = vadd.f32 %v3021_v11, %v7201_v17 }
 0x55f   :  { %v3455_v47 = vpop.f32.mrf.mxu2 }
 0x560   :  { %v4380_v40 = vadd.f32 %v4310_v59, %v3950_v53  ;;  %v3521_v21 = vadd.f32 %v3452_v19, %v3090_v42 }
 0x562   :  { %v4448_v8 = vadd.f32 %v6762_v35, %v4380_v40 }
 0x563   :  { %v4317_v6 = vpop.f32.mrf.mxu0 }
 0x564   :  { %v4512_v50 = vmax.f32 %v4448_v8, 0.0 }
 0x565   :  { %v3882_v61 = vpop.f32.mrf.mxu3  ;;  %v3024_v7 = vpop.f32.mrf.mxu1 }
 0x566   :  { %4577 = vst.msk [vmem:[%s7034_s4 + $0x1e0] sm:$0xff] %vm4516_vm10, %v4512_v50  ;;  %v3951_v58 = vadd.f32 %v3882_v61, %v3521_v21  ;;  %v3091_v15 = vadd.f32 %v3024_v7, %v6458_v51 }
 0x567   :  { %v3457_v27 = vpop.f32.mrf.mxu2 }
 0x568   :  { %v4381_v3 = vadd.f32 %v4312_v16, %v3951_v58  ;;  %v3522_v44 = vadd.f32 %v3455_v47, %v3091_v15 }
 0x56a   :  { %v4449_v60 = vadd.f32 %v6762_v35, %v4381_v3 }
 0x56c   :  { %v4513_v49 = vmax.f32 %v4449_v60, 0.0 }
 0x56d   :  { %v3885_v36 = vpop.f32.mrf.mxu3  ;;  %v3026_v25 = vpop.f32.mrf.mxu1 }
 0x56e   :  { %4578 = vst.msk [vmem:[%s7034_s4 + $0x1e8] sm:$0xff] %vm4516_vm10, %v4513_v49  ;;  %v3952_v18 = vadd.f32 %v3885_v36, %v3522_v44  ;;  %v3092_v9 = vadd.f32 %v3026_v25, %v7202_v1 }
 0x570   :  { %v4382_v5 = vadd.f32 %v4315_v4, %v3952_v18  ;;  %v3523_v57 = vadd.f32 %v3457_v27, %v3092_v9 }
 0x572   :  { %v4450_v26 = vadd.f32 %v6762_v35, %v4382_v5 }
 0x574   :  { %v4514_v51 = vmax.f32 %v4450_v26, 0.0 }
 0x575   :  { %v3887_v52 = vpop.f32.mrf.mxu3 }
 0x576   :  { %4579 = vst.msk [vmem:[%s7034_s4 + $0x1f0] sm:$0xff] %vm4516_vm10, %v4514_v51  ;;  %v3953_v48 = vadd.f32 %v3887_v52, %v3523_v57 }
 0x578   :  { %v4383_v30 = vadd.f32 %v4317_v6, %v3953_v48 }
 0x57a   :  { %v4451_v24 = vadd.f32 %v6762_v35, %v4383_v30 }
 0x57c   :  { %v4515_v45 = vmax.f32 %v4451_v24, 0.0 }
 0x57e   :  { %4580 = vst.msk [vmem:[%s7034_s4 + $0x1f8] sm:$0xff] %vm4516_vm10, %v4515_v45 }

</bundles_post_ra>
